<compile_context>
chip_gen: v6e
topology: v6e:2x2x1
jax: 0.10.0
libtpu: 0.0.40
codegen_flags: <defaults>
</compile_context>

<pallas_src>
import functools

import jax
import jax.numpy as jnp
from jax.experimental import pallas as pl
from jax.experimental.pallas import tpu as pltpu


# ----------------------------- small config ---------------------------------
# (module-consistent but scaled down so it runs fast on a single chip)
VOCAB_SIZE = 65
BLOCK_SIZE = 64        # max context length
N_EMBD     = 128
N_BLOCKS   = 2
NUM_HEADS  = 2
HEAD_PAD   = 128       # lane-dense padded lm_head width (>= VOCAB_SIZE)
EPS        = 1e-5
NEG_MASK   = -1e30     # finite mask value instead of -inf


# ------------------------------- kernel --------------------------------------
def _layernorm(x, gamma, beta):
    mean = jnp.mean(x, axis=-1, keepdims=True)
    var = jnp.mean((x - mean) ** 2, axis=-1, keepdims=True)
    inv = jax.lax.rsqrt(var + EPS)
    return (x - mean) * inv * gamma + beta


def fused_forward_kernel(x_ref,
                         ln1g_ref, ln1b_ref, wq_ref, wk_ref, wv_ref, wo_ref,
                         bo_ref, ln2g_ref, ln2b_ref, w1_ref, b1_ref, w2_ref,
                         b2_ref, lnfg_ref, lnfb_ref, wh_ref, bh_ref,
                         out_ref, attn_ref,
                         *, num_heads, n_blocks, batch_per_slab, seq_len):
    R, D = x_ref.shape
    T = seq_len
    hd = D // num_heads
    scale = float(hd) ** -0.5

    x = x_ref[...]                                   # (R, D) f32, stays resident

    # causal mask: hoisted once, reused by every block / batch / head
    row = jax.lax.broadcasted_iota(jnp.int32, (T, T), 0)
    col = jax.lax.broadcasted_iota(jnp.int32, (T, T), 1)
    causal = row >= col

    for blk in range(n_blocks):
        # ---- pre-LN + causal multi-head self-attention ----
        h = _layernorm(x, ln1g_ref[blk], ln1b_ref[blk]).astype(jnp.bfloat16)
        q = jnp.dot(h, wq_ref[blk], preferred_element_type=jnp.float32)
        k = jnp.dot(h, wk_ref[blk], preferred_element_type=jnp.float32)
        v = jnp.dot(h, wv_ref[blk], preferred_element_type=jnp.float32)
        wo_b = wo_ref[blk]                           # (D, D) bf16

        # only scores / softmax / PV are per-batch (T x T); dense matmuls above
        # and below run on the whole (R, D) slab.
        for b in range(batch_per_slab):
            r0 = b * T
            acc = jnp.zeros((T, D), jnp.float32)
            for hi in range(num_heads):
                c0 = hi * hd
                qs = q[r0:r0 + T, c0:c0 + hd].astype(jnp.bfloat16)
                ks = k[r0:r0 + T, c0:c0 + hd].astype(jnp.bfloat16)
                vs = v[r0:r0 + T, c0:c0 + hd].astype(jnp.bfloat16)
                s = jnp.dot(qs, ks.T, preferred_element_type=jnp.float32) * scale
                s = jnp.where(causal, s, NEG_MASK)
                s = s - jnp.max(s, axis=-1, keepdims=True)
                p = jnp.exp(s)
                denom = jnp.sum(p, axis=-1, keepdims=True)
                p = p * pl.reciprocal(denom, approx=True)      # EUP divide
                ho = jnp.dot(p.astype(jnp.bfloat16), vs,
                             preferred_element_type=jnp.float32)
                # block-row decomposition of att @ Wo (no lane-dim concat)
                acc = acc + jnp.dot(ho.astype(jnp.bfloat16),
                                    wo_b[c0:c0 + hd, :],
                                    preferred_element_type=jnp.float32)
            attn_ref[r0:r0 + T, :] = acc
        x = x + attn_ref[...] + bo_ref[blk]

        # ---- pre-LN + 4x feed-forward (ReLU) on the full slab ----
        h2 = _layernorm(x, ln2g_ref[blk], ln2b_ref[blk]).astype(jnp.bfloat16)
        m = jnp.dot(h2, w1_ref[blk], preferred_element_type=jnp.float32) + b1_ref[blk]
        m = jnp.maximum(m, 0.0)
        mlp = jnp.dot(m.astype(jnp.bfloat16), w2_ref[blk],
                      preferred_element_type=jnp.float32) + b2_ref[blk]
        x = x + mlp

    # ---- final LayerNorm + lm_head (lane-padded to HEAD_PAD) ----
    hf = _layernorm(x, lnfg_ref[...], lnfb_ref[...]).astype(jnp.bfloat16)
    out_ref[...] = jnp.dot(hf, wh_ref[...],
                           preferred_element_type=jnp.float32) + bh_ref[...]


# ------------------------------ wrapper ---------------------------------------
def _rep_spec(shape):
    """Whole-array block, replicated across the slab grid axis."""
    zeros = (0,) * len(shape)
    return pl.BlockSpec(shape, lambda s, _z=zeros: _z)


def run_huge_model(x2d, params, *, batch, seq_len, num_slabs):
    Rtot, D = x2d.shape
    R = Rtot // num_slabs
    Bb = batch // num_slabs

    weight_names = ["ln1_g", "ln1_b", "wq", "wk", "wv", "wo", "bo",
                    "ln2_g", "ln2_b", "w1", "b1", "w2", "b2",
                    "lnf_g", "lnf_b", "w_head", "b_head"]
    weights = [params[n] for n in weight_names]

    kernel = functools.partial(fused_forward_kernel, num_heads=NUM_HEADS,
                               n_blocks=N_BLOCKS, batch_per_slab=Bb,
                               seq_len=seq_len)

    return pl.pallas_call(
        kernel,
        out_shape=jax.ShapeDtypeStruct((Rtot, HEAD_PAD), jnp.float32),
        grid_spec=pltpu.PrefetchScalarGridSpec(
            num_scalar_prefetch=0,
            grid=(num_slabs,),
            in_specs=([pl.BlockSpec((R, D), lambda s: (s, 0))] +
                      [_rep_spec(w.shape) for w in weights]),
            out_specs=pl.BlockSpec((R, HEAD_PAD), lambda s: (s, 0)),
            scratch_shapes=[pltpu.VMEM((R, D), jnp.float32)],
        ),
        compiler_params=pltpu.CompilerParams(
            dimension_semantics=("parallel",)),
    )(x2d, *weights)


# ---------------------------- parameter init ---------------------------------
def init_params(key):
    D, H4, NB = N_EMBD, 4 * N_EMBD, N_BLOCKS
    ks = jax.random.split(key, 9)

    def rnd(k, shape):
        return 0.02 * jax.random.normal(k, shape, jnp.float32)

    w_head = rnd(ks[2], (D, VOCAB_SIZE))
    w_head = jnp.pad(w_head, ((0, 0), (0, HEAD_PAD - VOCAB_SIZE)))

    return {
        "tok_emb": rnd(ks[0], (VOCAB_SIZE, D)),
        "pos_emb": rnd(ks[1], (BLOCK_SIZE, D)),
        "lnf_g": jnp.ones((1, D), jnp.float32),
        "lnf_b": jnp.zeros((1, D), jnp.float32),
        "w_head": w_head.astype(jnp.bfloat16),            # lane-padded, bf16
        "b_head": jnp.zeros((1, HEAD_PAD), jnp.float32),
        # per-block weights stacked along a leading N_BLOCKS axis
        "ln1_g": jnp.ones((NB, 1, D), jnp.float32),
        "ln1_b": jnp.zeros((NB, 1, D), jnp.float32),
        "wq": rnd(ks[3], (NB, D, D)).astype(jnp.bfloat16),
        "wk": rnd(ks[4], (NB, D, D)).astype(jnp.bfloat16),
        "wv": rnd(ks[5], (NB, D, D)).astype(jnp.bfloat16),
        "wo": rnd(ks[6], (NB, D, D)).astype(jnp.bfloat16),
        "bo": jnp.zeros((NB, 1, D), jnp.float32),
        "ln2_g": jnp.ones((NB, 1, D), jnp.float32),
        "ln2_b": jnp.zeros((NB, 1, D), jnp.float32),
        "w1": rnd(ks[7], (NB, D, H4)).astype(jnp.bfloat16),
        "b1": jnp.zeros((NB, 1, H4), jnp.float32),
        "w2": rnd(ks[8], (NB, H4, D)).astype(jnp.bfloat16),
        "b2": jnp.zeros((NB, 1, D), jnp.float32),
    }


# ------------------------------- forward --------------------------------------
def huge_model_forward(params, idx, target=None):
    """idx: (B, T) int32 token ids.  Returns (logits (B,T,V), loss or None)."""
    B, T = idx.shape
    D = N_EMBD
    tok = jnp.take(params["tok_emb"], idx, axis=0)          # (B, T, D)
    pos = params["pos_emb"][:T]                             # (T, D)
    x2d = (tok + pos[None, :, :]).reshape(B * T, D)

    # split the flattened slab into two "parallel" grid steps when possible so
    # both TensorCores are used on v7x; single step otherwise.
    num_slabs = 2 if (B % 2 == 0 and B >= 2) else 1

    logits_pad = run_huge_model(x2d, params, batch=B, seq_len=T,
                                num_slabs=num_slabs)        # (B*T, HEAD_PAD)
    logits2d = logits_pad[:, :VOCAB_SIZE]
    logits = logits2d.reshape(B, T, VOCAB_SIZE)

    loss = None
    if target is not None:
        lse = jax.nn.logsumexp(logits2d, axis=-1)
        tgt = target.reshape(B * T)
        picked = jnp.take_along_axis(logits2d, tgt[:, None], axis=-1)[:, 0]
        loss = jnp.mean(lse - picked)
    return logits, loss


# --------------------------------- main ---------------------------------------
if __name__ == "__main__":
    key = jax.random.PRNGKey(0)
    pkey, ikey, tkey = jax.random.split(key, 3)

    params = init_params(pkey)

    B, T = 4, 16
    idx = jax.random.randint(ikey, (B, T), 0, VOCAB_SIZE, dtype=jnp.int32)
    target = jax.random.randint(tkey, (B, T), 0, VOCAB_SIZE, dtype=jnp.int32)

    logits, loss = huge_model_forward(params, idx, target)
    jax.block_until_ready(logits)
    jax.block_until_ready(loss)

    assert logits.shape == (B, T, VOCAB_SIZE)
    assert logits.dtype == jnp.float32
    assert bool(jnp.all(jnp.isfinite(logits)))
    assert bool(jnp.isfinite(loss))
    print("KERNEL_OK")
</pallas_src>

<mosaic_0001>
module attributes {stable_mosaic.version = 11 : i64} {
  func.func @fused_forward_kernel(%arg0: i32, %arg1: memref<32x128xf32, #tpu.memory_space<vmem>>, %arg2: memref<2x1x128xf32, #tpu.memory_space<vmem>>, %arg3: memref<2x1x128xf32, #tpu.memory_space<vmem>>, %arg4: memref<2x128x128xbf16, #tpu.memory_space<vmem>>, %arg5: memref<2x128x128xbf16, #tpu.memory_space<vmem>>, %arg6: memref<2x128x128xbf16, #tpu.memory_space<vmem>>, %arg7: memref<2x128x128xbf16, #tpu.memory_space<vmem>>, %arg8: memref<2x1x128xf32, #tpu.memory_space<vmem>>, %arg9: memref<2x1x128xf32, #tpu.memory_space<vmem>>, %arg10: memref<2x1x128xf32, #tpu.memory_space<vmem>>, %arg11: memref<2x128x512xbf16, #tpu.memory_space<vmem>>, %arg12: memref<2x1x512xf32, #tpu.memory_space<vmem>>, %arg13: memref<2x512x128xbf16, #tpu.memory_space<vmem>>, %arg14: memref<2x1x128xf32, #tpu.memory_space<vmem>>, %arg15: memref<1x128xf32, #tpu.memory_space<vmem>>, %arg16: memref<1x128xf32, #tpu.memory_space<vmem>>, %arg17: memref<128x128xbf16, #tpu.memory_space<vmem>>, %arg18: memref<1x128xf32, #tpu.memory_space<vmem>>, %arg19: memref<32x128xf32, #tpu.memory_space<vmem>>, %arg20: memref<32x128xf32, #tpu.memory_space<vmem>>) attributes {dimension_semantics = [#tpu.dimension_semantics<parallel>], iteration_bounds = array<i64: 2>, scalar_prefetch = 0 : i64, scratch_operands = 1 : i64, tpu.core_type = #tpu.core_type<tc>, window_params = [{transform_indices = @transform_0, window_bounds = array<i64: 32, 128>}, {pipeline_mode = #tpu.pipeline_mode<synchronous>, transform_indices = @transform_1, window_bounds = array<i64: 2, 1, 128>}, {pipeline_mode = #tpu.pipeline_mode<synchronous>, transform_indices = @transform_2, window_bounds = array<i64: 2, 1, 128>}, {pipeline_mode = #tpu.pipeline_mode<synchronous>, transform_indices = @transform_3, window_bounds = array<i64: 2, 128, 128>}, {pipeline_mode = #tpu.pipeline_mode<synchronous>, transform_indices = @transform_4, window_bounds = array<i64: 2, 128, 128>}, {pipeline_mode = #tpu.pipeline_mode<synchronous>, transform_indices = @transform_5, window_bounds = array<i64: 2, 128, 128>}, {pipeline_mode = #tpu.pipeline_mode<synchronous>, transform_indices = @transform_6, window_bounds = array<i64: 2, 128, 128>}, {pipeline_mode = #tpu.pipeline_mode<synchronous>, transform_indices = @transform_7, window_bounds = array<i64: 2, 1, 128>}, {pipeline_mode = #tpu.pipeline_mode<synchronous>, transform_indices = @transform_8, window_bounds = array<i64: 2, 1, 128>}, {pipeline_mode = #tpu.pipeline_mode<synchronous>, transform_indices = @transform_9, window_bounds = array<i64: 2, 1, 128>}, {pipeline_mode = #tpu.pipeline_mode<synchronous>, transform_indices = @transform_10, window_bounds = array<i64: 2, 128, 512>}, {pipeline_mode = #tpu.pipeline_mode<synchronous>, transform_indices = @transform_11, window_bounds = array<i64: 2, 1, 512>}, {pipeline_mode = #tpu.pipeline_mode<synchronous>, transform_indices = @transform_12, window_bounds = array<i64: 2, 512, 128>}, {pipeline_mode = #tpu.pipeline_mode<synchronous>, transform_indices = @transform_13, window_bounds = array<i64: 2, 1, 128>}, {pipeline_mode = #tpu.pipeline_mode<synchronous>, transform_indices = @transform_14, window_bounds = array<i64: 1, 128>}, {pipeline_mode = #tpu.pipeline_mode<synchronous>, transform_indices = @transform_15, window_bounds = array<i64: 1, 128>}, {pipeline_mode = #tpu.pipeline_mode<synchronous>, transform_indices = @transform_16, window_bounds = array<i64: 128, 128>}, {pipeline_mode = #tpu.pipeline_mode<synchronous>, transform_indices = @transform_17, window_bounds = array<i64: 1, 128>}, {transform_indices = @transform_18, window_bounds = array<i64: 32, 128>}]} {
    %c0 = arith.constant 0 : index
    %c0_0 = arith.constant 0 : index
    %0 = vector.load %arg1[%c0, %c0_0] : memref<32x128xf32, #tpu.memory_space<vmem>>, vector<32x128xf32>
    %1 = tpu.iota {dimensions = array<i32: 0>} : vector<16x16xi32>
    %2 = tpu.iota {dimensions = array<i32: 1>} : vector<16x16xi32>
    %3 = arith.cmpi sge, %1, %2 : vector<16x16xi32>
    %c0_1 = arith.constant 0 : index
    %c0_2 = arith.constant 0 : index
    %c0_3 = arith.constant 0 : index
    %4 = vector.load %arg2[%c0_1, %c0_2, %c0_3] : memref<2x1x128xf32, #tpu.memory_space<vmem>>, vector<1x1x128xf32>
    %5 = vector.shape_cast %4 : vector<1x1x128xf32> to vector<1x128xf32>
    %c0_4 = arith.constant 0 : index
    %c0_5 = arith.constant 0 : index
    %c0_6 = arith.constant 0 : index
    %6 = vector.load %arg3[%c0_4, %c0_5, %c0_6] : memref<2x1x128xf32, #tpu.memory_space<vmem>>, vector<1x1x128xf32>
    %7 = vector.shape_cast %6 : vector<1x1x128xf32> to vector<1x128xf32>
    %cst = arith.constant dense<0.000000e+00> : vector<32xf32>
    %8 = vector.multi_reduction <add>, %0, %cst [1] : vector<32x128xf32> to vector<32xf32>
    %9 = vector.shape_cast %8 : vector<32xf32> to vector<32x1xf32>
    %cst_7 = arith.constant 1.280000e+02 : f32
    %10 = vector.broadcast %cst_7 : f32 to vector<32x1xf32>
    %11 = arith.divf %9, %10 : vector<32x1xf32>
    %12 = vector.broadcast %11 : vector<32x1xf32> to vector<32x128xf32>
    %13 = arith.subf %0, %12 : vector<32x128xf32>
    %14 = arith.mulf %13, %13 : vector<32x128xf32>
    %cst_8 = arith.constant dense<0.000000e+00> : vector<32xf32>
    %15 = vector.multi_reduction <add>, %14, %cst_8 [1] : vector<32x128xf32> to vector<32xf32>
    %16 = vector.shape_cast %15 : vector<32xf32> to vector<32x1xf32>
    %cst_9 = arith.constant 1.280000e+02 : f32
    %17 = vector.broadcast %cst_9 : f32 to vector<32x1xf32>
    %18 = arith.divf %16, %17 : vector<32x1xf32>
    %cst_10 = arith.constant 9.99999974E-6 : f32
    %19 = vector.broadcast %cst_10 : f32 to vector<32x1xf32>
    %20 = arith.addf %18, %19 : vector<32x1xf32>
    %21 = math.rsqrt %20 : vector<32x1xf32>
    %22 = vector.broadcast %11 : vector<32x1xf32> to vector<32x128xf32>
    %23 = arith.subf %0, %22 : vector<32x128xf32>
    %24 = vector.broadcast %21 : vector<32x1xf32> to vector<32x128xf32>
    %25 = arith.mulf %23, %24 : vector<32x128xf32>
    %26 = vector.broadcast %5 : vector<1x128xf32> to vector<32x128xf32>
    %27 = arith.mulf %25, %26 : vector<32x128xf32>
    %28 = vector.broadcast %7 : vector<1x128xf32> to vector<32x128xf32>
    %29 = arith.addf %27, %28 : vector<32x128xf32>
    %30 = arith.truncf %29 : vector<32x128xf32> to vector<32x128xbf16>
    %c0_11 = arith.constant 0 : index
    %c0_12 = arith.constant 0 : index
    %c0_13 = arith.constant 0 : index
    %31 = vector.load %arg4[%c0_11, %c0_12, %c0_13] : memref<2x128x128xbf16, #tpu.memory_space<vmem>>, vector<1x128x128xbf16>
    %32 = vector.shape_cast %31 : vector<1x128x128xbf16> to vector<128x128xbf16>
    %cst_14 = arith.constant dense<0.000000e+00> : vector<32x128xf32>
    %33 = tpu.matmul %30, %32, %cst_14 {dimension_numbers = #tpu.dot_dimension_numbers<[1], [0], [0], [1], [0, 0, 1, 1], [], []>} : vector<32x128xbf16>, vector<128x128xbf16>, vector<32x128xf32> -> vector<32x128xf32>
    %c0_15 = arith.constant 0 : index
    %c0_16 = arith.constant 0 : index
    %c0_17 = arith.constant 0 : index
    %34 = vector.load %arg5[%c0_15, %c0_16, %c0_17] : memref<2x128x128xbf16, #tpu.memory_space<vmem>>, vector<1x128x128xbf16>
    %35 = vector.shape_cast %34 : vector<1x128x128xbf16> to vector<128x128xbf16>
    %cst_18 = arith.constant dense<0.000000e+00> : vector<32x128xf32>
    %36 = tpu.matmul %30, %35, %cst_18 {dimension_numbers = #tpu.dot_dimension_numbers<[1], [0], [0], [1], [0, 0, 1, 1], [], []>} : vector<32x128xbf16>, vector<128x128xbf16>, vector<32x128xf32> -> vector<32x128xf32>
    %c0_19 = arith.constant 0 : index
    %c0_20 = arith.constant 0 : index
    %c0_21 = arith.constant 0 : index
    %37 = vector.load %arg6[%c0_19, %c0_20, %c0_21] : memref<2x128x128xbf16, #tpu.memory_space<vmem>>, vector<1x128x128xbf16>
    %38 = vector.shape_cast %37 : vector<1x128x128xbf16> to vector<128x128xbf16>
    %cst_22 = arith.constant dense<0.000000e+00> : vector<32x128xf32>
    %39 = tpu.matmul %30, %38, %cst_22 {dimension_numbers = #tpu.dot_dimension_numbers<[1], [0], [0], [1], [0, 0, 1, 1], [], []>} : vector<32x128xbf16>, vector<128x128xbf16>, vector<32x128xf32> -> vector<32x128xf32>
    %c0_23 = arith.constant 0 : index
    %c0_24 = arith.constant 0 : index
    %c0_25 = arith.constant 0 : index
    %40 = vector.load %arg7[%c0_23, %c0_24, %c0_25] : memref<2x128x128xbf16, #tpu.memory_space<vmem>>, vector<1x128x128xbf16>
    %41 = vector.shape_cast %40 : vector<1x128x128xbf16> to vector<128x128xbf16>
    %cst_26 = arith.constant 0.000000e+00 : f32
    %42 = vector.broadcast %cst_26 : f32 to vector<16x128xf32>
    %43 = vector.extract_strided_slice %33 {offsets = [0, 0], sizes = [16, 64], strides = [1, 1]} : vector<32x128xf32> to vector<16x64xf32>
    %44 = arith.truncf %43 : vector<16x64xf32> to vector<16x64xbf16>
    %45 = vector.extract_strided_slice %36 {offsets = [0, 0], sizes = [16, 64], strides = [1, 1]} : vector<32x128xf32> to vector<16x64xf32>
    %46 = arith.truncf %45 : vector<16x64xf32> to vector<16x64xbf16>
    %47 = vector.extract_strided_slice %39 {offsets = [0, 0], sizes = [16, 64], strides = [1, 1]} : vector<32x128xf32> to vector<16x64xf32>
    %48 = arith.truncf %47 : vector<16x64xf32> to vector<16x64xbf16>
    %49 = tpu.transpose %46, [1, 0] : vector<16x64xbf16> -> vector<64x16xbf16>
    %cst_27 = arith.constant dense<0.000000e+00> : vector<16x16xf32>
    %50 = tpu.matmul %44, %49, %cst_27 {dimension_numbers = #tpu.dot_dimension_numbers<[1], [0], [0], [1], [0, 0, 1, 1], [], []>} : vector<16x64xbf16>, vector<64x16xbf16>, vector<16x16xf32> -> vector<16x16xf32>
    %cst_28 = arith.constant 1.250000e-01 : f32
    %51 = vector.broadcast %cst_28 : f32 to vector<16x16xf32>
    %52 = arith.mulf %50, %51 : vector<16x16xf32>
    %cst_29 = arith.constant -1.000000e+30 : f32
    %53 = vector.broadcast %cst_29 : f32 to vector<16x16xf32>
    %54 = arith.select %3, %52, %53 : vector<16x16xi1>, vector<16x16xf32>
    %cst_30 = arith.constant dense<0xFF800000> : vector<16xf32>
    %55 = vector.multi_reduction <maximumf>, %54, %cst_30 [1] : vector<16x16xf32> to vector<16xf32>
    %56 = vector.shape_cast %55 : vector<16xf32> to vector<16x1xf32>
    %57 = vector.broadcast %56 : vector<16x1xf32> to vector<16x16xf32>
    %58 = arith.subf %54, %57 : vector<16x16xf32>
    %59 = math.exp %58 : vector<16x16xf32>
    %cst_31 = arith.constant dense<0.000000e+00> : vector<16xf32>
    %60 = vector.multi_reduction <add>, %59, %cst_31 [1] : vector<16x16xf32> to vector<16xf32>
    %61 = vector.shape_cast %60 : vector<16xf32> to vector<16x1xf32>
    %62 = tpu.reciprocal %61 {approx = true} : vector<16x1xf32> -> vector<16x1xf32>
    %63 = vector.broadcast %62 : vector<16x1xf32> to vector<16x16xf32>
    %64 = arith.mulf %59, %63 : vector<16x16xf32>
    %65 = arith.truncf %64 : vector<16x16xf32> to vector<16x16xbf16>
    %cst_32 = arith.constant dense<0.000000e+00> : vector<16x64xf32>
    %66 = tpu.matmul %65, %48, %cst_32 {dimension_numbers = #tpu.dot_dimension_numbers<[1], [0], [0], [1], [0, 0, 1, 1], [], []>} : vector<16x16xbf16>, vector<16x64xbf16>, vector<16x64xf32> -> vector<16x64xf32>
    %67 = arith.truncf %66 : vector<16x64xf32> to vector<16x64xbf16>
    %68 = vector.extract_strided_slice %41 {offsets = [0, 0], sizes = [64, 128], strides = [1, 1]} : vector<128x128xbf16> to vector<64x128xbf16>
    %cst_33 = arith.constant dense<0.000000e+00> : vector<16x128xf32>
    %69 = tpu.matmul %67, %68, %cst_33 {dimension_numbers = #tpu.dot_dimension_numbers<[1], [0], [0], [1], [0, 0, 1, 1], [], []>} : vector<16x64xbf16>, vector<64x128xbf16>, vector<16x128xf32> -> vector<16x128xf32>
    %70 = arith.addf %42, %69 : vector<16x128xf32>
    %71 = vector.extract_strided_slice %33 {offsets = [0, 64], sizes = [16, 64], strides = [1, 1]} : vector<32x128xf32> to vector<16x64xf32>
    %72 = arith.truncf %71 : vector<16x64xf32> to vector<16x64xbf16>
    %73 = vector.extract_strided_slice %36 {offsets = [0, 64], sizes = [16, 64], strides = [1, 1]} : vector<32x128xf32> to vector<16x64xf32>
    %74 = arith.truncf %73 : vector<16x64xf32> to vector<16x64xbf16>
    %75 = vector.extract_strided_slice %39 {offsets = [0, 64], sizes = [16, 64], strides = [1, 1]} : vector<32x128xf32> to vector<16x64xf32>
    %76 = arith.truncf %75 : vector<16x64xf32> to vector<16x64xbf16>
    %77 = tpu.transpose %74, [1, 0] : vector<16x64xbf16> -> vector<64x16xbf16>
    %cst_34 = arith.constant dense<0.000000e+00> : vector<16x16xf32>
    %78 = tpu.matmul %72, %77, %cst_34 {dimension_numbers = #tpu.dot_dimension_numbers<[1], [0], [0], [1], [0, 0, 1, 1], [], []>} : vector<16x64xbf16>, vector<64x16xbf16>, vector<16x16xf32> -> vector<16x16xf32>
    %cst_35 = arith.constant 1.250000e-01 : f32
    %79 = vector.broadcast %cst_35 : f32 to vector<16x16xf32>
    %80 = arith.mulf %78, %79 : vector<16x16xf32>
    %cst_36 = arith.constant -1.000000e+30 : f32
    %81 = vector.broadcast %cst_36 : f32 to vector<16x16xf32>
    %82 = arith.select %3, %80, %81 : vector<16x16xi1>, vector<16x16xf32>
    %cst_37 = arith.constant dense<0xFF800000> : vector<16xf32>
    %83 = vector.multi_reduction <maximumf>, %82, %cst_37 [1] : vector<16x16xf32> to vector<16xf32>
    %84 = vector.shape_cast %83 : vector<16xf32> to vector<16x1xf32>
    %85 = vector.broadcast %84 : vector<16x1xf32> to vector<16x16xf32>
    %86 = arith.subf %82, %85 : vector<16x16xf32>
    %87 = math.exp %86 : vector<16x16xf32>
    %cst_38 = arith.constant dense<0.000000e+00> : vector<16xf32>
    %88 = vector.multi_reduction <add>, %87, %cst_38 [1] : vector<16x16xf32> to vector<16xf32>
    %89 = vector.shape_cast %88 : vector<16xf32> to vector<16x1xf32>
    %90 = tpu.reciprocal %89 {approx = true} : vector<16x1xf32> -> vector<16x1xf32>
    %91 = vector.broadcast %90 : vector<16x1xf32> to vector<16x16xf32>
    %92 = arith.mulf %87, %91 : vector<16x16xf32>
    %93 = arith.truncf %92 : vector<16x16xf32> to vector<16x16xbf16>
    %cst_39 = arith.constant dense<0.000000e+00> : vector<16x64xf32>
    %94 = tpu.matmul %93, %76, %cst_39 {dimension_numbers = #tpu.dot_dimension_numbers<[1], [0], [0], [1], [0, 0, 1, 1], [], []>} : vector<16x16xbf16>, vector<16x64xbf16>, vector<16x64xf32> -> vector<16x64xf32>
    %95 = arith.truncf %94 : vector<16x64xf32> to vector<16x64xbf16>
    %96 = vector.extract_strided_slice %41 {offsets = [64, 0], sizes = [64, 128], strides = [1, 1]} : vector<128x128xbf16> to vector<64x128xbf16>
    %cst_40 = arith.constant dense<0.000000e+00> : vector<16x128xf32>
    %97 = tpu.matmul %95, %96, %cst_40 {dimension_numbers = #tpu.dot_dimension_numbers<[1], [0], [0], [1], [0, 0, 1, 1], [], []>} : vector<16x64xbf16>, vector<64x128xbf16>, vector<16x128xf32> -> vector<16x128xf32>
    %98 = arith.addf %70, %97 : vector<16x128xf32>
    %c0_41 = arith.constant 0 : index
    %c0_42 = arith.constant 0 : index
    %99 = vector.load %arg20[%c0_41, %c0_42] : memref<32x128xf32, #tpu.memory_space<vmem>>, vector<16x128xf32>
    tpu.vector_store %arg20[%c0_41, %c0_42], %98 {strides = array<i32>} : memref<32x128xf32, #tpu.memory_space<vmem>>, vector<16x128xf32>,
    %cst_43 = arith.constant 0.000000e+00 : f32
    %100 = vector.broadcast %cst_43 : f32 to vector<16x128xf32>
    %101 = vector.extract_strided_slice %33 {offsets = [16, 0], sizes = [16, 64], strides = [1, 1]} : vector<32x128xf32> to vector<16x64xf32>
    %102 = arith.truncf %101 : vector<16x64xf32> to vector<16x64xbf16>
    %103 = vector.extract_strided_slice %36 {offsets = [16, 0], sizes = [16, 64], strides = [1, 1]} : vector<32x128xf32> to vector<16x64xf32>
    %104 = arith.truncf %103 : vector<16x64xf32> to vector<16x64xbf16>
    %105 = vector.extract_strided_slice %39 {offsets = [16, 0], sizes = [16, 64], strides = [1, 1]} : vector<32x128xf32> to vector<16x64xf32>
    %106 = arith.truncf %105 : vector<16x64xf32> to vector<16x64xbf16>
    %107 = tpu.transpose %104, [1, 0] : vector<16x64xbf16> -> vector<64x16xbf16>
    %cst_44 = arith.constant dense<0.000000e+00> : vector<16x16xf32>
    %108 = tpu.matmul %102, %107, %cst_44 {dimension_numbers = #tpu.dot_dimension_numbers<[1], [0], [0], [1], [0, 0, 1, 1], [], []>} : vector<16x64xbf16>, vector<64x16xbf16>, vector<16x16xf32> -> vector<16x16xf32>
    %cst_45 = arith.constant 1.250000e-01 : f32
    %109 = vector.broadcast %cst_45 : f32 to vector<16x16xf32>
    %110 = arith.mulf %108, %109 : vector<16x16xf32>
    %cst_46 = arith.constant -1.000000e+30 : f32
    %111 = vector.broadcast %cst_46 : f32 to vector<16x16xf32>
    %112 = arith.select %3, %110, %111 : vector<16x16xi1>, vector<16x16xf32>
    %cst_47 = arith.constant dense<0xFF800000> : vector<16xf32>
    %113 = vector.multi_reduction <maximumf>, %112, %cst_47 [1] : vector<16x16xf32> to vector<16xf32>
    %114 = vector.shape_cast %113 : vector<16xf32> to vector<16x1xf32>
    %115 = vector.broadcast %114 : vector<16x1xf32> to vector<16x16xf32>
    %116 = arith.subf %112, %115 : vector<16x16xf32>
    %117 = math.exp %116 : vector<16x16xf32>
    %cst_48 = arith.constant dense<0.000000e+00> : vector<16xf32>
    %118 = vector.multi_reduction <add>, %117, %cst_48 [1] : vector<16x16xf32> to vector<16xf32>
    %119 = vector.shape_cast %118 : vector<16xf32> to vector<16x1xf32>
    %120 = tpu.reciprocal %119 {approx = true} : vector<16x1xf32> -> vector<16x1xf32>
    %121 = vector.broadcast %120 : vector<16x1xf32> to vector<16x16xf32>
    %122 = arith.mulf %117, %121 : vector<16x16xf32>
    %123 = arith.truncf %122 : vector<16x16xf32> to vector<16x16xbf16>
    %cst_49 = arith.constant dense<0.000000e+00> : vector<16x64xf32>
    %124 = tpu.matmul %123, %106, %cst_49 {dimension_numbers = #tpu.dot_dimension_numbers<[1], [0], [0], [1], [0, 0, 1, 1], [], []>} : vector<16x16xbf16>, vector<16x64xbf16>, vector<16x64xf32> -> vector<16x64xf32>
    %125 = arith.truncf %124 : vector<16x64xf32> to vector<16x64xbf16>
    %126 = vector.extract_strided_slice %41 {offsets = [0, 0], sizes = [64, 128], strides = [1, 1]} : vector<128x128xbf16> to vector<64x128xbf16>
    %cst_50 = arith.constant dense<0.000000e+00> : vector<16x128xf32>
    %127 = tpu.matmul %125, %126, %cst_50 {dimension_numbers = #tpu.dot_dimension_numbers<[1], [0], [0], [1], [0, 0, 1, 1], [], []>} : vector<16x64xbf16>, vector<64x128xbf16>, vector<16x128xf32> -> vector<16x128xf32>
    %128 = arith.addf %100, %127 : vector<16x128xf32>
    %129 = vector.extract_strided_slice %33 {offsets = [16, 64], sizes = [16, 64], strides = [1, 1]} : vector<32x128xf32> to vector<16x64xf32>
    %130 = arith.truncf %129 : vector<16x64xf32> to vector<16x64xbf16>
    %131 = vector.extract_strided_slice %36 {offsets = [16, 64], sizes = [16, 64], strides = [1, 1]} : vector<32x128xf32> to vector<16x64xf32>
    %132 = arith.truncf %131 : vector<16x64xf32> to vector<16x64xbf16>
    %133 = vector.extract_strided_slice %39 {offsets = [16, 64], sizes = [16, 64], strides = [1, 1]} : vector<32x128xf32> to vector<16x64xf32>
    %134 = arith.truncf %133 : vector<16x64xf32> to vector<16x64xbf16>
    %135 = tpu.transpose %132, [1, 0] : vector<16x64xbf16> -> vector<64x16xbf16>
    %cst_51 = arith.constant dense<0.000000e+00> : vector<16x16xf32>
    %136 = tpu.matmul %130, %135, %cst_51 {dimension_numbers = #tpu.dot_dimension_numbers<[1], [0], [0], [1], [0, 0, 1, 1], [], []>} : vector<16x64xbf16>, vector<64x16xbf16>, vector<16x16xf32> -> vector<16x16xf32>
    %cst_52 = arith.constant 1.250000e-01 : f32
    %137 = vector.broadcast %cst_52 : f32 to vector<16x16xf32>
    %138 = arith.mulf %136, %137 : vector<16x16xf32>
    %cst_53 = arith.constant -1.000000e+30 : f32
    %139 = vector.broadcast %cst_53 : f32 to vector<16x16xf32>
    %140 = arith.select %3, %138, %139 : vector<16x16xi1>, vector<16x16xf32>
    %cst_54 = arith.constant dense<0xFF800000> : vector<16xf32>
    %141 = vector.multi_reduction <maximumf>, %140, %cst_54 [1] : vector<16x16xf32> to vector<16xf32>
    %142 = vector.shape_cast %141 : vector<16xf32> to vector<16x1xf32>
    %143 = vector.broadcast %142 : vector<16x1xf32> to vector<16x16xf32>
    %144 = arith.subf %140, %143 : vector<16x16xf32>
    %145 = math.exp %144 : vector<16x16xf32>
    %cst_55 = arith.constant dense<0.000000e+00> : vector<16xf32>
    %146 = vector.multi_reduction <add>, %145, %cst_55 [1] : vector<16x16xf32> to vector<16xf32>
    %147 = vector.shape_cast %146 : vector<16xf32> to vector<16x1xf32>
    %148 = tpu.reciprocal %147 {approx = true} : vector<16x1xf32> -> vector<16x1xf32>
    %149 = vector.broadcast %148 : vector<16x1xf32> to vector<16x16xf32>
    %150 = arith.mulf %145, %149 : vector<16x16xf32>
    %151 = arith.truncf %150 : vector<16x16xf32> to vector<16x16xbf16>
    %cst_56 = arith.constant dense<0.000000e+00> : vector<16x64xf32>
    %152 = tpu.matmul %151, %134, %cst_56 {dimension_numbers = #tpu.dot_dimension_numbers<[1], [0], [0], [1], [0, 0, 1, 1], [], []>} : vector<16x16xbf16>, vector<16x64xbf16>, vector<16x64xf32> -> vector<16x64xf32>
    %153 = arith.truncf %152 : vector<16x64xf32> to vector<16x64xbf16>
    %154 = vector.extract_strided_slice %41 {offsets = [64, 0], sizes = [64, 128], strides = [1, 1]} : vector<128x128xbf16> to vector<64x128xbf16>
    %cst_57 = arith.constant dense<0.000000e+00> : vector<16x128xf32>
    %155 = tpu.matmul %153, %154, %cst_57 {dimension_numbers = #tpu.dot_dimension_numbers<[1], [0], [0], [1], [0, 0, 1, 1], [], []>} : vector<16x64xbf16>, vector<64x128xbf16>, vector<16x128xf32> -> vector<16x128xf32>
    %156 = arith.addf %128, %155 : vector<16x128xf32>
    %c16 = arith.constant 16 : index
    %c0_58 = arith.constant 0 : index
    %157 = vector.load %arg20[%c16, %c0_58] : memref<32x128xf32, #tpu.memory_space<vmem>>, vector<16x128xf32>
    tpu.vector_store %arg20[%c16, %c0_58], %156 {strides = array<i32>} : memref<32x128xf32, #tpu.memory_space<vmem>>, vector<16x128xf32>,
    %c0_59 = arith.constant 0 : index
    %c0_60 = arith.constant 0 : index
    %158 = vector.load %arg20[%c0_59, %c0_60] : memref<32x128xf32, #tpu.memory_space<vmem>>, vector<32x128xf32>
    %159 = arith.addf %0, %158 : vector<32x128xf32>
    %c0_61 = arith.constant 0 : index
    %c0_62 = arith.constant 0 : index
    %c0_63 = arith.constant 0 : index
    %160 = vector.load %arg8[%c0_61, %c0_62, %c0_63] : memref<2x1x128xf32, #tpu.memory_space<vmem>>, vector<1x1x128xf32>
    %161 = vector.shape_cast %160 : vector<1x1x128xf32> to vector<1x128xf32>
    %162 = vector.broadcast %161 : vector<1x128xf32> to vector<32x128xf32>
    %163 = arith.addf %159, %162 : vector<32x128xf32>
    %c0_64 = arith.constant 0 : index
    %c0_65 = arith.constant 0 : index
    %c0_66 = arith.constant 0 : index
    %164 = vector.load %arg9[%c0_64, %c0_65, %c0_66] : memref<2x1x128xf32, #tpu.memory_space<vmem>>, vector<1x1x128xf32>
    %165 = vector.shape_cast %164 : vector<1x1x128xf32> to vector<1x128xf32>
    %c0_67 = arith.constant 0 : index
    %c0_68 = arith.constant 0 : index
    %c0_69 = arith.constant 0 : index
    %166 = vector.load %arg10[%c0_67, %c0_68, %c0_69] : memref<2x1x128xf32, #tpu.memory_space<vmem>>, vector<1x1x128xf32>
    %167 = vector.shape_cast %166 : vector<1x1x128xf32> to vector<1x128xf32>
    %cst_70 = arith.constant dense<0.000000e+00> : vector<32xf32>
    %168 = vector.multi_reduction <add>, %163, %cst_70 [1] : vector<32x128xf32> to vector<32xf32>
    %169 = vector.shape_cast %168 : vector<32xf32> to vector<32x1xf32>
    %cst_71 = arith.constant 1.280000e+02 : f32
    %170 = vector.broadcast %cst_71 : f32 to vector<32x1xf32>
    %171 = arith.divf %169, %170 : vector<32x1xf32>
    %172 = vector.broadcast %171 : vector<32x1xf32> to vector<32x128xf32>
    %173 = arith.subf %163, %172 : vector<32x128xf32>
    %174 = arith.mulf %173, %173 : vector<32x128xf32>
    %cst_72 = arith.constant dense<0.000000e+00> : vector<32xf32>
    %175 = vector.multi_reduction <add>, %174, %cst_72 [1] : vector<32x128xf32> to vector<32xf32>
    %176 = vector.shape_cast %175 : vector<32xf32> to vector<32x1xf32>
    %cst_73 = arith.constant 1.280000e+02 : f32
    %177 = vector.broadcast %cst_73 : f32 to vector<32x1xf32>
    %178 = arith.divf %176, %177 : vector<32x1xf32>
    %cst_74 = arith.constant 9.99999974E-6 : f32
    %179 = vector.broadcast %cst_74 : f32 to vector<32x1xf32>
    %180 = arith.addf %178, %179 : vector<32x1xf32>
    %181 = math.rsqrt %180 : vector<32x1xf32>
    %182 = vector.broadcast %171 : vector<32x1xf32> to vector<32x128xf32>
    %183 = arith.subf %163, %182 : vector<32x128xf32>
    %184 = vector.broadcast %181 : vector<32x1xf32> to vector<32x128xf32>
    %185 = arith.mulf %183, %184 : vector<32x128xf32>
    %186 = vector.broadcast %165 : vector<1x128xf32> to vector<32x128xf32>
    %187 = arith.mulf %185, %186 : vector<32x128xf32>
    %188 = vector.broadcast %167 : vector<1x128xf32> to vector<32x128xf32>
    %189 = arith.addf %187, %188 : vector<32x128xf32>
    %190 = arith.truncf %189 : vector<32x128xf32> to vector<32x128xbf16>
    %c0_75 = arith.constant 0 : index
    %c0_76 = arith.constant 0 : index
    %c0_77 = arith.constant 0 : index
    %191 = vector.load %arg11[%c0_75, %c0_76, %c0_77] : memref<2x128x512xbf16, #tpu.memory_space<vmem>>, vector<1x128x512xbf16>
    %192 = vector.shape_cast %191 : vector<1x128x512xbf16> to vector<128x512xbf16>
    %cst_78 = arith.constant dense<0.000000e+00> : vector<32x512xf32>
    %193 = tpu.matmul %190, %192, %cst_78 {dimension_numbers = #tpu.dot_dimension_numbers<[1], [0], [0], [1], [0, 0, 1, 1], [], []>} : vector<32x128xbf16>, vector<128x512xbf16>, vector<32x512xf32> -> vector<32x512xf32>
    %c0_79 = arith.constant 0 : index
    %c0_80 = arith.constant 0 : index
    %c0_81 = arith.constant 0 : index
    %194 = vector.load %arg12[%c0_79, %c0_80, %c0_81] : memref<2x1x512xf32, #tpu.memory_space<vmem>>, vector<1x1x512xf32>
    %195 = vector.shape_cast %194 : vector<1x1x512xf32> to vector<1x512xf32>
    %196 = vector.broadcast %195 : vector<1x512xf32> to vector<32x512xf32>
    %197 = arith.addf %193, %196 : vector<32x512xf32>
    %cst_82 = arith.constant 0.000000e+00 : f32
    %198 = vector.broadcast %cst_82 : f32 to vector<32x512xf32>
    %199 = arith.maximumf %197, %198 : vector<32x512xf32>
    %200 = arith.truncf %199 : vector<32x512xf32> to vector<32x512xbf16>
    %c0_83 = arith.constant 0 : index
    %c0_84 = arith.constant 0 : index
    %c0_85 = arith.constant 0 : index
    %201 = vector.load %arg13[%c0_83, %c0_84, %c0_85] : memref<2x512x128xbf16, #tpu.memory_space<vmem>>, vector<1x512x128xbf16>
    %202 = vector.shape_cast %201 : vector<1x512x128xbf16> to vector<512x128xbf16>
    %cst_86 = arith.constant dense<0.000000e+00> : vector<32x128xf32>
    %203 = tpu.matmul %200, %202, %cst_86 {dimension_numbers = #tpu.dot_dimension_numbers<[1], [0], [0], [1], [0, 0, 1, 1], [], []>} : vector<32x512xbf16>, vector<512x128xbf16>, vector<32x128xf32> -> vector<32x128xf32>
    %c0_87 = arith.constant 0 : index
    %c0_88 = arith.constant 0 : index
    %c0_89 = arith.constant 0 : index
    %204 = vector.load %arg14[%c0_87, %c0_88, %c0_89] : memref<2x1x128xf32, #tpu.memory_space<vmem>>, vector<1x1x128xf32>
    %205 = vector.shape_cast %204 : vector<1x1x128xf32> to vector<1x128xf32>
    %206 = vector.broadcast %205 : vector<1x128xf32> to vector<32x128xf32>
    %207 = arith.addf %203, %206 : vector<32x128xf32>
    %208 = arith.addf %163, %207 : vector<32x128xf32>
    %c1 = arith.constant 1 : index
    %c0_90 = arith.constant 0 : index
    %c0_91 = arith.constant 0 : index
    %209 = vector.load %arg2[%c1, %c0_90, %c0_91] : memref<2x1x128xf32, #tpu.memory_space<vmem>>, vector<1x1x128xf32>
    %210 = vector.shape_cast %209 : vector<1x1x128xf32> to vector<1x128xf32>
    %c1_92 = arith.constant 1 : index
    %c0_93 = arith.constant 0 : index
    %c0_94 = arith.constant 0 : index
    %211 = vector.load %arg3[%c1_92, %c0_93, %c0_94] : memref<2x1x128xf32, #tpu.memory_space<vmem>>, vector<1x1x128xf32>
    %212 = vector.shape_cast %211 : vector<1x1x128xf32> to vector<1x128xf32>
    %cst_95 = arith.constant dense<0.000000e+00> : vector<32xf32>
    %213 = vector.multi_reduction <add>, %208, %cst_95 [1] : vector<32x128xf32> to vector<32xf32>
    %214 = vector.shape_cast %213 : vector<32xf32> to vector<32x1xf32>
    %cst_96 = arith.constant 1.280000e+02 : f32
    %215 = vector.broadcast %cst_96 : f32 to vector<32x1xf32>
    %216 = arith.divf %214, %215 : vector<32x1xf32>
    %217 = vector.broadcast %216 : vector<32x1xf32> to vector<32x128xf32>
    %218 = arith.subf %208, %217 : vector<32x128xf32>
    %219 = arith.mulf %218, %218 : vector<32x128xf32>
    %cst_97 = arith.constant dense<0.000000e+00> : vector<32xf32>
    %220 = vector.multi_reduction <add>, %219, %cst_97 [1] : vector<32x128xf32> to vector<32xf32>
    %221 = vector.shape_cast %220 : vector<32xf32> to vector<32x1xf32>
    %cst_98 = arith.constant 1.280000e+02 : f32
    %222 = vector.broadcast %cst_98 : f32 to vector<32x1xf32>
    %223 = arith.divf %221, %222 : vector<32x1xf32>
    %cst_99 = arith.constant 9.99999974E-6 : f32
    %224 = vector.broadcast %cst_99 : f32 to vector<32x1xf32>
    %225 = arith.addf %223, %224 : vector<32x1xf32>
    %226 = math.rsqrt %225 : vector<32x1xf32>
    %227 = vector.broadcast %216 : vector<32x1xf32> to vector<32x128xf32>
    %228 = arith.subf %208, %227 : vector<32x128xf32>
    %229 = vector.broadcast %226 : vector<32x1xf32> to vector<32x128xf32>
    %230 = arith.mulf %228, %229 : vector<32x128xf32>
    %231 = vector.broadcast %210 : vector<1x128xf32> to vector<32x128xf32>
    %232 = arith.mulf %230, %231 : vector<32x128xf32>
    %233 = vector.broadcast %212 : vector<1x128xf32> to vector<32x128xf32>
    %234 = arith.addf %232, %233 : vector<32x128xf32>
    %235 = arith.truncf %234 : vector<32x128xf32> to vector<32x128xbf16>
    %c1_100 = arith.constant 1 : index
    %c0_101 = arith.constant 0 : index
    %c0_102 = arith.constant 0 : index
    %236 = vector.load %arg4[%c1_100, %c0_101, %c0_102] : memref<2x128x128xbf16, #tpu.memory_space<vmem>>, vector<1x128x128xbf16>
    %237 = vector.shape_cast %236 : vector<1x128x128xbf16> to vector<128x128xbf16>
    %cst_103 = arith.constant dense<0.000000e+00> : vector<32x128xf32>
    %238 = tpu.matmul %235, %237, %cst_103 {dimension_numbers = #tpu.dot_dimension_numbers<[1], [0], [0], [1], [0, 0, 1, 1], [], []>} : vector<32x128xbf16>, vector<128x128xbf16>, vector<32x128xf32> -> vector<32x128xf32>
    %c1_104 = arith.constant 1 : index
    %c0_105 = arith.constant 0 : index
    %c0_106 = arith.constant 0 : index
    %239 = vector.load %arg5[%c1_104, %c0_105, %c0_106] : memref<2x128x128xbf16, #tpu.memory_space<vmem>>, vector<1x128x128xbf16>
    %240 = vector.shape_cast %239 : vector<1x128x128xbf16> to vector<128x128xbf16>
    %cst_107 = arith.constant dense<0.000000e+00> : vector<32x128xf32>
    %241 = tpu.matmul %235, %240, %cst_107 {dimension_numbers = #tpu.dot_dimension_numbers<[1], [0], [0], [1], [0, 0, 1, 1], [], []>} : vector<32x128xbf16>, vector<128x128xbf16>, vector<32x128xf32> -> vector<32x128xf32>
    %c1_108 = arith.constant 1 : index
    %c0_109 = arith.constant 0 : index
    %c0_110 = arith.constant 0 : index
    %242 = vector.load %arg6[%c1_108, %c0_109, %c0_110] : memref<2x128x128xbf16, #tpu.memory_space<vmem>>, vector<1x128x128xbf16>
    %243 = vector.shape_cast %242 : vector<1x128x128xbf16> to vector<128x128xbf16>
    %cst_111 = arith.constant dense<0.000000e+00> : vector<32x128xf32>
    %244 = tpu.matmul %235, %243, %cst_111 {dimension_numbers = #tpu.dot_dimension_numbers<[1], [0], [0], [1], [0, 0, 1, 1], [], []>} : vector<32x128xbf16>, vector<128x128xbf16>, vector<32x128xf32> -> vector<32x128xf32>
    %c1_112 = arith.constant 1 : index
    %c0_113 = arith.constant 0 : index
    %c0_114 = arith.constant 0 : index
    %245 = vector.load %arg7[%c1_112, %c0_113, %c0_114] : memref<2x128x128xbf16, #tpu.memory_space<vmem>>, vector<1x128x128xbf16>
    %246 = vector.shape_cast %245 : vector<1x128x128xbf16> to vector<128x128xbf16>
    %cst_115 = arith.constant 0.000000e+00 : f32
    %247 = vector.broadcast %cst_115 : f32 to vector<16x128xf32>
    %248 = vector.extract_strided_slice %238 {offsets = [0, 0], sizes = [16, 64], strides = [1, 1]} : vector<32x128xf32> to vector<16x64xf32>
    %249 = arith.truncf %248 : vector<16x64xf32> to vector<16x64xbf16>
    %250 = vector.extract_strided_slice %241 {offsets = [0, 0], sizes = [16, 64], strides = [1, 1]} : vector<32x128xf32> to vector<16x64xf32>
    %251 = arith.truncf %250 : vector<16x64xf32> to vector<16x64xbf16>
    %252 = vector.extract_strided_slice %244 {offsets = [0, 0], sizes = [16, 64], strides = [1, 1]} : vector<32x128xf32> to vector<16x64xf32>
    %253 = arith.truncf %252 : vector<16x64xf32> to vector<16x64xbf16>
    %254 = tpu.transpose %251, [1, 0] : vector<16x64xbf16> -> vector<64x16xbf16>
    %cst_116 = arith.constant dense<0.000000e+00> : vector<16x16xf32>
    %255 = tpu.matmul %249, %254, %cst_116 {dimension_numbers = #tpu.dot_dimension_numbers<[1], [0], [0], [1], [0, 0, 1, 1], [], []>} : vector<16x64xbf16>, vector<64x16xbf16>, vector<16x16xf32> -> vector<16x16xf32>
    %cst_117 = arith.constant 1.250000e-01 : f32
    %256 = vector.broadcast %cst_117 : f32 to vector<16x16xf32>
    %257 = arith.mulf %255, %256 : vector<16x16xf32>
    %cst_118 = arith.constant -1.000000e+30 : f32
    %258 = vector.broadcast %cst_118 : f32 to vector<16x16xf32>
    %259 = arith.select %3, %257, %258 : vector<16x16xi1>, vector<16x16xf32>
    %cst_119 = arith.constant dense<0xFF800000> : vector<16xf32>
    %260 = vector.multi_reduction <maximumf>, %259, %cst_119 [1] : vector<16x16xf32> to vector<16xf32>
    %261 = vector.shape_cast %260 : vector<16xf32> to vector<16x1xf32>
    %262 = vector.broadcast %261 : vector<16x1xf32> to vector<16x16xf32>
    %263 = arith.subf %259, %262 : vector<16x16xf32>
    %264 = math.exp %263 : vector<16x16xf32>
    %cst_120 = arith.constant dense<0.000000e+00> : vector<16xf32>
    %265 = vector.multi_reduction <add>, %264, %cst_120 [1] : vector<16x16xf32> to vector<16xf32>
    %266 = vector.shape_cast %265 : vector<16xf32> to vector<16x1xf32>
    %267 = tpu.reciprocal %266 {approx = true} : vector<16x1xf32> -> vector<16x1xf32>
    %268 = vector.broadcast %267 : vector<16x1xf32> to vector<16x16xf32>
    %269 = arith.mulf %264, %268 : vector<16x16xf32>
    %270 = arith.truncf %269 : vector<16x16xf32> to vector<16x16xbf16>
    %cst_121 = arith.constant dense<0.000000e+00> : vector<16x64xf32>
    %271 = tpu.matmul %270, %253, %cst_121 {dimension_numbers = #tpu.dot_dimension_numbers<[1], [0], [0], [1], [0, 0, 1, 1], [], []>} : vector<16x16xbf16>, vector<16x64xbf16>, vector<16x64xf32> -> vector<16x64xf32>
    %272 = arith.truncf %271 : vector<16x64xf32> to vector<16x64xbf16>
    %273 = vector.extract_strided_slice %246 {offsets = [0, 0], sizes = [64, 128], strides = [1, 1]} : vector<128x128xbf16> to vector<64x128xbf16>
    %cst_122 = arith.constant dense<0.000000e+00> : vector<16x128xf32>
    %274 = tpu.matmul %272, %273, %cst_122 {dimension_numbers = #tpu.dot_dimension_numbers<[1], [0], [0], [1], [0, 0, 1, 1], [], []>} : vector<16x64xbf16>, vector<64x128xbf16>, vector<16x128xf32> -> vector<16x128xf32>
    %275 = arith.addf %247, %274 : vector<16x128xf32>
    %276 = vector.extract_strided_slice %238 {offsets = [0, 64], sizes = [16, 64], strides = [1, 1]} : vector<32x128xf32> to vector<16x64xf32>
    %277 = arith.truncf %276 : vector<16x64xf32> to vector<16x64xbf16>
    %278 = vector.extract_strided_slice %241 {offsets = [0, 64], sizes = [16, 64], strides = [1, 1]} : vector<32x128xf32> to vector<16x64xf32>
    %279 = arith.truncf %278 : vector<16x64xf32> to vector<16x64xbf16>
    %280 = vector.extract_strided_slice %244 {offsets = [0, 64], sizes = [16, 64], strides = [1, 1]} : vector<32x128xf32> to vector<16x64xf32>
    %281 = arith.truncf %280 : vector<16x64xf32> to vector<16x64xbf16>
    %282 = tpu.transpose %279, [1, 0] : vector<16x64xbf16> -> vector<64x16xbf16>
    %cst_123 = arith.constant dense<0.000000e+00> : vector<16x16xf32>
    %283 = tpu.matmul %277, %282, %cst_123 {dimension_numbers = #tpu.dot_dimension_numbers<[1], [0], [0], [1], [0, 0, 1, 1], [], []>} : vector<16x64xbf16>, vector<64x16xbf16>, vector<16x16xf32> -> vector<16x16xf32>
    %cst_124 = arith.constant 1.250000e-01 : f32
    %284 = vector.broadcast %cst_124 : f32 to vector<16x16xf32>
    %285 = arith.mulf %283, %284 : vector<16x16xf32>
    %cst_125 = arith.constant -1.000000e+30 : f32
    %286 = vector.broadcast %cst_125 : f32 to vector<16x16xf32>
    %287 = arith.select %3, %285, %286 : vector<16x16xi1>, vector<16x16xf32>
    %cst_126 = arith.constant dense<0xFF800000> : vector<16xf32>
    %288 = vector.multi_reduction <maximumf>, %287, %cst_126 [1] : vector<16x16xf32> to vector<16xf32>
    %289 = vector.shape_cast %288 : vector<16xf32> to vector<16x1xf32>
    %290 = vector.broadcast %289 : vector<16x1xf32> to vector<16x16xf32>
    %291 = arith.subf %287, %290 : vector<16x16xf32>
    %292 = math.exp %291 : vector<16x16xf32>
    %cst_127 = arith.constant dense<0.000000e+00> : vector<16xf32>
    %293 = vector.multi_reduction <add>, %292, %cst_127 [1] : vector<16x16xf32> to vector<16xf32>
    %294 = vector.shape_cast %293 : vector<16xf32> to vector<16x1xf32>
    %295 = tpu.reciprocal %294 {approx = true} : vector<16x1xf32> -> vector<16x1xf32>
    %296 = vector.broadcast %295 : vector<16x1xf32> to vector<16x16xf32>
    %297 = arith.mulf %292, %296 : vector<16x16xf32>
    %298 = arith.truncf %297 : vector<16x16xf32> to vector<16x16xbf16>
    %cst_128 = arith.constant dense<0.000000e+00> : vector<16x64xf32>
    %299 = tpu.matmul %298, %281, %cst_128 {dimension_numbers = #tpu.dot_dimension_numbers<[1], [0], [0], [1], [0, 0, 1, 1], [], []>} : vector<16x16xbf16>, vector<16x64xbf16>, vector<16x64xf32> -> vector<16x64xf32>
    %300 = arith.truncf %299 : vector<16x64xf32> to vector<16x64xbf16>
    %301 = vector.extract_strided_slice %246 {offsets = [64, 0], sizes = [64, 128], strides = [1, 1]} : vector<128x128xbf16> to vector<64x128xbf16>
    %cst_129 = arith.constant dense<0.000000e+00> : vector<16x128xf32>
    %302 = tpu.matmul %300, %301, %cst_129 {dimension_numbers = #tpu.dot_dimension_numbers<[1], [0], [0], [1], [0, 0, 1, 1], [], []>} : vector<16x64xbf16>, vector<64x128xbf16>, vector<16x128xf32> -> vector<16x128xf32>
    %303 = arith.addf %275, %302 : vector<16x128xf32>
    %c0_130 = arith.constant 0 : index
    %c0_131 = arith.constant 0 : index
    %304 = vector.load %arg20[%c0_130, %c0_131] : memref<32x128xf32, #tpu.memory_space<vmem>>, vector<16x128xf32>
    tpu.vector_store %arg20[%c0_130, %c0_131], %303 {strides = array<i32>} : memref<32x128xf32, #tpu.memory_space<vmem>>, vector<16x128xf32>,
    %cst_132 = arith.constant 0.000000e+00 : f32
    %305 = vector.broadcast %cst_132 : f32 to vector<16x128xf32>
    %306 = vector.extract_strided_slice %238 {offsets = [16, 0], sizes = [16, 64], strides = [1, 1]} : vector<32x128xf32> to vector<16x64xf32>
    %307 = arith.truncf %306 : vector<16x64xf32> to vector<16x64xbf16>
    %308 = vector.extract_strided_slice %241 {offsets = [16, 0], sizes = [16, 64], strides = [1, 1]} : vector<32x128xf32> to vector<16x64xf32>
    %309 = arith.truncf %308 : vector<16x64xf32> to vector<16x64xbf16>
    %310 = vector.extract_strided_slice %244 {offsets = [16, 0], sizes = [16, 64], strides = [1, 1]} : vector<32x128xf32> to vector<16x64xf32>
    %311 = arith.truncf %310 : vector<16x64xf32> to vector<16x64xbf16>
    %312 = tpu.transpose %309, [1, 0] : vector<16x64xbf16> -> vector<64x16xbf16>
    %cst_133 = arith.constant dense<0.000000e+00> : vector<16x16xf32>
    %313 = tpu.matmul %307, %312, %cst_133 {dimension_numbers = #tpu.dot_dimension_numbers<[1], [0], [0], [1], [0, 0, 1, 1], [], []>} : vector<16x64xbf16>, vector<64x16xbf16>, vector<16x16xf32> -> vector<16x16xf32>
    %cst_134 = arith.constant 1.250000e-01 : f32
    %314 = vector.broadcast %cst_134 : f32 to vector<16x16xf32>
    %315 = arith.mulf %313, %314 : vector<16x16xf32>
    %cst_135 = arith.constant -1.000000e+30 : f32
    %316 = vector.broadcast %cst_135 : f32 to vector<16x16xf32>
    %317 = arith.select %3, %315, %316 : vector<16x16xi1>, vector<16x16xf32>
    %cst_136 = arith.constant dense<0xFF800000> : vector<16xf32>
    %318 = vector.multi_reduction <maximumf>, %317, %cst_136 [1] : vector<16x16xf32> to vector<16xf32>
    %319 = vector.shape_cast %318 : vector<16xf32> to vector<16x1xf32>
    %320 = vector.broadcast %319 : vector<16x1xf32> to vector<16x16xf32>
    %321 = arith.subf %317, %320 : vector<16x16xf32>
    %322 = math.exp %321 : vector<16x16xf32>
    %cst_137 = arith.constant dense<0.000000e+00> : vector<16xf32>
    %323 = vector.multi_reduction <add>, %322, %cst_137 [1] : vector<16x16xf32> to vector<16xf32>
    %324 = vector.shape_cast %323 : vector<16xf32> to vector<16x1xf32>
    %325 = tpu.reciprocal %324 {approx = true} : vector<16x1xf32> -> vector<16x1xf32>
    %326 = vector.broadcast %325 : vector<16x1xf32> to vector<16x16xf32>
    %327 = arith.mulf %322, %326 : vector<16x16xf32>
    %328 = arith.truncf %327 : vector<16x16xf32> to vector<16x16xbf16>
    %cst_138 = arith.constant dense<0.000000e+00> : vector<16x64xf32>
    %329 = tpu.matmul %328, %311, %cst_138 {dimension_numbers = #tpu.dot_dimension_numbers<[1], [0], [0], [1], [0, 0, 1, 1], [], []>} : vector<16x16xbf16>, vector<16x64xbf16>, vector<16x64xf32> -> vector<16x64xf32>
    %330 = arith.truncf %329 : vector<16x64xf32> to vector<16x64xbf16>
    %331 = vector.extract_strided_slice %246 {offsets = [0, 0], sizes = [64, 128], strides = [1, 1]} : vector<128x128xbf16> to vector<64x128xbf16>
    %cst_139 = arith.constant dense<0.000000e+00> : vector<16x128xf32>
    %332 = tpu.matmul %330, %331, %cst_139 {dimension_numbers = #tpu.dot_dimension_numbers<[1], [0], [0], [1], [0, 0, 1, 1], [], []>} : vector<16x64xbf16>, vector<64x128xbf16>, vector<16x128xf32> -> vector<16x128xf32>
    %333 = arith.addf %305, %332 : vector<16x128xf32>
    %334 = vector.extract_strided_slice %238 {offsets = [16, 64], sizes = [16, 64], strides = [1, 1]} : vector<32x128xf32> to vector<16x64xf32>
    %335 = arith.truncf %334 : vector<16x64xf32> to vector<16x64xbf16>
    %336 = vector.extract_strided_slice %241 {offsets = [16, 64], sizes = [16, 64], strides = [1, 1]} : vector<32x128xf32> to vector<16x64xf32>
    %337 = arith.truncf %336 : vector<16x64xf32> to vector<16x64xbf16>
    %338 = vector.extract_strided_slice %244 {offsets = [16, 64], sizes = [16, 64], strides = [1, 1]} : vector<32x128xf32> to vector<16x64xf32>
    %339 = arith.truncf %338 : vector<16x64xf32> to vector<16x64xbf16>
    %340 = tpu.transpose %337, [1, 0] : vector<16x64xbf16> -> vector<64x16xbf16>
    %cst_140 = arith.constant dense<0.000000e+00> : vector<16x16xf32>
    %341 = tpu.matmul %335, %340, %cst_140 {dimension_numbers = #tpu.dot_dimension_numbers<[1], [0], [0], [1], [0, 0, 1, 1], [], []>} : vector<16x64xbf16>, vector<64x16xbf16>, vector<16x16xf32> -> vector<16x16xf32>
    %cst_141 = arith.constant 1.250000e-01 : f32
    %342 = vector.broadcast %cst_141 : f32 to vector<16x16xf32>
    %343 = arith.mulf %341, %342 : vector<16x16xf32>
    %cst_142 = arith.constant -1.000000e+30 : f32
    %344 = vector.broadcast %cst_142 : f32 to vector<16x16xf32>
    %345 = arith.select %3, %343, %344 : vector<16x16xi1>, vector<16x16xf32>
    %cst_143 = arith.constant dense<0xFF800000> : vector<16xf32>
    %346 = vector.multi_reduction <maximumf>, %345, %cst_143 [1] : vector<16x16xf32> to vector<16xf32>
    %347 = vector.shape_cast %346 : vector<16xf32> to vector<16x1xf32>
    %348 = vector.broadcast %347 : vector<16x1xf32> to vector<16x16xf32>
    %349 = arith.subf %345, %348 : vector<16x16xf32>
    %350 = math.exp %349 : vector<16x16xf32>
    %cst_144 = arith.constant dense<0.000000e+00> : vector<16xf32>
    %351 = vector.multi_reduction <add>, %350, %cst_144 [1] : vector<16x16xf32> to vector<16xf32>
    %352 = vector.shape_cast %351 : vector<16xf32> to vector<16x1xf32>
    %353 = tpu.reciprocal %352 {approx = true} : vector<16x1xf32> -> vector<16x1xf32>
    %354 = vector.broadcast %353 : vector<16x1xf32> to vector<16x16xf32>
    %355 = arith.mulf %350, %354 : vector<16x16xf32>
    %356 = arith.truncf %355 : vector<16x16xf32> to vector<16x16xbf16>
    %cst_145 = arith.constant dense<0.000000e+00> : vector<16x64xf32>
    %357 = tpu.matmul %356, %339, %cst_145 {dimension_numbers = #tpu.dot_dimension_numbers<[1], [0], [0], [1], [0, 0, 1, 1], [], []>} : vector<16x16xbf16>, vector<16x64xbf16>, vector<16x64xf32> -> vector<16x64xf32>
    %358 = arith.truncf %357 : vector<16x64xf32> to vector<16x64xbf16>
    %359 = vector.extract_strided_slice %246 {offsets = [64, 0], sizes = [64, 128], strides = [1, 1]} : vector<128x128xbf16> to vector<64x128xbf16>
    %cst_146 = arith.constant dense<0.000000e+00> : vector<16x128xf32>
    %360 = tpu.matmul %358, %359, %cst_146 {dimension_numbers = #tpu.dot_dimension_numbers<[1], [0], [0], [1], [0, 0, 1, 1], [], []>} : vector<16x64xbf16>, vector<64x128xbf16>, vector<16x128xf32> -> vector<16x128xf32>
    %361 = arith.addf %333, %360 : vector<16x128xf32>
    %c16_147 = arith.constant 16 : index
    %c0_148 = arith.constant 0 : index
    %362 = vector.load %arg20[%c16_147, %c0_148] : memref<32x128xf32, #tpu.memory_space<vmem>>, vector<16x128xf32>
    tpu.vector_store %arg20[%c16_147, %c0_148], %361 {strides = array<i32>} : memref<32x128xf32, #tpu.memory_space<vmem>>, vector<16x128xf32>,
    %c0_149 = arith.constant 0 : index
    %c0_150 = arith.constant 0 : index
    %363 = vector.load %arg20[%c0_149, %c0_150] : memref<32x128xf32, #tpu.memory_space<vmem>>, vector<32x128xf32>
    %364 = arith.addf %208, %363 : vector<32x128xf32>
    %c1_151 = arith.constant 1 : index
    %c0_152 = arith.constant 0 : index
    %c0_153 = arith.constant 0 : index
    %365 = vector.load %arg8[%c1_151, %c0_152, %c0_153] : memref<2x1x128xf32, #tpu.memory_space<vmem>>, vector<1x1x128xf32>
    %366 = vector.shape_cast %365 : vector<1x1x128xf32> to vector<1x128xf32>
    %367 = vector.broadcast %366 : vector<1x128xf32> to vector<32x128xf32>
    %368 = arith.addf %364, %367 : vector<32x128xf32>
    %c1_154 = arith.constant 1 : index
    %c0_155 = arith.constant 0 : index
    %c0_156 = arith.constant 0 : index
    %369 = vector.load %arg9[%c1_154, %c0_155, %c0_156] : memref<2x1x128xf32, #tpu.memory_space<vmem>>, vector<1x1x128xf32>
    %370 = vector.shape_cast %369 : vector<1x1x128xf32> to vector<1x128xf32>
    %c1_157 = arith.constant 1 : index
    %c0_158 = arith.constant 0 : index
    %c0_159 = arith.constant 0 : index
    %371 = vector.load %arg10[%c1_157, %c0_158, %c0_159] : memref<2x1x128xf32, #tpu.memory_space<vmem>>, vector<1x1x128xf32>
    %372 = vector.shape_cast %371 : vector<1x1x128xf32> to vector<1x128xf32>
    %cst_160 = arith.constant dense<0.000000e+00> : vector<32xf32>
    %373 = vector.multi_reduction <add>, %368, %cst_160 [1] : vector<32x128xf32> to vector<32xf32>
    %374 = vector.shape_cast %373 : vector<32xf32> to vector<32x1xf32>
    %cst_161 = arith.constant 1.280000e+02 : f32
    %375 = vector.broadcast %cst_161 : f32 to vector<32x1xf32>
    %376 = arith.divf %374, %375 : vector<32x1xf32>
    %377 = vector.broadcast %376 : vector<32x1xf32> to vector<32x128xf32>
    %378 = arith.subf %368, %377 : vector<32x128xf32>
    %379 = arith.mulf %378, %378 : vector<32x128xf32>
    %cst_162 = arith.constant dense<0.000000e+00> : vector<32xf32>
    %380 = vector.multi_reduction <add>, %379, %cst_162 [1] : vector<32x128xf32> to vector<32xf32>
    %381 = vector.shape_cast %380 : vector<32xf32> to vector<32x1xf32>
    %cst_163 = arith.constant 1.280000e+02 : f32
    %382 = vector.broadcast %cst_163 : f32 to vector<32x1xf32>
    %383 = arith.divf %381, %382 : vector<32x1xf32>
    %cst_164 = arith.constant 9.99999974E-6 : f32
    %384 = vector.broadcast %cst_164 : f32 to vector<32x1xf32>
    %385 = arith.addf %383, %384 : vector<32x1xf32>
    %386 = math.rsqrt %385 : vector<32x1xf32>
    %387 = vector.broadcast %376 : vector<32x1xf32> to vector<32x128xf32>
    %388 = arith.subf %368, %387 : vector<32x128xf32>
    %389 = vector.broadcast %386 : vector<32x1xf32> to vector<32x128xf32>
    %390 = arith.mulf %388, %389 : vector<32x128xf32>
    %391 = vector.broadcast %370 : vector<1x128xf32> to vector<32x128xf32>
    %392 = arith.mulf %390, %391 : vector<32x128xf32>
    %393 = vector.broadcast %372 : vector<1x128xf32> to vector<32x128xf32>
    %394 = arith.addf %392, %393 : vector<32x128xf32>
    %395 = arith.truncf %394 : vector<32x128xf32> to vector<32x128xbf16>
    %c1_165 = arith.constant 1 : index
    %c0_166 = arith.constant 0 : index
    %c0_167 = arith.constant 0 : index
    %396 = vector.load %arg11[%c1_165, %c0_166, %c0_167] : memref<2x128x512xbf16, #tpu.memory_space<vmem>>, vector<1x128x512xbf16>
    %397 = vector.shape_cast %396 : vector<1x128x512xbf16> to vector<128x512xbf16>
    %cst_168 = arith.constant dense<0.000000e+00> : vector<32x512xf32>
    %398 = tpu.matmul %395, %397, %cst_168 {dimension_numbers = #tpu.dot_dimension_numbers<[1], [0], [0], [1], [0, 0, 1, 1], [], []>} : vector<32x128xbf16>, vector<128x512xbf16>, vector<32x512xf32> -> vector<32x512xf32>
    %c1_169 = arith.constant 1 : index
    %c0_170 = arith.constant 0 : index
    %c0_171 = arith.constant 0 : index
    %399 = vector.load %arg12[%c1_169, %c0_170, %c0_171] : memref<2x1x512xf32, #tpu.memory_space<vmem>>, vector<1x1x512xf32>
    %400 = vector.shape_cast %399 : vector<1x1x512xf32> to vector<1x512xf32>
    %401 = vector.broadcast %400 : vector<1x512xf32> to vector<32x512xf32>
    %402 = arith.addf %398, %401 : vector<32x512xf32>
    %cst_172 = arith.constant 0.000000e+00 : f32
    %403 = vector.broadcast %cst_172 : f32 to vector<32x512xf32>
    %404 = arith.maximumf %402, %403 : vector<32x512xf32>
    %405 = arith.truncf %404 : vector<32x512xf32> to vector<32x512xbf16>
    %c1_173 = arith.constant 1 : index
    %c0_174 = arith.constant 0 : index
    %c0_175 = arith.constant 0 : index
    %406 = vector.load %arg13[%c1_173, %c0_174, %c0_175] : memref<2x512x128xbf16, #tpu.memory_space<vmem>>, vector<1x512x128xbf16>
    %407 = vector.shape_cast %406 : vector<1x512x128xbf16> to vector<512x128xbf16>
    %cst_176 = arith.constant dense<0.000000e+00> : vector<32x128xf32>
    %408 = tpu.matmul %405, %407, %cst_176 {dimension_numbers = #tpu.dot_dimension_numbers<[1], [0], [0], [1], [0, 0, 1, 1], [], []>} : vector<32x512xbf16>, vector<512x128xbf16>, vector<32x128xf32> -> vector<32x128xf32>
    %c1_177 = arith.constant 1 : index
    %c0_178 = arith.constant 0 : index
    %c0_179 = arith.constant 0 : index
    %409 = vector.load %arg14[%c1_177, %c0_178, %c0_179] : memref<2x1x128xf32, #tpu.memory_space<vmem>>, vector<1x1x128xf32>
    %410 = vector.shape_cast %409 : vector<1x1x128xf32> to vector<1x128xf32>
    %411 = vector.broadcast %410 : vector<1x128xf32> to vector<32x128xf32>
    %412 = arith.addf %408, %411 : vector<32x128xf32>
    %413 = arith.addf %368, %412 : vector<32x128xf32>
    %c0_180 = arith.constant 0 : index
    %c0_181 = arith.constant 0 : index
    %414 = vector.load %arg15[%c0_180, %c0_181] : memref<1x128xf32, #tpu.memory_space<vmem>>, vector<1x128xf32>
    %c0_182 = arith.constant 0 : index
    %c0_183 = arith.constant 0 : index
    %415 = vector.load %arg16[%c0_182, %c0_183] : memref<1x128xf32, #tpu.memory_space<vmem>>, vector<1x128xf32>
    %cst_184 = arith.constant dense<0.000000e+00> : vector<32xf32>
    %416 = vector.multi_reduction <add>, %413, %cst_184 [1] : vector<32x128xf32> to vector<32xf32>
    %417 = vector.shape_cast %416 : vector<32xf32> to vector<32x1xf32>
    %cst_185 = arith.constant 1.280000e+02 : f32
    %418 = vector.broadcast %cst_185 : f32 to vector<32x1xf32>
    %419 = arith.divf %417, %418 : vector<32x1xf32>
    %420 = vector.broadcast %419 : vector<32x1xf32> to vector<32x128xf32>
    %421 = arith.subf %413, %420 : vector<32x128xf32>
    %422 = arith.mulf %421, %421 : vector<32x128xf32>
    %cst_186 = arith.constant dense<0.000000e+00> : vector<32xf32>
    %423 = vector.multi_reduction <add>, %422, %cst_186 [1] : vector<32x128xf32> to vector<32xf32>
    %424 = vector.shape_cast %423 : vector<32xf32> to vector<32x1xf32>
    %cst_187 = arith.constant 1.280000e+02 : f32
    %425 = vector.broadcast %cst_187 : f32 to vector<32x1xf32>
    %426 = arith.divf %424, %425 : vector<32x1xf32>
    %cst_188 = arith.constant 9.99999974E-6 : f32
    %427 = vector.broadcast %cst_188 : f32 to vector<32x1xf32>
    %428 = arith.addf %426, %427 : vector<32x1xf32>
    %429 = math.rsqrt %428 : vector<32x1xf32>
    %430 = vector.broadcast %419 : vector<32x1xf32> to vector<32x128xf32>
    %431 = arith.subf %413, %430 : vector<32x128xf32>
    %432 = vector.broadcast %429 : vector<32x1xf32> to vector<32x128xf32>
    %433 = arith.mulf %431, %432 : vector<32x128xf32>
    %434 = vector.broadcast %414 : vector<1x128xf32> to vector<32x128xf32>
    %435 = arith.mulf %433, %434 : vector<32x128xf32>
    %436 = vector.broadcast %415 : vector<1x128xf32> to vector<32x128xf32>
    %437 = arith.addf %435, %436 : vector<32x128xf32>
    %438 = arith.truncf %437 : vector<32x128xf32> to vector<32x128xbf16>
    %c0_189 = arith.constant 0 : index
    %c0_190 = arith.constant 0 : index
    %439 = vector.load %arg17[%c0_189, %c0_190] : memref<128x128xbf16, #tpu.memory_space<vmem>>, vector<128x128xbf16>
    %cst_191 = arith.constant dense<0.000000e+00> : vector<32x128xf32>
    %440 = tpu.matmul %438, %439, %cst_191 {dimension_numbers = #tpu.dot_dimension_numbers<[1], [0], [0], [1], [0, 0, 1, 1], [], []>} : vector<32x128xbf16>, vector<128x128xbf16>, vector<32x128xf32> -> vector<32x128xf32>
    %c0_192 = arith.constant 0 : index
    %c0_193 = arith.constant 0 : index
    %441 = vector.load %arg18[%c0_192, %c0_193] : memref<1x128xf32, #tpu.memory_space<vmem>>, vector<1x128xf32>
    %442 = vector.broadcast %441 : vector<1x128xf32> to vector<32x128xf32>
    %443 = arith.addf %440, %442 : vector<32x128xf32>
    %c0_194 = arith.constant 0 : index
    %c0_195 = arith.constant 0 : index
    %444 = vector.load %arg19[%c0_194, %c0_195] : memref<32x128xf32, #tpu.memory_space<vmem>>, vector<32x128xf32>
    tpu.vector_store %arg19[%c0_194, %c0_195], %443 {strides = array<i32>} : memref<32x128xf32, #tpu.memory_space<vmem>>, vector<32x128xf32>,
    return
  }
  func.func @transform_0(%arg0: i32) -> (i32, i32) {
    %c0_i32 = arith.constant 0 : i32
    %c0_i32_0 = arith.constant 0 : i32
    return %arg0, %c0_i32 : i32, i32
  }
  func.func @transform_1(%arg0: i32) -> (i32, i32, i32) {
    %c0_i32 = arith.constant 0 : i32
    %c0_i32_0 = arith.constant 0 : i32
    %c0_i32_1 = arith.constant 0 : i32
    %c0_i32_2 = arith.constant 0 : i32
    return %c0_i32, %c0_i32_0, %c0_i32_1 : i32, i32, i32
  }
  func.func @transform_2(%arg0: i32) -> (i32, i32, i32) {
    %c0_i32 = arith.constant 0 : i32
    %c0_i32_0 = arith.constant 0 : i32
    %c0_i32_1 = arith.constant 0 : i32
    %c0_i32_2 = arith.constant 0 : i32
    return %c0_i32, %c0_i32_0, %c0_i32_1 : i32, i32, i32
  }
  func.func @transform_3(%arg0: i32) -> (i32, i32, i32) {
    %c0_i32 = arith.constant 0 : i32
    %c0_i32_0 = arith.constant 0 : i32
    %c0_i32_1 = arith.constant 0 : i32
    %c0_i32_2 = arith.constant 0 : i32
    return %c0_i32, %c0_i32_0, %c0_i32_1 : i32, i32, i32
  }
  func.func @transform_4(%arg0: i32) -> (i32, i32, i32) {
    %c0_i32 = arith.constant 0 : i32
    %c0_i32_0 = arith.constant 0 : i32
    %c0_i32_1 = arith.constant 0 : i32
    %c0_i32_2 = arith.constant 0 : i32
    return %c0_i32, %c0_i32_0, %c0_i32_1 : i32, i32, i32
  }
  func.func @transform_5(%arg0: i32) -> (i32, i32, i32) {
    %c0_i32 = arith.constant 0 : i32
    %c0_i32_0 = arith.constant 0 : i32
    %c0_i32_1 = arith.constant 0 : i32
    %c0_i32_2 = arith.constant 0 : i32
    return %c0_i32, %c0_i32_0, %c0_i32_1 : i32, i32, i32
  }
  func.func @transform_6(%arg0: i32) -> (i32, i32, i32) {
    %c0_i32 = arith.constant 0 : i32
    %c0_i32_0 = arith.constant 0 : i32
    %c0_i32_1 = arith.constant 0 : i32
    %c0_i32_2 = arith.constant 0 : i32
    return %c0_i32, %c0_i32_0, %c0_i32_1 : i32, i32, i32
  }
  func.func @transform_7(%arg0: i32) -> (i32, i32, i32) {
    %c0_i32 = arith.constant 0 : i32
    %c0_i32_0 = arith.constant 0 : i32
    %c0_i32_1 = arith.constant 0 : i32
    %c0_i32_2 = arith.constant 0 : i32
    return %c0_i32, %c0_i32_0, %c0_i32_1 : i32, i32, i32
  }
  func.func @transform_8(%arg0: i32) -> (i32, i32, i32) {
    %c0_i32 = arith.constant 0 : i32
    %c0_i32_0 = arith.constant 0 : i32
    %c0_i32_1 = arith.constant 0 : i32
    %c0_i32_2 = arith.constant 0 : i32
    return %c0_i32, %c0_i32_0, %c0_i32_1 : i32, i32, i32
  }
  func.func @transform_9(%arg0: i32) -> (i32, i32, i32) {
    %c0_i32 = arith.constant 0 : i32
    %c0_i32_0 = arith.constant 0 : i32
    %c0_i32_1 = arith.constant 0 : i32
    %c0_i32_2 = arith.constant 0 : i32
    return %c0_i32, %c0_i32_0, %c0_i32_1 : i32, i32, i32
  }
  func.func @transform_10(%arg0: i32) -> (i32, i32, i32) {
    %c0_i32 = arith.constant 0 : i32
    %c0_i32_0 = arith.constant 0 : i32
    %c0_i32_1 = arith.constant 0 : i32
    %c0_i32_2 = arith.constant 0 : i32
    return %c0_i32, %c0_i32_0, %c0_i32_1 : i32, i32, i32
  }
  func.func @transform_11(%arg0: i32) -> (i32, i32, i32) {
    %c0_i32 = arith.constant 0 : i32
    %c0_i32_0 = arith.constant 0 : i32
    %c0_i32_1 = arith.constant 0 : i32
    %c0_i32_2 = arith.constant 0 : i32
    return %c0_i32, %c0_i32_0, %c0_i32_1 : i32, i32, i32
  }
  func.func @transform_12(%arg0: i32) -> (i32, i32, i32) {
    %c0_i32 = arith.constant 0 : i32
    %c0_i32_0 = arith.constant 0 : i32
    %c0_i32_1 = arith.constant 0 : i32
    %c0_i32_2 = arith.constant 0 : i32
    return %c0_i32, %c0_i32_0, %c0_i32_1 : i32, i32, i32
  }
  func.func @transform_13(%arg0: i32) -> (i32, i32, i32) {
    %c0_i32 = arith.constant 0 : i32
    %c0_i32_0 = arith.constant 0 : i32
    %c0_i32_1 = arith.constant 0 : i32
    %c0_i32_2 = arith.constant 0 : i32
    return %c0_i32, %c0_i32_0, %c0_i32_1 : i32, i32, i32
  }
  func.func @transform_14(%arg0: i32) -> (i32, i32) {
    %c0_i32 = arith.constant 0 : i32
    %c0_i32_0 = arith.constant 0 : i32
    %c0_i32_1 = arith.constant 0 : i32
    return %c0_i32, %c0_i32_0 : i32, i32
  }
  func.func @transform_15(%arg0: i32) -> (i32, i32) {
    %c0_i32 = arith.constant 0 : i32
    %c0_i32_0 = arith.constant 0 : i32
    %c0_i32_1 = arith.constant 0 : i32
    return %c0_i32, %c0_i32_0 : i32, i32
  }
  func.func @transform_16(%arg0: i32) -> (i32, i32) {
    %c0_i32 = arith.constant 0 : i32
    %c0_i32_0 = arith.constant 0 : i32
    %c0_i32_1 = arith.constant 0 : i32
    return %c0_i32, %c0_i32_0 : i32, i32
  }
  func.func @transform_17(%arg0: i32) -> (i32, i32) {
    %c0_i32 = arith.constant 0 : i32
    %c0_i32_0 = arith.constant 0 : i32
    %c0_i32_1 = arith.constant 0 : i32
    return %c0_i32, %c0_i32_0 : i32, i32
  }
  func.func @transform_18(%arg0: i32) -> (i32, i32) {
    %c0_i32 = arith.constant 0 : i32
    %c0_i32_0 = arith.constant 0 : i32
    return %arg0, %c0_i32 : i32, i32
  }
}

</mosaic_0001>

<bundles_post_ra>
// kernel: tpu_custom_call.1
= control target key start
LH: loop header
LB: loop body
LE: loop exit
PB: predicated region body
PF: predicated region fallthrough
CT: control target
= control target key end

     0   :  { %s7610_s0 = inlined_call_operand.hbm [shape: f32[64,128], index: 0, kind: input, shape index: {}]   ;;  %s7611_s1 = inlined_call_operand.hbm [shape: f32[2,1,128], index: 1, kind: input, shape index: {}]   ;;  %s7612_s2 = inlined_call_operand.vmem [shape: f32[2,1,128], index: 2, kind: input, shape index: {}]   ;;  %s7613_s3 = inlined_call_operand.hbm [shape: bf16[2,128,128], index: 3, kind: input, shape index: {}]   ;;  %s7614_s4 = inlined_call_operand.hbm [shape: bf16[2,128,128], index: 4, kind: input, shape index: {}]   ;;  %s7615_s5 = inlined_call_operand.hbm [shape: bf16[2,128,128], index: 5, kind: input, shape index: {}]   ;;  %s7616_s6 = inlined_call_operand.hbm [shape: bf16[2,128,128], index: 6, kind: input, shape index: {}]   ;;  %s7617_s7 = inlined_call_operand.vmem [shape: f32[2,1,128], index: 7, kind: input, shape index: {}]   ;;  %s7618_s8 = inlined_call_operand.vmem [shape: f32[2,1,128], index: 8, kind: input, shape index: {}]   ;;  %s7619_s9 = inlined_call_operand.vmem [shape: f32[2,1,128], index: 9, kind: input, shape index: {}]   ;;  %s7620_s10 = inlined_call_operand.hbm [shape: bf16[2,128,512], index: 10, kind: input, shape index: {}]   ;;  %s7621_s11 = inlined_call_operand.vmem [shape: f32[2,1,512], index: 11, kind: input, shape index: {}]   ;;  %s7622_s12 = inlined_call_operand.hbm [shape: bf16[2,512,128], index: 12, kind: input, shape index: {}]   ;;  %s7623_s13 = inlined_call_operand.vmem [shape: f32[2,1,128], index: 13, kind: input, shape index: {}]   ;;  %s7624_s14 = inlined_call_operand.vmem [shape: f32[1,128], index: 14, kind: input, shape index: {}]   ;;  %s7625_s15 = inlined_call_operand.vmem [shape: f32[1,128], index: 15, kind: input, shape index: {}]   ;;  %s7626_s16 = inlined_call_operand.hbm [shape: bf16[128,128], index: 16, kind: input, shape index: {}]   ;;  %s7627_s17 = inlined_call_operand.vmem [shape: f32[1,128], index: 17, kind: input, shape index: {}]   ;;  %s7628_s18 = inlined_call_operand.hbm [shape: f32[64,128], index: 18, kind: output, shape index: {}]  }
   0x1   :  { %7637 = sst [smem:[#allocation25_spill]] %s7610_s0 }
   0x2   :  { %7638 = sst [smem:[#allocation26_spill]] %s7611_s1 }
   0x3   :  { %7639 = sst [smem:[#allocation27_spill]] %s7612_s2 }
   0x4   :  { %7640 = sst [smem:[#allocation28_spill]] %s7613_s3 }
   0x5   :  { %7641 = sst [smem:[#allocation29_spill]] %s7614_s4 }
   0x6   :  { %7642 = sst [smem:[#allocation30_spill]] %s7615_s5 }
   0x7   :  { %7643 = sst [smem:[#allocation31_spill]] %s7616_s6 }
   0x8   :  { %7644 = sst [smem:[#allocation32_spill]] %s7620_s10 }
   0x9   :  { %7645 = sst [smem:[#allocation33_spill]] %s7622_s12 }
   0xa   :  { %7646 = sst [smem:[#allocation34_spill]] %s7624_s14 }
   0xb   :  { %7647 = sst [smem:[#allocation35_spill]] %s7625_s15 }
   0xc   :  { %7648 = sst [smem:[#allocation36_spill]] %s7627_s17 }
   0xd   :  { %7649 = sst [smem:[#allocation37_spill]] %s7628_s18 }
   0xe   :  { %23 = vsyncpa [#allocation4], 0 }
   0xf   :  { %25 = vsyncpa [#allocation4 + $0x1], 0 }
  0x10   :  { %26 = vsyncpa [#allocation7], 0 }
  0x11   :  { %27 = vsyncpa [#allocation10], 0 }
  0x12   :  { %28 = vsyncpa [#allocation13], 0 }
  0x13   :  { %29 = vsyncpa [#allocation16], 0 }
  0x14   :  { %30 = vsyncpa [#allocation5], 0 }
  0x15   :  { %32 = vsyncpa [#allocation5 + $0x1], 0  ;;  %s6772_s27 = smov 0   ;;  %s6774_s28 = smov 0  }
  0x16   :  { %s6776_s29 = smov 0   ;;  %s6778_s30 = smov 0  }
  0x17 LB: > { %s6654_s0 = smov [#allocation6]   ;;  %s6793_s1 = sadd.s32 4294967295, %s6652_s30   ;;  %s6652_s30 = sphi %s6778_s30, %s7691_s30   ;;  %s6648_s29 = sphi %s6776_s29, %s7690_s29   ;;  %s6644_s28 = sphi %s6774_s28, %s7689_s28   ;;  %s6640_s27 = sphi %s6772_s27, %s7688_s27  }
  0x18   : > { %s464_s19 = sshll.u32 %s6654_s0, 4  ;;  %p4994_p0 = scmp.ge.s32.totalorder %s6652_s30, 1  ;;  %s465_s19 = int_to_ptr.vmem [resolvable:$true] %s464_s19 }
  0x19   : > { %p7633_p1 = scmp.eq.s32.totalorder %s6793_s1, 0  ;;  %p452_p2 = scmp.lt.s32.totalorder %s6652_s30, 3 }
  0x1a   : > { %s6655_s22 = smov [#allocation9]   ;;  %s6656_s23 = smov [#allocation12]  }
  0x1b   : > { %p6798_p3 = pnand %p4994_p0, %p452_p2  ;;  %s493_s2 = sshll.u32 %s6655_s22, 4  ;;  %s6811_s2 = int_to_ptr.vmem [resolvable:$true] %s493_s2 }
  0x1c   : > { %s6813_s24 = sshll.u32 %s6656_s23, 4  ;;  %s6347_s26 = scalar_lea.vmem %s465_s19, 32  ;;  %s520_s24 = int_to_ptr.vmem [resolvable:$true] %s6813_s24 }
  0x1d   : > { %s7650_s20 = scalar_select %p6798_p3, 1, 0 }
  0x1e   : > { %p5892_p5 = pneg %p6798_p3  ;;  %p6348_p8 = scmp.ne.s32.totalorder %s465_s19, %s6347_s26 }
  0x1f   : > { %p6355_p11 = scmp.lt.s32.totalorder %s465_s19, %s465_s19  ;;  %p6356_p12 = scmp.lt.s32.totalorder %s6347_s26, %s6347_s26 }
  0x20   : > { %p6807_p6 = pnand %p5892_p5, %p7633_p1 }
  0x21   : > { %p6357_p13 = por %p6356_p12, %p6355_p11 }
  0x22   : > { %p6817_p7 = pneg %p6807_p6 }
  0x24   : > { %p6350_p9 = pnand %p6348_p8, %p6817_p7 }
  0x26   : > { %p6351_p10 = pneg %p6350_p9 }
  0x28   : > { %p6358_p0 = pnand %p6357_p13, %p6351_p10 }
  0x2a   : > { %6361 = shalt.err (!%p6358_p0)
}
  0x2b   : > { %s7632_s0 = smov 16   ;;  %s6658_s22 = smov 1  }
  0x2c   : > { %s7653_s17 = sld [smem:[#allocation26_spill]]  ;;  %s6373_s15 = scalar_lea.vmem %s6811_s2, 2048 }
  0x2d   : > { %p6374_p2 = scmp.ne.s32.totalorder %s6811_s2, %s6373_s15  ;;  %p6381_p9 = scmp.lt.s32.totalorder %s6811_s2, %s6811_s2 }
  0x2e   : > { %p6382_p10 = scmp.lt.s32.totalorder %s6373_s15, %s6373_s15 }
  0x2f   : > { %p6376_p5 = pnand %p6374_p2, %p6817_p7 }
  0x30   : > { %p6383_p11 = por %p6382_p10, %p6381_p9 }
  0x31   : > { %p6377_p8 = pneg %p6376_p5 }
  0x32   : > { %5895 = dma.hbm_to_vmem [thread:$0]  (!%p6807_p6), %s7653_s17, 32, %s465_s19, [#allocation7], %s7632_s0, %s7632_s0, %s6658_s22  }
  0x33   : > { %p6384_p12 = pnand %p6383_p11, %p6377_p8 }
  0x35   : > { %6387 = shalt.err (!%p6384_p12)
}
  0x36   : > { %s6659_s26 = smov 64   ;;  %s6660_s14 = smov 4  }
  0x37   : > { %s7654_s4 = sld [smem:[#allocation29_spill]]  ;;  %s6399_s19 = scalar_lea.vmem %s520_s24, 2048 }
  0x38   : > { %p6400_p13 = scmp.ne.s32.totalorder %s520_s24, %s6399_s19  ;;  %p6407_p5 = scmp.lt.s32.totalorder %s520_s24, %s520_s24 }
  0x39   : > { %p6408_p8 = scmp.lt.s32.totalorder %s6399_s19, %s6399_s19 }
  0x3a   : > { %p6402_p0 = pnand %p6400_p13, %p6817_p7 }
  0x3b   : > { %p6409_p9 = por %p6408_p8, %p6407_p5 }
  0x3c   : > { %p6403_p2 = pneg %p6402_p0 }
  0x3d   : > { %5901 = dma.hbm_to_vmem [thread:$0]  (!%p6807_p6), %s7654_s4, 2048, %s6811_s2, [#allocation10], %s6659_s26, %s6659_s26, %s6660_s14  }
  0x3e   : > { %p6410_p10 = pnand %p6409_p9, %p6403_p2 }
  0x40   : > { %6413 = shalt.err (!%p6410_p10)
}
  0x41   : > { %s7655_s6 = sld [smem:[#allocation31_spill]]  ;;  %s6661_s2 = smov [#allocation15]  }
  0x42   : > { %s557_s23 = sshll.u32 %s6661_s2, 4  ;;  %s6662_s17 = smov [#allocation8]   ;;  %s558_s23 = int_to_ptr.vmem [resolvable:$true] %s557_s23 }
  0x43   : > { %s480_s18 = sshll.u32 %s6662_s17, 4  ;;  %s6425_s0 = scalar_lea.vmem %s558_s23, 8192  ;;  %s481_s18 = int_to_ptr.vmem [resolvable:$true] %s480_s18 }
  0x44   : > { %p6426_p11 = scmp.ne.s32.totalorder %s558_s23, %s6425_s0  ;;  %p6433_p0 = scmp.lt.s32.totalorder %s558_s23, %s558_s23 }
  0x45   : > { %p6434_p2 = scmp.lt.s32.totalorder %s6425_s0, %s6425_s0 }
  0x46   : > { %p6428_p12 = pnand %p6426_p11, %p6817_p7 }
  0x47   : > { %5907 = dma.hbm_to_vmem [thread:$0]  (!%p6807_p6), %s7655_s6, 2048, %s520_s24, [#allocation13], %s6659_s26, %s6659_s26, %s6660_s14  }
  0x48   : > { %p6429_p13 = pneg %p6428_p12  ;;  %p6435_p5 = por %p6434_p2, %p6433_p0 }
  0x4a   : > { %p6436_p8 = pnand %p6435_p5, %p6429_p13 }
  0x4c   : > { %6439 = shalt.err (!%p6436_p8)
}
  0x4d   : > { %s7656_s12 = sld [smem:[#allocation33_spill]]  ;;  %s6451_s15 = scalar_lea.vmem %s481_s18, 2048 }
  0x4e   : > { %p6452_p9 = scmp.ne.s32.totalorder %s481_s18, %s6451_s15  ;;  %p6459_p12 = scmp.lt.s32.totalorder %s481_s18, %s481_s18 }
  0x4f   : > { %p6460_p0 = scmp.lt.s32.totalorder %s6451_s15, %s6451_s15 }
  0x50   : > { %p6454_p10 = pnand %p6452_p9, %p6817_p7 }
  0x51   : > { %p6461_p13 = por %p6460_p0, %p6459_p12 }
  0x52   : > { %p6455_p11 = pneg %p6454_p10 }
  0x53   : > { %5913 = dma.hbm_to_vmem [thread:$0]  (!%p6807_p6), %s7656_s12, 8192, %s558_s23, [#allocation16], %s6659_s26, %s6659_s26, %s6660_s14  }
  0x54   : > { %p6462_p2 = pnand %p6461_p13, %p6455_p11 }
  0x56   : > { %6465 = shalt.err (!%p6462_p2)
}
  0x57   : > { %s7657_s3 = sld [smem:[#allocation28_spill]]  ;;  %s6663_s2 = smov [#allocation11]  }
  0x58   : > { %s506_s23 = sshll.u32 %s6663_s2, 4  ;;  %s6664_s17 = smov [#allocation14]   ;;  %s507_s23 = int_to_ptr.vmem [resolvable:$true] %s506_s23 }
  0x59   : > { %s541_s24 = sshll.u32 %s6664_s17, 4  ;;  %s6477_s19 = scalar_lea.vmem %s507_s23, 2048  ;;  %s542_s24 = int_to_ptr.vmem [resolvable:$true] %s541_s24 }
  0x5a   : > { %p6478_p5 = scmp.ne.s32.totalorder %s507_s23, %s6477_s19  ;;  %p6485_p10 = scmp.lt.s32.totalorder %s507_s23, %s507_s23 }
  0x5b   : > { %p6486_p11 = scmp.lt.s32.totalorder %s6477_s19, %s6477_s19 }
  0x5c   : > { %p6480_p8 = pnand %p6478_p5, %p6817_p7 }
  0x5d   : > { %5898 = dma.hbm_to_vmem [thread:$0]  (!%p6807_p6), %s7657_s3, 2048, %s481_s18, [#allocation7], %s6659_s26, %s6659_s26, %s6660_s14  }
  0x5e   : > { %p6481_p9 = pneg %p6480_p8  ;;  %p6487_p12 = por %p6486_p11, %p6485_p10 }
  0x60   : > { %p6488_p0 = pnand %p6487_p12, %p6481_p9 }
  0x62   : > { %6491 = shalt.err (!%p6488_p0)
}
  0x63   : > { %s7658_s5 = sld [smem:[#allocation30_spill]]  ;;  %s6503_s0 = scalar_lea.vmem %s542_s24, 8192 }
  0x64   : > { %p6504_p13 = scmp.ne.s32.totalorder %s542_s24, %s6503_s0  ;;  %p6511_p8 = scmp.lt.s32.totalorder %s542_s24, %s542_s24 }
  0x65   : > { %p6512_p10 = scmp.lt.s32.totalorder %s6503_s0, %s6503_s0 }
  0x66   : > { %p6506_p2 = pnand %p6504_p13, %p6817_p7 }
  0x67   : > { %p6513_p9 = por %p6512_p10, %p6511_p8 }
  0x68   : > { %p6507_p5 = pneg %p6506_p2 }
  0x69   : > { %5904 = dma.hbm_to_vmem [thread:$0]  (!%p6807_p6), %s7658_s5, 2048, %s507_s23, [#allocation10], %s6659_s26, %s6659_s26, %s6660_s14  }
  0x6a   : > { %p6514_p11 = pnand %p6513_p9, %p6507_p5 }
  0x6c   : > { %6517 = shalt.err (!%p6514_p11)
}
  0x6d   : > { %s6665_s22 = smov 256   ;;  %s7659_s2 = smov 16  }
  0x6e   : > { %s7660_s10 = sld [smem:[#allocation32_spill]]  ;;  %s6666_s23 = smov [#allocation17]  }
  0x6f   : > { %s579_s18 = sshll.u32 %s6666_s23, 4  ;;  %s580_s18 = int_to_ptr.vmem [resolvable:$true] %s579_s18 }
  0x70   : > { %s6529_s15 = scalar_lea.vmem %s580_s18, 1024  ;;  %p6537_p2 = scmp.lt.s32.totalorder %s580_s18, %s580_s18 }
  0x71   : > { %p6530_p12 = scmp.ne.s32.totalorder %s580_s18, %s6529_s15  ;;  %p6538_p5 = scmp.lt.s32.totalorder %s6529_s15, %s6529_s15 }
  0x73   : > { %p6532_p0 = pnand %p6530_p12, %p6817_p7  ;;  %p6539_p8 = por %p6538_p5, %p6537_p2 }
  0x74   : > { %5910 = dma.hbm_to_vmem [thread:$0]  (!%p6807_p6), %s7660_s10, 8192, %s542_s24, [#allocation13], %s6665_s22, %s6665_s22, %s7659_s2  }
  0x75   : > { %p6533_p13 = pneg %p6532_p0 }
  0x77   : > { %p6540_p10 = pnand %p6539_p8, %p6533_p13 }
  0x79   : > { %6543 = shalt.err (!%p6540_p10)
}
  0x7a   : > { %5916 = dma.hbm_to_vmem [thread:$0]  (!%p6807_p6), %s7626_s16, 1024, %s580_s18, [#allocation16], %s6659_s26, %s6659_s26, %s6660_s14  }
  0x7b   : > { %s4993_s21 = sadd.s32 4294967294, %s6652_s30   ;;  %s6906_s25 = sadd.s32 1, %s6652_s30  }
  0x7c   : > { %s45_s22 = sadd.s32 1, %s6648_s29  ;;  %s42_s2 = ssub.s32 %s6652_s30, %s6906_s25 }
  0x7d   : > { %p52_p7 = scmp.ne.s32.totalorder %s6648_s29, %s6644_s28  ;;  %p43_p9 = scmp.eq.s32.totalorder %s42_s2, 0 }
  0x7e   : > { %p53_p11 = scmp.eq.s32.totalorder %s6652_s30, 0  ;;  %p58_p12 = scmp.ne.s32.totalorder %s6644_s28, %s6640_s27 }
  0x7f   : > { %p439_p0 = scmp.eq.s32.totalorder %s6793_s1, 1  ;;  %p445_p5 = scmp.eq.s32.totalorder %s4993_s21, 1 }
  0x80   : > { %s6918_s17 = scalar_select %p43_p9, %s6648_s29, %s45_s22  }
  0x81   : > { %p54_p13 = por %p53_p11, %p52_p7  ;;  %p6922_p2 = por %p7633_p1, %p58_p12 }
  0x82   : > { %p6926_p6 = por %p439_p0, %p52_p7  ;;  %p5933_p8 = scmp.lt.s32.totalorder %s6652_s30, 2 }
  0x83   : > { %s7661_s19 = scalar_select %p6922_p2, 1, 0 }
  0x84   : > { %s7662_s14 = scalar_select %p6926_p6, 1, 0 }
  0x85   : > { %s596_s26 = sand.u32 1, %s6648_s29   ;;  %p6932_p10 = por %p445_p5, %p58_p12 }
  0x86   : > { %s5004_s18 = sshll.u32 %s596_s26, 5  ;;  %s5268_s15 = sshll.u32 %s6652_s30, 9 }
  0x87   : > { %s7663_s23 = scalar_select %p6932_p10, 1, 0 }
  0x88   : > { %s7664_s22 = sld [smem:[#allocation25_spill]]  ;;  %s600_s3 = scalar_lea.vmem [#allocation3], %s5004_s18 }
  0x89   : > { %s607_s4 = sshll.u32 %s600_s3, 4  ;;  %p6942_p7 = pnand %p5933_p8, %p54_p13  ;;  %s6946_s4 = int_to_ptr.vmem [resolvable:$true] %s607_s4 }
  0x8a   : > { %s6948_s5 = scalar_lea.sflag [#allocation4], %s596_s26 }
  0x8b   : > { %p6546_p11 = pneg %p6942_p7 }
  0x8e   : > { %s6940_s2 = scalar_lea.hbm %s7664_s22, %s5268_s15  ;;  %s6549_s18 = scalar_lea.hbm %s7664_s22, 1024 }
  0x8f   : > { %s6544_s6 = scalar_lea.hbm %s6940_s2, 512  ;;  %p6550_p13 = scmp.lt.s32.totalorder %s6940_s2, %s7664_s22 }
  0x90   : > { %p6545_p9 = scmp.ne.s32.totalorder %s6940_s2, %s6544_s6  ;;  %p6551_p5 = scmp.lt.s32.totalorder %s6549_s18, %s6544_s6 }
  0x92   : > { %p6547_p12 = pnand %p6546_p11, %p6545_p9  ;;  %p6552_p8 = por %p6551_p5, %p6550_p13 }
  0x94   : > { %p6548_p0 = pneg %p6547_p12 }
  0x96   : > { %p6553_p4 = pnand %p6552_p8, %p6548_p0 }
  0x98   : > { %6556 = shalt.err (!%p6553_p4)
}
  0x99   : > { %s6557_s26 = scalar_lea.vmem %s6946_s4, 512  ;;  %s6667_s10 = smov [#allocation3]  }
  0x9a   : > { %p6558_p1 = scmp.ne.s32.totalorder %s6946_s4, %s6557_s26  ;;  %s6562_s12 = sshll.u32 %s6667_s10, 4  ;;  %s6563_s12 = int_to_ptr.vmem [resolvable:$false] %s6562_s12 }
  0x9b   : > { %s6564_s15 = scalar_lea.vmem %s6563_s12, 1024  ;;  %p6565_p12 = scmp.lt.s32.totalorder %s6946_s4, %s6563_s12 }
  0x9c   : > { %p6560_p10 = pnand %p6558_p1, %p6546_p11  ;;  %p6566_p6 = scmp.lt.s32.totalorder %s6564_s15, %s6557_s26 }
  0x9e   : > { %p6561_p9 = pneg %p6560_p10  ;;  %p6567_p2 = por %p6566_p6, %p6565_p12 }
  0xa0   : > { %p6568_p3 = pnand %p6567_p2, %p6561_p9 }
  0xa2   : > { %6571 = shalt.err (!%p6568_p3)
}
  0xa3   : > { %s6668_s6 = smov 128   ;;  %s6669_s0 = smov 8  }
  0xa4   : > { %5920 = dma.hbm_to_vmem [thread:$0]  (!%p6942_p7), %s6940_s2, 512, %s6946_s4, %s6948_s5, %s6668_s6, %s6668_s6, %s6669_s0  }
  0xa5   : > { %p7666_p1 = scmp.ne.s32.totalorder %s7650_s20, 0 }
  0xa6   : > { %s6972_s10 = sand.u32 (!%p7666_p1), 1, %s6644_s28   ;;  %p7667_p3 = scmp.ne.s32.totalorder (!%p7666_p1), %s7661_s19, 0 }
  0xa7   : > { %619 = sbr.rel (%p7666_p1) target bundleno = 7030 (0x1b76), region = 92  ;;  %s5008_s12 = sshll.u32 (!%p7666_p1), %s6972_s10, 5 }
  0xa8   : > { %s622_s18 = scalar_lea.sflag (!%p7666_p1), [#allocation4], %s6972_s10  ;;  %s6978_s3 = scalar_lea.vmem (!%p7666_p1), [#allocation3], %s5008_s12 }
  0xac   : > { %6615 = dma.done.wait (%p7667_p3), %s622_s18, 512  }
  0xad   : > { %6617 = vsyncadd (%p7667_p3), %s622_s18, 4294966784  ;;  %p7668_p4 = scmp.eq.s32.totalorder %s6793_s1, 0 }
  0xaf   : > { %6619 = dma.done.wait (%p7668_p4), [#allocation7], 2080   ;;  %p7669_p2 = pmov %p7668_p4 }
  0xb1   : > { %6621 = vsyncadd (%p7669_p2), [#allocation7], 4294965216  ;;  %p7670_p6 = pmov %p7669_p2 }
  0xb2   : > { %p7671_p10 = pmov %p7669_p2 }
  0xb3   : > { %6623 = dma.done.wait (%p7670_p6), [#allocation10], 4096  }
  0xb4   : > { %6625 = vsyncadd (%p7671_p10), [#allocation10], 4294963200  ;;  %p7672_p7 = pmov %p7669_p2 }
  0xb5   : > { %p7673_p11 = pmov %p7669_p2 }
  0xb6   : > { %6627 = dma.done.wait (%p7672_p7), [#allocation13], 10240  }
  0xb7   : > { %6629 = vsyncadd (%p7673_p11), [#allocation13], 4294957056  ;;  %p7674_p0 = pmov %p7669_p2 }
  0xb9   : > { %6631 = dma.done.wait (%p7674_p0), [#allocation16], 9216   ;;  %p7675_p13 = pmov %p7674_p0 }
  0xba   : > { %v713_v0 = vld [vmem:[%s6978_s3] sm:$0xff]  ;;  %v715_v1 = vld [vmem:[%s6978_s3 + $0x10] sm:$0xff]  ;;  %v714_v2 = vld [vmem:[%s6978_s3 + $0x8] sm:$0xff]  ;;  %s7676_s20 = sld [smem:[#allocation27_spill]]  ;;  %vm6671_vm0 = vmmov 0   ;;  %vm1151_vm1 = vcmask 523264  }
  0xbb   : > { %6633 = vsyncadd (%p7675_p13), [#allocation16], 4294958080  ;;  %726 = vadd.xlane.f32.xlu0 %v713_v0  ;;  %730 = vadd.xlane.f32.xlu1 %v715_v1  ;;  %v716_v3 = vld [vmem:[%s6978_s3 + $0x18] sm:$0xff]  ;;  %v6000_v24 = vld [vmem:[#allocation8 + $0x28] sm:$0xff]   ;;  %vm1203_vm3 = vcmask 130048   ;;  %s6672_s19 = smov 64  }
  0xbc   : > { %v5996_v20 = vld [vmem:[#allocation8 + $0x38] sm:$0xff]   ;;  %v5998_v22 = vld [vmem:[#allocation8 + $0x30] sm:$0xff]   ;;  %v6001_v25 = vld [vmem:[#allocation9 + $0x28] sm:$0xff]   ;;  %s7681_s21 = sld [smem:[#allocation34_spill]]  ;;  %s709_s18 = scalar_lea.vmem [#allocation18], %s5008_s12 }
  0xbd   : > { %v5997_v21 = vld [vmem:[#allocation9 + $0x38] sm:$0xff]   ;;  %5524 = vmatprep.subr.bf16.mxu0 %v5996_v20  ;;  %v5999_v23 = vld [vmem:[#allocation9 + $0x30] sm:$0xff]   ;;  %v6002_v26 = vld [vmem:[#allocation8 + $0x20] sm:$0xff]   ;;  %s7682_s26 = sld [smem:[#allocation35_spill]]  ;;  %s5269_s4 = sshll.u32 %s6793_s1, 9 }
  0xbe   : > { %5525 = vmatpush3.bf16.msra.mxu0 %v5996_v20  ;;  %5544 = vmatprep.subr.bf16.mxu1 %v5997_v21  ;;  %v6003_v27 = vld [vmem:[#allocation9 + $0x20] sm:$0xff]   ;;  %v6004_v28 = vld [vmem:[#allocation8 + $0x18] sm:$0xff]   ;;  %v6006_v30 = vld [vmem:[#allocation8 + $0x10] sm:$0xff]   ;;  %s7683_s0 = sld [smem:[#allocation36_spill]]  ;;  %s4831_s12 = scalar_lea.sflag [#allocation5], %s6972_s10 }
  0xbf   : > { %728 = vadd.xlane.f32.xlu0 %v714_v2  ;;  %732 = vadd.xlane.f32.xlu1 %v716_v3  ;;  %v6005_v29 = vld [vmem:[#allocation9 + $0x18] sm:$0xff]   ;;  %v6007_v31 = vld [vmem:[#allocation9 + $0x10] sm:$0xff]   ;;  %v6008_v32 = vld [vmem:[#allocation8 + $0x8] sm:$0xff]   ;;  %p7685_p8 = scmp.ne.s32.totalorder %s7662_s14, 0  ;;  %s6674_s1 = smov [#allocation18]  }
  0xc0   : > { %5545 = vmatpush3.bf16.msra.mxu1 %v5997_v21  ;;  %5526 = vmatprep.subr.bf16.mxu0 %v5998_v22  ;;  %v6009_v33 = vld [vmem:[#allocation9 + $0x8] sm:$0xff]   ;;  %v6010_v34 = vld [vmem:[#allocation8] sm:$0xff]   ;;  %v6012_v36 = vld [vmem:[#allocation11 + $0x38] sm:$0xff]  }
  0xc1   : > { %5546 = vmatprep.subr.bf16.mxu1 %v5999_v23  ;;  %v6011_v35 = vld [vmem:[#allocation9] sm:$0xff]   ;;  %v5018_v51 = vld [vmem:[#allocation6] ss:$0 sm:$0xff] }
  0xc2   : > { %5527 = vmatpush3.bf16.msra.mxu0 %v5998_v22  ;;  %v5019_v56 = vld [vmem:[%s7676_s20] ss:$0 sm:$0xff] }
  0xc3   : > { %5528 = vmatprep.subr.bf16.mxu0 %v6000_v24 }
  0xc4   : > { %5547 = vmatpush3.bf16.msra.mxu1 %v5999_v23 }
  0xc5   : > { %5548 = vmatprep.subr.bf16.mxu1 %v6001_v25 }
  0xc6   : > { %5529 = vmatpush3.bf16.msra.mxu0 %v6000_v24 }
  0xc7   : > { %5530 = vmatprep.subr.bf16.mxu0 %v6002_v26 }
  0xc8   : > { %5549 = vmatpush3.bf16.msra.mxu1 %v6001_v25 }
  0xc9   : > { %5550 = vmatprep.subr.bf16.mxu1 %v6003_v27 }
  0xca   : > { %5531 = vmatpush3.bf16.msra.mxu0 %v6002_v26 }
  0xcb   : > { %5532 = vmatprep.subr.bf16.mxu0 %v6004_v28 }
  0xcc   : > { %5551 = vmatpush3.bf16.msra.mxu1 %v6003_v27 }
  0xcd   : > { %5552 = vmatprep.subr.bf16.mxu1 %v6005_v29 }
  0xce   : > { %5533 = vmatpush3.bf16.msra.mxu0 %v6004_v28 }
  0xcf   : > { %5534 = vmatprep.subr.bf16.mxu0 %v6006_v30 }
  0xd0   : > { %5553 = vmatpush3.bf16.msra.mxu1 %v6005_v29 }
  0xd1   : > { %5554 = vmatprep.subr.bf16.mxu1 %v6007_v31 }
  0xd2   : > { %5535 = vmatpush3.bf16.msra.mxu0 %v6006_v30 }
  0xd3   : > { %5536 = vmatprep.subr.bf16.mxu0 %v6008_v32 }
  0xd4   : > { %5555 = vmatpush3.bf16.msra.mxu1 %v6007_v31 }
  0xd5   : > { %5556 = vmatprep.subr.bf16.mxu1 %v6009_v33 }
  0xd6   : > { %5537 = vmatpush3.bf16.msra.mxu0 %v6008_v32 }
  0xd7   : > { %5538 = vmatprep.subr.bf16.mxu0 %v6010_v34 }
  0xd8   : > { %5557 = vmatpush3.bf16.msra.mxu1 %v6009_v33  ;;  %v717_v33 = vlaneseq }
  0xd9   : > { %5558 = vmatprep.subr.bf16.mxu1 %v6011_v35 }
  0xda   : > { %5539 = vmatpush3.bf16.msra.mxu0 %v6010_v34 }
  0xdb   : > { %5564 = vmatprep.subr.bf16.mxu0 %v6012_v36 }
  0xdc   : > { %5559 = vmatpush3.bf16.msra.mxu1 %v6011_v35  ;;  %v7054_v35 = vshrl.u32 %v717_v33, 7 }
 0x144   : > { %v727_v4 = vpop.xlane.xlu0 %726  ;;  %v731_v5 = vpop.xlane.xlu1 %730 }
 0x145   : > { %v735_v6 = vmul.f32 0.0078125, %v727_v4  ;;  %v737_v7 = vmul.f32 0.0078125, %v731_v5  ;;  %v6013_v5 = vld [vmem:[#allocation11 + $0x30] sm:$0xff]  }
 0x147   : > { %v7004_v8 = vsub.f32 %v713_v0, %v735_v6  ;;  %v7006_v9 = vsub.f32 %v715_v1, %v737_v7  ;;  %v6014_v6 = vld [vmem:[#allocation11 + $0x28] sm:$0xff]   ;;  %v6015_v7 = vld [vmem:[#allocation11 + $0x20] sm:$0xff]  }
 0x148   : > { %v729_v10 = vpop.xlane.xlu0 %728  ;;  %v733_v11 = vpop.xlane.xlu1 %732 }
 0x149   : > { %v736_v12 = vmul.f32 0.0078125, %v729_v10  ;;  %v743_v13 = vmul.f32 %v7004_v8, %v7004_v8  ;;  %v738_v14 = vmul.f32 0.0078125, %v733_v11  ;;  %v745_v17 = vmul.f32 %v7006_v9, %v7006_v9  ;;  %v6018_v10 = vld [vmem:[#allocation11 + $0x8] sm:$0xff]   ;;  %v6019_v11 = vld [vmem:[#allocation11] sm:$0xff]  }
 0x14b   : > { %v7010_v15 = vsub.f32 %v714_v2, %v736_v12  ;;  %747 = vadd.xlane.f32.xlu0 %v743_v13  ;;  %v7012_v16 = vsub.f32 %v716_v3, %v738_v14  ;;  %v6670_v12 = vmov 0.0  }
 0x14c   : > { %5584 = vmatprep.subr.bf16.mxu1 %v6670_v12 }
 0x14d   : > { %v744_v18 = vmul.f32 %v7010_v15, %v7010_v15  ;;  %v746_v19 = vmul.f32 %v7012_v16, %v7012_v16 }
 0x14f   : > { %751 = vadd.xlane.f32.xlu0 %v745_v17  ;;  %749 = vadd.xlane.f32.xlu1 %v744_v18 }
 0x153   : > { %753 = vadd.xlane.f32.xlu1 %v746_v19 }
 0x1d4   : > { %v748_v37 = vpop.xlane.xlu0 %747 }
 0x1d5   : > { %v755_v38 = vmul.f32 0.0078125, %v748_v37 }
 0x1d7   : > { %v759_v39 = vadd.f32 1e-05, %v755_v38 }
 0x1d8   : > { %v750_v40 = vpop.xlane.xlu1 %749  ;;  %v752_v41 = vpop.xlane.xlu0 %751 }
 0x1d9   : > { %6228 = vrsqrt.f32 %v759_v39  ;;  %v756_v42 = vmul.f32 0.0078125, %v750_v40  ;;  %v757_v43 = vmul.f32 0.0078125, %v752_v41 }
 0x1db   : > { %v760_v44 = vadd.f32 1e-05, %v756_v42  ;;  %v761_v45 = vadd.f32 1e-05, %v757_v43  ;;  %v719_v43 = vadd.s32 8, %v7054_v35 }
 0x1dc   : > { %v754_v46 = vpop.xlane.xlu1 %753 }
 0x1dd   : > { %6230 = vrsqrt.f32 %v760_v44  ;;  %v758_v47 = vmul.f32 0.0078125, %v754_v46 }
 0x1de   : > { %6232 = vrsqrt.f32 %v761_v45 }
 0x1df   : > { %v762_v48 = vadd.f32 1e-05, %v758_v47 }
 0x1e1   : > { %6234 = vrsqrt.f32 %v762_v48 }
 0x1e6   : > { %v6229_v49 = vpop.eup %6228 }
 0x1e7   : > { %v767_v50 = vmul.f32 %v6229_v49, %v7004_v8  ;;  %v6016_v8 = vld [vmem:[#allocation11 + $0x18] sm:$0xff]  }
 0x1e9   : > { %v777_v55 = vmul.f32 %v5018_v51, %v767_v50 }
 0x1ea   : > { %v6231_v52 = vpop.eup %6230 }
 0x1eb   : > { %v6233_v53 = vpop.eup %6232  ;;  %v768_v54 = vmul.f32 %v6231_v52, %v7010_v15  ;;  %v787_v60 = vadd.f32 %v5019_v56, %v777_v55 }
 0x1ec   : > { %v769_v57 = vmul.f32 %v6233_v53, %v7006_v9  ;;  %v6017_v9 = vld [vmem:[#allocation11 + $0x10] sm:$0xff]  }
 0x1ed   : > { %v778_v58 = vmul.f32 %v5018_v51, %v768_v54 }
 0x1ee   : > { %v6235_v59 = vpop.eup %6234  ;;  %v779_v63 = vmul.f32 %v5018_v51, %v769_v57 }
 0x1ef   : > { %v788_v61 = vadd.f32 %v5019_v56, %v778_v58  ;;  %v770_v62 = vmul.f32 %v6235_v59, %v7012_v16 }
 0x1f0   : > { %v789_v2 = vadd.f32 %v5019_v56, %v779_v63 }
 0x1f1   : > { %v791_v0 = vpack.c.bf16 %v788_v61, %v787_v60  ;;  %v780_v1 = vmul.f32 %v5018_v51, %v770_v62 }
 0x1f3   : > { %5540 = vmatprep.mubr.bf16.mxu0 %v791_v0  ;;  %5560 = vmatprep.mubr.bf16.mxu1 %v791_v0  ;;  %v790_v3 = vadd.f32 %v5019_v56, %v780_v1 }
 0x1f5   : > { %v792_v4 = vpack.c.bf16 %v790_v3, %v789_v2 }
 0x1f7   : > { %5541 = vmatmul.mubr.bf16.vlgmr.msra.gmra.mxu0 %v792_v4  ;;  %5561 = vmatmul.mubr.bf16.vlgmr.msra.gmra.mxu1 %v792_v4 }
 0x1f8   : > { %5565 = vmatpush3.bf16.msra.mxu0 %v6012_v36  ;;  %5580 = vmatprep.mubr.bf16.mxu0 %v791_v0  ;;  %v721_v36 = vand.u32 127, %v717_v33 }
 0x1f9   : > { %5566 = vmatprep.subr.bf16.mxu0 %v6013_v5  ;;  %5586 = vmatprep.mubr.msk.bf16.mxu1 %vm6671_vm0, %v6670_v12 }
 0x1fa   : > { %vm7059_vm2 = vcmp.ge.s32.totalorder %v7054_v35, %v721_v36  ;;  %vm7067_vm4 = vcmp.ge.s32.totalorder %v719_v43, %v721_v36 }
 0x1fc   : > { %5567 = vmatpush3.bf16.msra.mxu0 %v6013_v5 }
 0x1fd   : > { %5568 = vmatprep.subr.bf16.mxu0 %v6014_v6 }
 0x200   : > { %5569 = vmatpush3.bf16.msra.mxu0 %v6014_v6 }
 0x201   : > { %5570 = vmatprep.subr.bf16.mxu0 %v6015_v7 }
 0x204   : > { %5571 = vmatpush3.bf16.msra.mxu0 %v6015_v7 }
 0x205   : > { %5572 = vmatprep.subr.bf16.mxu0 %v6016_v8 }
 0x208   : > { %5573 = vmatpush3.bf16.msra.mxu0 %v6016_v8 }
 0x209   : > { %5574 = vmatprep.subr.bf16.mxu0 %v6017_v9 }
 0x20c   : > { %5575 = vmatpush3.bf16.msra.mxu0 %v6017_v9 }
 0x20d   : > { %5576 = vmatprep.subr.bf16.mxu0 %v6018_v10 }
 0x210   : > { %5577 = vmatpush3.bf16.msra.mxu0 %v6018_v10 }
 0x211   : > { %5578 = vmatprep.subr.bf16.mxu0 %v6019_v11 }
 0x214   : > { %5579 = vmatpush3.bf16.msra.mxu0 %v6019_v11 }
 0x215   : > { %5632 = vmatprep.subr.bf16.mxu0 %v6670_v12 }
 0x217   : > { %5581 = vmatmul.mubr.bf16.vlgmr.msra.gmra.mxu0 %v792_v4 }
 0x218   : > { %5634 = vmatprep.mubr.msk.bf16.mxu0 %vm6671_vm0, %v6670_v12 }
 0x2b7   : > { %v5542_v13 = vpop.f32.mrf.mxu0  ;;  %v5562_v14 = vpop.f32.mrf.mxu1 }
 0x2b9   : > { %v1004_v15 = vpop.f32.mrf.mxu1  ;;  %v891_v16 = vpop.f32.mrf.mxu0 }
 0x2bb   : > { %v5563_v17 = vpop.f32.mrf.mxu1  ;;  %v5543_v22 = vpop.f32.mrf.mxu0 }
 0x2bc   : > { %v7033_v18 = vpack.c.bf16 %v5563_v17, %v5562_v14  ;;  %v1539_v25 = vpack.c.bf16 %v5543_v22, %v5542_v13 }
 0x2bd   : > { %v1007_v19 = vpop.f32.mrf.mxu1  ;;  %v894_v24 = vpop.f32.mrf.mxu0 }
 0x2be   : > { %v1546_v20 = vsel %vm1151_vm1, %v7033_v18, 0  ;;  %v1149_v21 = vpack.c.bf16 %v1007_v19, %v1004_v15  ;;  %v1148_v26 = vpack.c.bf16 %v894_v24, %v891_v16 }
 0x2bf   : > { %5633 = vmatpush3.bf16.xpose.msra.mxu0 %v1546_v20 }
 0x2c0   : > { %v1156_v23 = vsel %vm1151_vm1, %v1149_v21, 0  ;;  %5644 = vmatprep.subr.bf16.mxu0 %v6670_v12 }
 0x2c1   : > { %5585 = vmatpush3.bf16.xpose.msra.mxu1 %v1156_v23 }
 0x2c2   : > { %5590 = vmatprep.subr.bf16.mxu1 %v6670_v12 }
 0x2c6   : > { %5635 = vmatmul.mubr.msk.bf16.vlgmr.msra.gmra.mxu0 %vm1151_vm1, %v1539_v25 }
 0x2c7   : > { %5646 = vmatprep.mubr.msk.bf16.mxu0 %vm6671_vm0, %v6670_v12 }
 0x2c8   : > { %5587 = vmatmul.mubr.msk.bf16.vlgmr.msra.gmra.mxu1 %vm1151_vm1, %v1148_v26 }
 0x2c9   : > { %5592 = vmatprep.mubr.msk.bf16.mxu1 %vm6671_vm0, %v6670_v12 }
 0x2d7   : > { %v5582_v27 = vpop.f32.mrf.mxu0 }
 0x2d9   : > { %v1117_v28 = vpop.f32.mrf.mxu0 }
 0x2db   : > { %v5583_v29 = vpop.f32.mrf.mxu0 }
 0x2dc   : > { %v7046_v30 = vpack.c.bf16 %v5583_v29, %v5582_v27 }
 0x2dd   : > { %v1120_v31 = vpop.f32.mrf.mxu0 }
 0x2de   : > { %v7048_v32 = vpack.c.bf16 %v1120_v31, %v1117_v28 }
 0x2e0   : > { %5591 = vmatpush3.bf16.msra.mxu1 %v7048_v32 }
 0x2e1   : > { %5596 = vmatprep.subr.bf16.mxu1 %v6670_v12 }
 0x386   : > { %v7052_v34 = vpop.f32.mrf.mxu0 }
 0x387   : > { %v1589_v28 = vmul.f32 0.125, %v7052_v34 }
 0x388   : > { %v1192_v37 = vpop.f32.mrf.mxu1  ;;  %v5636_v38 = vpop.f32.mrf.mxu0 }
 0x389   : > { %v1199_v39 = vmul.f32 0.125, %v1192_v37  ;;  %v1591_v38 = vsel %vm7059_vm2, %v1589_v28, -1e+30 }
 0x38a   : > { %v5588_v40 = vpop.f32.mrf.mxu1  ;;  %v7056_v41 = vpop.f32.mrf.mxu0 }
 0x38b   : > { %v1201_v44 = vsel %vm7059_vm2, %v1199_v39, -1e+30  ;;  %v1590_v37 = vmul.f32 0.125, %v7056_v41  ;;  %v1593_v39 = vsel %vm1203_vm3, %v1591_v38, -inf }
 0x38c   : > { %v1195_v45 = vpop.f32.mrf.mxu1  ;;  %v5637_v46 = vpop.f32.mrf.mxu0  ;;  %v1204_v47 = vsel %vm1203_vm3, %v1201_v44, -inf }
 0x38d   : > { %v1200_v48 = vmul.f32 0.125, %v1195_v45  ;;  %1205 = vmax.xlane.f32.xlu0 %v1204_v47  ;;  %v1592_v34 = vsel %vm7067_vm4, %v1590_v37, -1e+30 }
 0x38e   : > { %v5589_v49 = vpop.f32.mrf.mxu1  ;;  %v1596_v43 = vsel %vm1203_vm3, %v1592_v34, -inf }
 0x38f   : > { %v1202_v51 = vsel %vm7067_vm4, %v1200_v48, -1e+30 }
 0x390   : > { %v1207_v52 = vsel %vm1203_vm3, %v1202_v51, -inf }
 0x391   : > { %1208 = vmax.xlane.f32.xlu1 %v1207_v52 }
 0x416   : > { %v1206_v53 = vpop.xlane.xlu0 %1205 }
 0x417   : > { %v1210_v54 = vsub.f32 %v1201_v44, %v1206_v53 }
 0x419   : > { %v1212_v55 = vmul.f32 1.442695, %v1210_v54 }
 0x41a   : > { %v1209_v56 = vpop.xlane.xlu1 %1208 }
 0x41b   : > { %6236 = vpow2.f32 %v1212_v55  ;;  %v1211_v57 = vsub.f32 %v1202_v51, %v1209_v56 }
 0x41d   : > { %v1214_v58 = vmul.f32 1.442695, %v1211_v57 }
 0x41f   : > { %6238 = vpow2.f32 %v1214_v58 }
 0x428   : > { %v6237_v59 = vpop.eup %6236 }
 0x429   : > { %v1216_v60 = vsel %vm1203_vm3, %v6237_v59, 0.0 }
 0x42a   : > { %1217 = vadd.xlane.f32.xlu0 %v1216_v60 }
 0x42c   : > { %v6239_v61 = vpop.eup %6238 }
 0x42d   : > { %v1219_v62 = vsel %vm1203_vm3, %v6239_v61, 0.0 }
 0x42e   : > { %1220 = vadd.xlane.f32.xlu1 %v1219_v62 }
 0x43f   : > { %1273 = vrot.lane.b32.xlu1 %v1148_v26, %s6672_s19 }
 0x440   : > { %1276 = vrot.lane.b32.xlu0 %v1149_v21, %s6672_s19 }
 0x443   : > { %1665 = vrot.lane.b32.xlu1 %v7033_v18, %s6672_s19 }
 0x447   : > { %1662 = vrot.lane.b32.xlu1 %v1539_v25, %s6672_s19 }
 0x4b3   : > { %v1218_v63 = vpop.xlane.xlu0 %1217 }
 0x4b4   : > { %6240 = vrcp.f32 %v1218_v63 }
 0x4b7   : > { %v1221_v0 = vpop.xlane.xlu1 %1220  ;;  %v1277_v8 = vpop.permute.xlu0 %1276 }
 0x4b8   : > { %6242 = vrcp.f32 %v1221_v0  ;;  %v1282_v11 = vsel %vm1151_vm1, %v1277_v8, 0 }
 0x4bb   : > { %v1274_v1 = vpop.permute.xlu1 %1273 }
 0x4bf   : > { %v1666_v2 = vpop.permute.xlu1 %1665 }
 0x4c0   : > { %v1671_v3 = vsel %vm1151_vm1, %v1666_v2, 0 }
 0x4c1   : > { %5645 = vmatpush3.bf16.xpose.msra.mxu0 %v1671_v3  ;;  %v6241_v4 = vpop.eup %6240 }
 0x4c2   : > { %5656 = vmatprep.subr.bf16.mxu0 %v6670_v12  ;;  %v1224_v6 = vmul.f32 %v6241_v4, %v6237_v59 }
 0x4c3   : > { %v1663_v9 = vpop.permute.xlu1 %1662 }
 0x4c5   : > { %v6243_v5 = vpop.eup %6242 }
 0x4c6   : > { %v1225_v7 = vmul.f32 %v6243_v5, %v6239_v61 }
 0x4c8   : > { %5647 = vmatmul.mubr.msk.bf16.vlgmr.msra.gmra.mxu0 %vm1151_vm1, %v1663_v9  ;;  %v1226_v10 = vpack.c.bf16 %v1225_v7, %v1224_v6 }
 0x4c9   : > { %5664 = vmatprep.mubr.msk.bf16.mxu0 %vm6671_vm0, %v6670_v12 }
 0x4ca   : > { %5593 = vmatmul.mubr.msk.bf16.vlgmr.msra.gmra.mxu1 %vm1203_vm3, %v1226_v10 }
 0x4cb   : > { %5597 = vmatpush3.bf16.xpose.msra.mxu1 %v1282_v11  ;;  %5598 = vmatprep.mubr.msk.bf16.mxu1 %vm6671_vm0, %v6670_v12 }
 0x4cc   : > { %5602 = vmatprep.subr.bf16.mxu1 %v6670_v12 }
 0x4d2   : > { %5599 = vmatmul.mubr.msk.bf16.vlgmr.msra.gmra.mxu1 %vm1151_vm1, %v1274_v1 }
 0x4d3   : > { %5604 = vmatprep.mubr.msk.bf16.mxu1 %vm6671_vm0, %v6670_v12 }
 0x588   : > { %v1707_v13 = vpop.f32.mrf.mxu0 }
 0x589   : > { %v1714_v40 = vmul.f32 0.125, %v1707_v13 }
 0x58a   : > { %v7094_v14 = vpop.f32.mrf.mxu1  ;;  %v5648_v15 = vpop.f32.mrf.mxu0 }
 0x58b   : > { %v1716_v45 = vsel %vm7059_vm2, %v1714_v40, -1e+30 }
 0x58c   : > { %v5594_v16 = vpop.f32.mrf.mxu1  ;;  %v1710_v17 = vpop.f32.mrf.mxu0  ;;  %v1718_v41 = vsel %vm1203_vm3, %v1716_v45, -inf }
 0x58d   : > { %v1715_v44 = vmul.f32 0.125, %v1710_v17  ;;  %v6020_v17 = vld [vmem:[#allocation12 + $0x38] sm:$0xff]  }
 0x58e   : > { %v7096_v18 = vpop.f32.mrf.mxu1  ;;  %v5649_v19 = vpop.f32.mrf.mxu0  ;;  %5657 = vmatpush3.bf16.msra.mxu0 %v6020_v17 }
 0x58f   : > { %v1271_v20 = vpack.c.bf16 %v7096_v18, %v7094_v14  ;;  %v1717_v46 = vsel %vm7067_vm4, %v1715_v44, -1e+30  ;;  %5658 = vmatprep.subr.bf16.mxu0 %v6670_v12  ;;  %v6021_v19 = vld [vmem:[#allocation12 + $0x30] sm:$0xff]   ;;  %v6026_v44 = vld [vmem:[#allocation12 + $0x8] sm:$0xff]  }
 0x590   : > { %v5595_v21 = vpop.f32.mrf.mxu1  ;;  %v1721_v47 = vsel %vm1203_vm3, %v1717_v46, -inf }
 0x592   : > { %v1318_v22 = vpop.f32.mrf.mxu1  ;;  %5659 = vmatpush3.bf16.msra.mxu0 %v6021_v19 }
 0x593   : > { %v1325_v23 = vmul.f32 0.125, %v1318_v22  ;;  %5660 = vmatprep.subr.bf16.mxu0 %v6670_v12 }
 0x594   : > { %v5600_v24 = vpop.f32.mrf.mxu1 }
 0x595   : > { %v1327_v25 = vsel %vm7059_vm2, %v1325_v23, -1e+30 }
 0x596   : > { %v1321_v26 = vpop.f32.mrf.mxu1  ;;  %v1329_v27 = vsel %vm1203_vm3, %v1327_v25, -inf }
 0x597   : > { %v1326_v29 = vmul.f32 0.125, %v1321_v26  ;;  %1330 = vmax.xlane.f32.xlu0 %v1329_v27 }
 0x598   : > { %v5601_v31 = vpop.f32.mrf.mxu1 }
 0x599   : > { %v1328_v33 = vsel %vm7067_vm4, %v1326_v29, -1e+30  ;;  %v6023_v29 = vld [vmem:[#allocation12 + $0x20] sm:$0xff]  }
 0x59a   : > { %v1332_v36 = vsel %vm1203_vm3, %v1328_v33, -inf }
 0x59b   : > { %1333 = vmax.xlane.f32.xlu1 %v1332_v36 }
 0x59f   : > { %1594 = vmax.xlane.f32.xlu1 %v1593_v39 }
 0x5a3   : > { %1597 = vmax.xlane.f32.xlu1 %v1596_v43  ;;  %v6025_v43 = vld [vmem:[#allocation12 + $0x10] sm:$0xff]  }
 0x5a7   : > { %1719 = vmax.xlane.f32.xlu1 %v1718_v41 }
 0x5ab   : > { %1722 = vmax.xlane.f32.xlu1 %v1721_v47 }
 0x620   : > { %v1331_v48 = vpop.xlane.xlu0 %1330 }
 0x621   : > { %v1335_v49 = vsub.f32 %v1327_v25, %v1331_v48 }
 0x623   : > { %v1337_v51 = vmul.f32 1.442695, %v1335_v49 }
 0x624   : > { %v1334_v52 = vpop.xlane.xlu1 %1333 }
 0x625   : > { %6244 = vpow2.f32 %v1337_v51  ;;  %v1336_v53 = vsub.f32 %v1328_v33, %v1334_v52 }
 0x627   : > { %v1339_v54 = vmul.f32 1.442695, %v1336_v53 }
 0x628   : > { %v1595_v55 = vpop.xlane.xlu1 %1594 }
 0x629   : > { %6246 = vpow2.f32 %v1339_v54  ;;  %v1599_v56 = vsub.f32 %v1591_v38, %v1595_v55  ;;  %v6024_v38 = vld [vmem:[#allocation12 + $0x18] sm:$0xff]  }
 0x62b   : > { %v1601_v57 = vmul.f32 1.442695, %v1599_v56 }
 0x62c   : > { %v1598_v58 = vpop.xlane.xlu1 %1597 }
 0x62d   : > { %6248 = vpow2.f32 %v1601_v57  ;;  %v1600_v59 = vsub.f32 %v1592_v34, %v1598_v58 }
 0x62f   : > { %v1603_v60 = vmul.f32 1.442695, %v1600_v59 }
 0x630   : > { %v1720_v61 = vpop.xlane.xlu1 %1719 }
 0x631   : > { %6250 = vpow2.f32 %v1603_v60  ;;  %v1724_v11 = vsub.f32 %v1716_v45, %v1720_v61 }
 0x632   : > { %v6245_v62 = vpop.eup %6244 }
 0x633   : > { %v1341_v63 = vsel %vm1203_vm3, %v6245_v62, 0.0  ;;  %v1726_v13 = vmul.f32 1.442695, %v1724_v11 }
 0x634   : > { %1342 = vadd.xlane.f32.xlu0 %v1341_v63  ;;  %v1723_v0 = vpop.xlane.xlu1 %1722  ;;  %v6332_v63 = vld [vmem:[%s6978_s3] sm:$0xff] }
 0x635   : > { %v1725_v1 = vsub.f32 %v1717_v46, %v1723_v0  ;;  %v6027_v46 = vld [vmem:[#allocation12] sm:$0xff]  }
 0x636   : > { %v6247_v2 = vpop.eup %6246 }
 0x637   : > { %v1728_v3 = vmul.f32 1.442695, %v1725_v1  ;;  %v1344_v4 = vsel %vm1203_vm3, %v6247_v2, 0.0 }
 0x638   : > { %1345 = vadd.xlane.f32.xlu0 %v1344_v4 }
 0x639   : > { %6252 = vpow2.f32 %v1728_v3 }
 0x63a   : > { %v7122_v5 = vpop.eup %6248  ;;  %6254 = vpow2.f32 %v1726_v13 }
 0x63b   : > { %v1605_v6 = vsel %vm1203_vm3, %v7122_v5, 0.0 }
 0x63c   : > { %1606 = vadd.xlane.f32.xlu1 %v1605_v6 }
 0x63e   : > { %v7126_v7 = vpop.eup %6250 }
 0x63f   : > { %v1608_v8 = vsel %vm1203_vm3, %v7126_v7, 0.0 }
 0x640   : > { %1609 = vadd.xlane.f32.xlu1 %v1608_v8 }
 0x646   : > { %v7130_v9 = vpop.eup %6252 }
 0x647   : > { %v1733_v10 = vsel %vm1203_vm3, %v7130_v9, 0.0  ;;  %v7138_v15 = vpop.eup %6254 }
 0x648   : > { %1734 = vadd.xlane.f32.xlu1 %v1733_v10  ;;  %v1730_v16 = vsel %vm1203_vm3, %v7138_v15, 0.0 }
 0x64e   : > { %1353 = vrot.lane.b32.xlu0 %v7048_v32, %s6672_s19  ;;  %v6022_v32 = vld [vmem:[#allocation12 + $0x28] sm:$0xff]  }
 0x64f   : > { %5661 = vmatpush3.bf16.msra.mxu0 %v6022_v32 }
 0x650   : > { %5662 = vmatprep.subr.bf16.mxu0 %v6670_v12 }
 0x653   : > { %5663 = vmatpush3.bf16.msra.mxu0 %v6023_v29 }
 0x659   : > { %1742 = vrot.lane.b32.xlu1 %v7046_v30, %s6672_s19 }
 0x66d   : > { %1731 = vadd.xlane.f32.xlu0 %v1730_v16 }
 0x6bd   : > { %v1343_v21 = vpop.xlane.xlu0 %1342 }
 0x6be   : > { %6256 = vrcp.f32 %v1343_v21 }
 0x6c1   : > { %v1346_v22 = vpop.xlane.xlu0 %1345 }
 0x6c2   : > { %6258 = vrcp.f32 %v1346_v22 }
 0x6c5   : > { %v1354_v23 = vpop.permute.xlu0 %1353  ;;  %v1607_v31 = vpop.xlane.xlu1 %1606 }
 0x6c6   : > { %5603 = vmatpush3.bf16.msra.mxu1 %v1354_v23 }
 0x6c7   : > { %5608 = vmatprep.subr.bf16.mxu1 %v6670_v12 }
 0x6c9   : > { %v1610_v40 = vpop.xlane.xlu1 %1609 }
 0x6ca   : > { %6260 = vrcp.f32 %v1610_v40 }
 0x6cb   : > { %v6257_v24 = vpop.eup %6256  ;;  %6262 = vrcp.f32 %v1607_v31 }
 0x6cc   : > { %v1349_v26 = vmul.f32 %v6257_v24, %v6245_v62  ;;  %v5064_v62 = vld [vmem:[%s7617_s7] ss:$0 sm:$0xff] }
 0x6cf   : > { %v6259_v25 = vpop.eup %6258 }
 0x6d0   : > { %v1350_v27 = vmul.f32 %v6259_v25, %v6247_v2 }
 0x6d1   : > { %v1735_v41 = vpop.xlane.xlu1 %1734 }
 0x6d2   : > { %v1351_v28 = vpack.c.bf16 %v1350_v27, %v1349_v26 }
 0x6d4   : > { %5605 = vmatmul.mubr.msk.bf16.vlgmr.msra.gmra.mxu1 %vm1203_vm3, %v1351_v28 }
 0x6d5   : > { %5609 = vmatpush3.bf16.msra.mxu1 %v6020_v17  ;;  %5616 = vmatprep.mubr.msk.bf16.mxu1 %vm6671_vm0, %v6670_v12  ;;  %v1743_v54 = vpop.permute.xlu1 %1742 }
 0x6d6   : > { %5610 = vmatprep.subr.bf16.mxu1 %v6670_v12 }
 0x6d7   : > { %v6261_v47 = vpop.eup %6260 }
 0x6d8   : > { %v6263_v48 = vpop.eup %6262  ;;  %v1614_v49 = vmul.f32 %v6261_v47, %v7126_v7 }
 0x6d9   : > { %5611 = vmatpush3.bf16.msra.mxu1 %v6021_v19  ;;  %v1613_v51 = vmul.f32 %v6263_v48, %v7122_v5  ;;  %v6333_v5 = vld [vmem:[%s6978_s3 + $0x8] sm:$0xff] }
 0x6da   : > { %5612 = vmatprep.subr.bf16.mxu1 %v6670_v12 }
 0x6db   : > { %v1615_v52 = vpack.c.bf16 %v1614_v49, %v1613_v51  ;;  %v6030_v49 = vld [vmem:[#allocation14 + $0xe4] ss:$16 sps:$4 sm:$0xff]   ;;  %v6033_v51 = vld [vmem:[#allocation14 + $0xec] ss:$16 sps:$4 sm:$0xff]  }
 0x6dc   : > { %2181 = vmatprep.subr.bf16.mxu0 %v6030_v49 }
 0x6dd   : > { %5613 = vmatpush3.bf16.msra.mxu1 %v6022_v32 }
 0x6de   : > { %5614 = vmatprep.subr.bf16.mxu1 %v6670_v12 }
 0x6e1   : > { %5615 = vmatpush3.bf16.msra.mxu1 %v6023_v29  ;;  %v6334_v29 = vld [vmem:[%s6978_s3 + $0x10] sm:$0xff] }
 0x6e2   : > { %5620 = vmatprep.subr.bf16.mxu1 %v6670_v12 }
 0x6f6   : > { %v1732_v45 = vpop.xlane.xlu0 %1731 }
 0x6f7   : > { %6264 = vrcp.f32 %v1732_v45 }
 0x6f8   : > { %6266 = vrcp.f32 %v1735_v41 }
 0x704   : > { %v6265_v53 = vpop.eup %6264 }
 0x705   : > { %v6267_v14 = vpop.eup %6266 }
 0x706   : > { %v1739_v18 = vmul.f32 %v6267_v14, %v7130_v9  ;;  %v6039_v14 = vld [vmem:[#allocation14 + $0xcc] ss:$16 sps:$4 sm:$0xff]  }
 0x794   : > { %v1393_v33 = vpop.f32.mrf.mxu1 }
 0x796   : > { %v5606_v36 = vpop.f32.mrf.mxu1 }
 0x798   : > { %v1396_v37 = vpop.f32.mrf.mxu1 }
 0x799   : > { %v1400_v39 = vpack.c.bf16 %v1396_v37, %v1393_v33 }
 0x79a   : > { %v5607_v34 = vpop.f32.mrf.mxu1 }
 0x79b   : > { %5617 = vmatmul.mubr.msk.bf16.vlgmr.msra.gmra.mxu1 %vm1151_vm1, %v1400_v39  ;;  %v6335_v34 = vld [vmem:[%s6978_s3 + $0x18] sm:$0xff]  ;;  %s4844_s3 = sshll.u32 %s709_s18, 4  ;;  %s7562_s3 = int_to_ptr.vmem [resolvable:$true] %s4844_s3 }
 0x79c   : > { %5621 = vmatpush3.bf16.msra.mxu1 %v6024_v38  ;;  %5628 = vmatprep.mubr.msk.bf16.mxu1 %vm6671_vm0, %v6670_v12 }
 0x79d   : > { %5622 = vmatprep.subr.bf16.mxu1 %v6670_v12 }
 0x7a0   : > { %5623 = vmatpush3.bf16.msra.mxu1 %v6025_v43 }
 0x7a1   : > { %5624 = vmatprep.subr.bf16.mxu1 %v6670_v12 }
 0x7a4   : > { %5625 = vmatpush3.bf16.msra.mxu1 %v6026_v44 }
 0x7a5   : > { %5626 = vmatprep.subr.bf16.mxu1 %v6670_v12 }
 0x7a8   : > { %5627 = vmatpush3.bf16.msra.mxu1 %v6027_v46 }
 0x7a9   : > { %5638 = vmatprep.subr.bf16.mxu1 %v6670_v12 }
 0x7ab   : > { %5629 = vmatmul.mubr.msk.bf16.vlgmr.msra.gmra.mxu1 %vm1151_vm1, %v1271_v20 }
 0x7ac   : > { %5639 = vmatpush3.bf16.msra.mxu1 %v7046_v30  ;;  %5640 = vmatprep.mubr.msk.bf16.mxu1 %vm6671_vm0, %v6670_v12  ;;  %v1738_v30 = vmul.f32 %v6265_v53, %v7138_v15  ;;  %v6031_v53 = vld [vmem:[#allocation14 + $0xe8] ss:$16 sps:$4 sm:$0xff]  }
 0x7ad   : > { %5650 = vmatprep.subr.bf16.mxu1 %v6670_v12 }
 0x7ae   : > { %v1740_v20 = vpack.c.bf16 %v1739_v18, %v1738_v30  ;;  %v6034_v30 = vld [vmem:[#allocation14 + $0xc0] ss:$16 sps:$4 sm:$0xff]   ;;  %v6037_v18 = vld [vmem:[#allocation14 + $0xc8] ss:$16 sps:$4 sm:$0xff]  }
 0x7b3   : > { %5641 = vmatmul.mubr.msk.bf16.vlgmr.msra.gmra.mxu1 %vm1203_vm3, %v1615_v52  ;;  %v6028_v52 = vld [vmem:[#allocation14 + $0xe0] ss:$16 sps:$4 sm:$0xff]  }
 0x7b4   : > { %5651 = vmatpush3.bf16.msra.mxu1 %v1743_v54  ;;  %5652 = vmatprep.mubr.msk.bf16.mxu1 %vm6671_vm0, %v6670_v12  ;;  %v6036_v54 = vld [vmem:[#allocation14 + $0xc4] ss:$16 sps:$4 sm:$0xff]  }
 0x7b5   : > { %5668 = vmatprep.subr.bf16.mxu1 %v6670_v12 }
 0x7bb   : > { %5653 = vmatmul.mubr.msk.bf16.vlgmr.msra.gmra.mxu1 %vm1203_vm3, %v1740_v20  ;;  %v6042_v20 = vld [vmem:[#allocation14 + $0xa4] ss:$16 sps:$4 sm:$0xff]  }
 0x7bc   : > { %5669 = vmatpush3.bf16.msra.mxu1 %v6024_v38  ;;  %5676 = vmatprep.mubr.msk.bf16.mxu1 %vm6671_vm0, %v6670_v12 }
 0x7bd   : > { %5670 = vmatprep.subr.bf16.mxu1 %v6670_v12 }
 0x7c0   : > { %5671 = vmatpush3.bf16.msra.mxu1 %v6025_v43 }
 0x7c1   : > { %5672 = vmatprep.subr.bf16.mxu1 %v6670_v12 }
 0x7c4   : > { %5673 = vmatpush3.bf16.msra.mxu1 %v6026_v44 }
 0x7c5   : > { %5674 = vmatprep.subr.bf16.mxu1 %v6670_v12 }
 0x7c8   : > { %5675 = vmatpush3.bf16.msra.mxu1 %v6027_v46 }
 0x7c9   : > { %2234 = vmatprep.subr.bf16.mxu1 %v6033_v51 }
 0x85b   : > { %v1462_v55 = vpop.f32.mrf.mxu1 }
 0x85d   : > { %v5618_v56 = vpop.f32.mrf.mxu1 }
 0x85e   : > { %v6040_v56 = vld [vmem:[#allocation14 + $0xa0] ss:$16 sps:$4 sm:$0xff]  }
 0x85f   : > { %v1465_v57 = vpop.f32.mrf.mxu1 }
 0x861   : > { %v5619_v58 = vpop.f32.mrf.mxu1 }
 0x862   : > { %v6046_v58 = vld [vmem:[#allocation14 + $0x80] ss:$16 sps:$4 sm:$0xff]  }
 0x86b   : > { %v1530_v59 = vpop.f32.mrf.mxu1 }
 0x86c   : > { %v1531_v60 = vadd.f32 %v1530_v59, %v1462_v55  ;;  %v6045_v55 = vld [vmem:[#allocation14 + $0xac] ss:$16 sps:$4 sm:$0xff]   ;;  %v6048_v59 = vld [vmem:[#allocation14 + $0x84] ss:$16 sps:$4 sm:$0xff]  }
 0x86d   : > { %v5630_v61 = vpop.f32.mrf.mxu1 }
 0x86e   : > { %v1884_v0 = vadd.f32 %v6332_v63, %v1531_v60  ;;  %v6049_v60 = vld [vmem:[#allocation14 + $0x88] ss:$16 sps:$4 sm:$0xff]   ;;  %v6051_v61 = vld [vmem:[#allocation14 + $0x8c] ss:$16 sps:$4 sm:$0xff]  }
 0x86f   : > { %v1533_v1 = vpop.f32.mrf.mxu1  ;;  %v6057_v63 = vld [vmem:[#allocation14 + $0x6c] ss:$16 sps:$4 sm:$0xff]  }
 0x870   : > { %v1534_v2 = vadd.f32 %v1533_v1, %v1465_v57  ;;  %v7186_v3 = vadd.f32 %v5064_v62, %v1884_v0  ;;  %v6043_v57 = vld [vmem:[#allocation14 + $0xa8] ss:$16 sps:$4 sm:$0xff]   ;;  %v6052_v0 = vld [vmem:[#allocation14 + $0x60] ss:$16 sps:$4 sm:$0xff]  }
 0x871   : > { %v5631_v4 = vpop.f32.mrf.mxu1  ;;  %v6055_v1 = vld [vmem:[#allocation14 + $0x68] ss:$16 sps:$4 sm:$0xff]  }
 0x872   : > { %v1885_v6 = vadd.f32 %v6333_v5, %v1534_v2  ;;  %1901 = vadd.xlane.f32.xlu1 %v7186_v3  ;;  %v6060_v2 = vld [vmem:[#allocation14 + $0x44] ss:$16 sps:$4 sm:$0xff]   ;;  %v6063_v4 = vld [vmem:[#allocation14 + $0x4c] ss:$16 sps:$4 sm:$0xff]   ;;  %v6673_v5 = vmov 0  }
 0x873   : > { %v1653_v7 = vpop.f32.mrf.mxu1 }
 0x874   : > { %v7190_v8 = vadd.f32 %v5064_v62, %v1885_v6  ;;  %v6058_v6 = vld [vmem:[#allocation14 + $0x40] ss:$16 sps:$4 sm:$0xff]  }
 0x875   : > { %v5642_v9 = vpop.f32.mrf.mxu1 }
 0x876   : > { %1903 = vadd.xlane.f32.xlu0 %v7190_v8  ;;  %v6066_v9 = vld [vmem:[#allocation14 + $0x24] ss:$16 sps:$4 sm:$0xff]  }
 0x877   : > { %v1656_v10 = vpop.f32.mrf.mxu1 }
 0x878   : > { %v1660_v11 = vpack.c.bf16 %v1656_v10, %v1653_v7  ;;  %v6061_v7 = vld [vmem:[#allocation14 + $0x48] ss:$16 sps:$4 sm:$0xff]   ;;  %v6069_v10 = vld [vmem:[#allocation14 + $0x2c] ss:$16 sps:$4 sm:$0xff]  }
 0x879   : > { %v5643_v13 = vpop.f32.mrf.mxu1 }
 0x87a   : > { %5677 = vmatmul.mubr.msk.bf16.vlgmr.msra.gmra.mxu1 %vm1151_vm1, %v1660_v11  ;;  %v6064_v11 = vld [vmem:[#allocation14 + $0x20] ss:$16 sps:$4 sm:$0xff]   ;;  %v6067_v13 = vld [vmem:[#allocation14 + $0x28] ss:$16 sps:$4 sm:$0xff]  }
 0x87b   : > { %v1782_v15 = vpop.f32.mrf.mxu1  ;;  %2235 = vmatpush1.bf16.msra.mxu1 %v6031_v53  ;;  %2266 = vmatprep.mubr.bf16.mxu1 %v6673_v5  ;;  %v6077_v53 = vld [vmem:[#allocation15 + $0xf8] sm:$0xff]  }
 0x87c   : > { %2236 = vmatprep.subr.bf16.mxu1 %v6039_v14  ;;  %v6079_v14 = vld [vmem:[#allocation15 + $0xb8] sm:$0xff]  }
 0x87d   : > { %v5654_v16 = vpop.f32.mrf.mxu1 }
 0x87e   : > { %v6075_v16 = vld [vmem:[#allocation14 + $0xc] ss:$16 sps:$4 sm:$0xff]  }
 0x87f   : > { %v1785_v17 = vpop.f32.mrf.mxu1  ;;  %2237 = vmatpush1.bf16.msra.mxu1 %v6037_v18  ;;  %v6081_v18 = vld [vmem:[#allocation15 + $0xf0] sm:$0xff]  }
 0x880   : > { %v1789_v19 = vpack.c.bf16 %v1785_v17, %v1782_v15  ;;  %2238 = vmatprep.subr.bf16.mxu1 %v6045_v55  ;;  %v6072_v15 = vld [vmem:[#allocation14 + $0x4] ss:$16 sps:$4 sm:$0xff]   ;;  %v6070_v17 = vld [vmem:[#allocation14] ss:$16 sps:$4 sm:$0xff]  }
 0x881   : > { %v5655_v32 = vpop.f32.mrf.mxu1  ;;  %v6083_v55 = vld [vmem:[#allocation15 + $0xb0] sm:$0xff]  }
 0x882   : > { %5665 = vmatmul.mubr.msk.bf16.vlgmr.msra.gmra.mxu0 %vm1151_vm1, %v1789_v19  ;;  %v6073_v19 = vld [vmem:[#allocation14 + $0x8] ss:$16 sps:$4 sm:$0xff]  }
 0x883   : > { %2182 = vmatpush1.bf16.msra.mxu0 %v6028_v52  ;;  %2239 = vmatpush1.bf16.msra.mxu1 %v6043_v57  ;;  %v6085_v57 = vld [vmem:[#allocation15 + $0xe8] sm:$0xff]  }
 0x884   : > { %2183 = vmatprep.subr.bf16.mxu0 %v6036_v54  ;;  %2240 = vmatprep.subr.bf16.mxu1 %v6051_v61  ;;  %v6078_v54 = vld [vmem:[#allocation15 + $0x38] sm:$0xff]   ;;  %v6089_v61 = vld [vmem:[#allocation15 + $0xe0] sm:$0xff]  }
 0x885   : > { %2213 = vmatprep.mubr.bf16.mxu0 %v6673_v5 }
 0x887   : > { %2184 = vmatpush1.bf16.msra.mxu0 %v6034_v30  ;;  %2241 = vmatpush1.bf16.msra.mxu1 %v6049_v60  ;;  %v6080_v30 = vld [vmem:[#allocation15 + $0x70] sm:$0xff]   ;;  %v6088_v60 = vld [vmem:[#allocation15 + $0x60] sm:$0xff]  }
 0x888   : > { %2185 = vmatprep.subr.bf16.mxu0 %v6042_v20  ;;  %2242 = vmatprep.subr.bf16.mxu1 %v6057_v63  ;;  %v6082_v20 = vld [vmem:[#allocation15 + $0x30] sm:$0xff]   ;;  %v6091_v63 = vld [vmem:[#allocation15 + $0xa0] sm:$0xff]  }
 0x88b   : > { %2186 = vmatpush1.bf16.msra.mxu0 %v6040_v56  ;;  %2243 = vmatpush1.bf16.msra.mxu1 %v6055_v1  ;;  %v6084_v56 = vld [vmem:[#allocation15 + $0x68] sm:$0xff]   ;;  %v6093_v1 = vld [vmem:[#allocation15 + $0xd8] sm:$0xff]  }
 0x88c   : > { %2187 = vmatprep.subr.bf16.mxu0 %v6048_v59  ;;  %2244 = vmatprep.subr.bf16.mxu1 %v6063_v4  ;;  %v6087_v59 = vld [vmem:[#allocation15 + $0xa8] sm:$0xff]   ;;  %v6095_v4 = vld [vmem:[#allocation15 + $0x98] sm:$0xff]  }
 0x88f   : > { %2188 = vmatpush1.bf16.msra.mxu0 %v6046_v58  ;;  %2245 = vmatpush1.bf16.msra.mxu1 %v6061_v7  ;;  %v6086_v58 = vld [vmem:[#allocation15 + $0x28] sm:$0xff]   ;;  %v6097_v7 = vld [vmem:[#allocation15 + $0xd0] sm:$0xff]  }
 0x890   : > { %2246 = vmatprep.subr.bf16.mxu1 %v6069_v10  ;;  %v6099_v10 = vld [vmem:[#allocation15 + $0x90] sm:$0xff]  }
 0x893   : > { %2247 = vmatpush1.bf16.msra.mxu1 %v6067_v13  ;;  %v6101_v13 = vld [vmem:[#allocation15 + $0xc8] sm:$0xff]  }
 0x894   : > { %2248 = vmatprep.subr.bf16.mxu1 %v6075_v16  ;;  %v6103_v16 = vld [vmem:[#allocation15 + $0x88] sm:$0xff]  }
 0x897   : > { %2249 = vmatpush1.bf16.msra.mxu1 %v6073_v19  ;;  %v6105_v19 = vld [vmem:[#allocation15 + $0xc0] sm:$0xff]  }
 0x898   : > { %5364 = vmatprep.subr.bf16.mxu1 %v6077_v53 }
 0x8fb   : > { %v1902_v27 = vpop.xlane.xlu1 %1901 }
 0x8fc   : > { %v1909_v36 = vmul.f32 0.0078125, %v1902_v27 }
 0x8fe   : > { %v7201_v44 = vsub.f32 %v7186_v3, %v1909_v36 }
 0x8ff   : > { %v1904_v39 = vpop.xlane.xlu0 %1903 }
 0x900   : > { %v1910_v45 = vmul.f32 0.0078125, %v1904_v39  ;;  %v1917_v47 = vmul.f32 %v7201_v44, %v7201_v44 }
 0x902   : > { %v7207_v46 = vsub.f32 %v7190_v8, %v1910_v45 }
 0x904   : > { %v1918_v48 = vmul.f32 %v7207_v46, %v7207_v46 }
 0x93a   : > { %v1871_v21 = vpop.f32.mrf.mxu1 }
 0x93c   : > { %v5678_v22 = vpop.f32.mrf.mxu1 }
 0x93e   : > { %v1874_v23 = vpop.f32.mrf.mxu1 }
 0x940   : > { %v5679_v24 = vpop.f32.mrf.mxu1 }
 0x942   : > { %v1827_v25 = vpop.f32.mrf.mxu0 }
 0x943   : > { %v1872_v26 = vadd.f32 %v1871_v21, %v1827_v25 }
 0x944   : > { %v5666_v28 = vpop.f32.mrf.mxu0 }
 0x945   : > { %v1886_v31 = vadd.f32 %v6334_v29, %v1872_v26 }
 0x946   : > { %v1830_v33 = vpop.f32.mrf.mxu0 }
 0x947   : > { %v1875_v37 = vadd.f32 %v1874_v23, %v1830_v33  ;;  %v7196_v38 = vadd.f32 %v5064_v62, %v1886_v31 }
 0x948   : > { %v5667_v40 = vpop.f32.mrf.mxu0 }
 0x949   : > { %v1887_v43 = vadd.f32 %v6335_v34, %v1875_v37  ;;  %1905 = vadd.xlane.f32.xlu0 %v7196_v38  ;;  %v7229_v34 = vld [vmem:[%s7618_s8] ss:$0 sm:$0xff] }
 0x94b   : > { %v7203_v41 = vadd.f32 %v5064_v62, %v1887_v43  ;;  %v6054_v62 = vld [vmem:[#allocation14 + $0x64] ss:$16 sps:$4 sm:$0xff]  }
 0x94c   : > { %2189 = vmatprep.subr.bf16.mxu0 %v6054_v62  ;;  %v6090_v62 = vld [vmem:[#allocation15 + $0x20] sm:$0xff]  }
 0x94d   : > { %1907 = vadd.xlane.f32.xlu0 %v7203_v41  ;;  %2190 = vmatpush1.bf16.msra.mxu0 %v6052_v0  ;;  %v6092_v0 = vld [vmem:[#allocation15 + $0x58] sm:$0xff]  }
 0x94e   : > { %2191 = vmatprep.subr.bf16.mxu0 %v6060_v2  ;;  %v6094_v2 = vld [vmem:[#allocation15 + $0x18] sm:$0xff]  }
 0x951   : > { %1921 = vadd.xlane.f32.xlu0 %v1917_v47  ;;  %2192 = vmatpush1.bf16.msra.mxu0 %v6058_v6  ;;  %v6096_v6 = vld [vmem:[#allocation15 + $0x50] sm:$0xff]  }
 0x952   : > { %2193 = vmatprep.subr.bf16.mxu0 %v6066_v9  ;;  %v6098_v9 = vld [vmem:[#allocation15 + $0x10] sm:$0xff]  }
 0x955   : > { %1923 = vadd.xlane.f32.xlu0 %v1918_v48  ;;  %2194 = vmatpush1.bf16.msra.mxu0 %v6064_v11  ;;  %v7236_v48 = vld [vmem:[%s7619_s9] ss:$0 sm:$0xff]  ;;  %v6100_v11 = vld [vmem:[#allocation15 + $0x48] sm:$0xff]  }
 0x956   : > { %2195 = vmatprep.subr.bf16.mxu0 %v6072_v15  ;;  %v6102_v15 = vld [vmem:[#allocation15 + $0x8] sm:$0xff]  }
 0x959   : > { %2196 = vmatpush1.bf16.msra.mxu0 %v6070_v17  ;;  %v6104_v17 = vld [vmem:[#allocation15 + $0x40] sm:$0xff]  }
 0x9d2   : > { %v1906_v32 = vpop.xlane.xlu0 %1905 }
 0x9d3   : > { %v1911_v21 = vmul.f32 0.0078125, %v1906_v32  ;;  %v6106_v32 = vld [vmem:[#allocation15] sm:$0xff]  }
 0x9d5   : > { %v7216_v22 = vsub.f32 %v7196_v38, %v1911_v21  ;;  %v6107_v21 = vld [vmem:[#allocation15 + $0x80] sm:$0xff]  }
 0x9d6   : > { %v1908_v23 = vpop.xlane.xlu0 %1907 }
 0x9d7   : > { %v1912_v24 = vmul.f32 0.0078125, %v1908_v23  ;;  %v1919_v25 = vmul.f32 %v7216_v22, %v7216_v22 }
 0x9d9   : > { %v7221_v26 = vsub.f32 %v7203_v41, %v1912_v24  ;;  %1925 = vadd.xlane.f32.xlu0 %v1919_v25 }
 0x9da   : > { %v1922_v27 = vpop.xlane.xlu0 %1921 }
 0x9db   : > { %v1929_v28 = vmul.f32 0.0078125, %v1922_v27  ;;  %v1920_v29 = vmul.f32 %v7221_v26, %v7221_v26 }
 0x9dd   : > { %v1933_v31 = vadd.f32 1e-05, %v1929_v28  ;;  %1927 = vadd.xlane.f32.xlu0 %v1920_v29 }
 0x9de   : > { %v1924_v33 = vpop.xlane.xlu0 %1923 }
 0x9df   : > { %6268 = vrsqrt.f32 %v1933_v31  ;;  %v1930_v36 = vmul.f32 0.0078125, %v1924_v33 }
 0x9e1   : > { %v1934_v37 = vadd.f32 1e-05, %v1930_v36 }
 0x9e3   : > { %6270 = vrsqrt.f32 %v1934_v37 }
 0x9ec   : > { %v6269_v39 = vpop.eup %6268 }
 0x9ed   : > { %v1941_v40 = vmul.f32 %v6269_v39, %v7201_v44 }
 0x9ef   : > { %v1951_v47 = vmul.f32 %v7229_v34, %v1941_v40 }
 0x9f0   : > { %v6271_v43 = vpop.eup %6270 }
 0x9f1   : > { %v1942_v45 = vmul.f32 %v6271_v43, %v7207_v46  ;;  %v1961_v51 = vadd.f32 %v7236_v48, %v1951_v47  ;;  %v6076_v46 = vld [vmem:[#allocation15 + $0x78] sm:$0xff]  }
 0x9f2   : > { %5336 = vmatprep.subr.bf16.mxu0 %v6076_v46 }
 0x9f3   : > { %v1952_v49 = vmul.f32 %v7229_v34, %v1942_v45 }
 0x9f5   : > { %v1962_v44 = vadd.f32 %v7236_v48, %v1952_v49  ;;  %v2007_v49 = vsub.s32 1, %v7054_v35 }
 0x9f7   : > { %v1965_v52 = vpack.c.bf16 %v1962_v44, %v1961_v51  ;;  %v2015_v51 = vsub.s32 3, %v7054_v35  ;;  %v2011_v44 = vsub.s32 2, %v7054_v35 }
 0x9f9   : > { %2214 = vmatmul.mubr.bf16.vlgmr.msra.gmra.mxu0 %v1965_v52  ;;  %2267 = vmatmul.mubr.bf16.vlgmr.msra.gmra.mxu1 %v1965_v52 }
 0x9fa   : > { %2223 = vmatprep.mubr.bf16.mxu0 %v6673_v5  ;;  %2276 = vmatprep.mubr.bf16.mxu1 %v6673_v5 }
 0x9fb   : > { %5337 = vmatpush3.bf16.msra.mxu0 %v6078_v54  ;;  %5365 = vmatpush3.bf16.msra.mxu1 %v6079_v14 }
 0x9fc   : > { %5338 = vmatprep.subr.bf16.mxu0 %v6080_v30  ;;  %5366 = vmatprep.subr.bf16.mxu1 %v6081_v18 }
 0x9ff   : > { %5339 = vmatpush3.bf16.msra.mxu0 %v6082_v20  ;;  %5367 = vmatpush3.bf16.msra.mxu1 %v6083_v55 }
 0xa00   : > { %5340 = vmatprep.subr.bf16.mxu0 %v6084_v56  ;;  %5368 = vmatprep.subr.bf16.mxu1 %v6085_v57 }
 0xa03   : > { %5341 = vmatpush3.bf16.msra.mxu0 %v6086_v58  ;;  %5369 = vmatpush3.bf16.msra.mxu1 %v6087_v59 }
 0xa04   : > { %5342 = vmatprep.subr.bf16.mxu0 %v6088_v60  ;;  %5370 = vmatprep.subr.bf16.mxu1 %v6089_v61 }
 0xa07   : > { %5343 = vmatpush3.bf16.msra.mxu0 %v6090_v62  ;;  %5371 = vmatpush3.bf16.msra.mxu1 %v6091_v63 }
 0xa08   : > { %5344 = vmatprep.subr.bf16.mxu0 %v6092_v0  ;;  %5372 = vmatprep.subr.bf16.mxu1 %v6093_v1 }
 0xa0b   : > { %5345 = vmatpush3.bf16.msra.mxu0 %v6094_v2  ;;  %5373 = vmatpush3.bf16.msra.mxu1 %v6095_v4 }
 0xa0c   : > { %5346 = vmatprep.subr.bf16.mxu0 %v6096_v6  ;;  %5374 = vmatprep.subr.bf16.mxu1 %v6097_v7 }
 0xa0f   : > { %5347 = vmatpush3.bf16.msra.mxu0 %v6098_v9  ;;  %5375 = vmatpush3.bf16.msra.mxu1 %v6099_v10 }
 0xa10   : > { %5348 = vmatprep.subr.bf16.mxu0 %v6100_v11  ;;  %5376 = vmatprep.subr.bf16.mxu1 %v6101_v13 }
 0xa13   : > { %5349 = vmatpush3.bf16.msra.mxu0 %v6102_v15  ;;  %5377 = vmatpush3.bf16.msra.mxu1 %v6103_v16 }
 0xa14   : > { %5350 = vmatprep.subr.bf16.mxu0 %v6104_v17  ;;  %5378 = vmatprep.subr.bf16.mxu1 %v6105_v19 }
 0xa17   : > { %5351 = vmatpush3.bf16.msra.mxu0 %v6106_v32  ;;  %5379 = vmatpush3.bf16.msra.mxu1 %v6107_v21 }
 0xa62   : > { %v1926_v23 = vpop.xlane.xlu0 %1925 }
 0xa63   : > { %v1931_v24 = vmul.f32 0.0078125, %v1926_v23 }
 0xa65   : > { %v1935_v25 = vadd.f32 1e-05, %v1931_v24 }
 0xa66   : > { %v1928_v27 = vpop.xlane.xlu0 %1927 }
 0xa67   : > { %6272 = vrsqrt.f32 %v1935_v25  ;;  %v1932_v28 = vmul.f32 0.0078125, %v1928_v27 }
 0xa69   : > { %v1936_v29 = vadd.f32 1e-05, %v1932_v28 }
 0xa6b   : > { %6274 = vrsqrt.f32 %v1936_v29 }
 0xa74   : > { %v6273_v31 = vpop.eup %6272 }
 0xa75   : > { %v1943_v33 = vmul.f32 %v6273_v31, %v7216_v22  ;;  %v2003_v22 = vsub.s32 0, %v7054_v35 }
 0xa77   : > { %v1953_v39 = vmul.f32 %v7229_v34, %v1943_v33 }
 0xa78   : > { %v6275_v36 = vpop.eup %6274 }
 0xa79   : > { %v1944_v37 = vmul.f32 %v6275_v36, %v7221_v26  ;;  %v1963_v43 = vadd.f32 %v7236_v48, %v1953_v39  ;;  %v1999_v26 = vld [vmem:[%s7621_s11] sm:$0xf] }
 0xa7a   : > { %v2016_v46 = vrot.slane %v1999_v26, %v2015_v51  ;;  %v2004_v53 = vrot.slane %v1999_v26, %v2003_v22  ;;  %v2012_v54 = vrot.slane %v1999_v26, %v2011_v44 }
 0xa7b   : > { %v1954_v40 = vmul.f32 %v7229_v34, %v1944_v37 }
 0xa7d   : > { %v1964_v45 = vadd.f32 %v7236_v48, %v1954_v40  ;;  %v2008_v48 = vrot.slane %v1999_v26, %v2007_v49 }
 0xa7f   : > { %v1966_v47 = vpack.c.bf16 %v1964_v45, %v1963_v43 }
 0xa81   : > { %2224 = vmatmul.mubr.bf16.gmra.mxu0 %v1966_v47  ;;  %2277 = vmatmul.mubr.bf16.gmra.mxu1 %v1966_v47 }
 0xab9   : > { %v2215_v34 = vpop.f32.mrf.mxu0  ;;  %v2268_v52 = vpop.f32.mrf.mxu1 }
 0xaba   : > { %v2216_v59 = vadd.f32 %v2215_v34, %v2004_v53  ;;  %v2269_v60 = vadd.f32 %v2268_v52, %v2012_v54 }
 0xabb   : > { %v2217_v14 = vpop.f32.mrf.mxu0  ;;  %v2270_v30 = vpop.f32.mrf.mxu1 }
 0xabc   : > { %v2218_v55 = vadd.f32 %v2217_v14, %v2008_v48  ;;  %v2271_v56 = vadd.f32 %v2270_v30, %v2016_v46  ;;  %v2287_v10 = vmax.f32 %v2216_v59, 0.0  ;;  %v2289_v11 = vmax.f32 %v2269_v60, 0.0 }
 0xabd   : > { %v2219_v18 = vpop.f32.mrf.mxu0  ;;  %v2272_v20 = vpop.f32.mrf.mxu1 }
 0xabe   : > { %v2220_v57 = vadd.f32 %v2219_v18, %v2004_v53  ;;  %v2273_v58 = vadd.f32 %v2272_v20, %v2012_v54  ;;  %v2288_v4 = vmax.f32 %v2218_v55, 0.0  ;;  %v2290_v6 = vmax.f32 %v2271_v56, 0.0 }
 0xabf   : > { %v2221_v61 = vpop.f32.mrf.mxu0  ;;  %v2274_v62 = vpop.f32.mrf.mxu1 }
 0xac0   : > { %v2222_v63 = vadd.f32 %v2221_v61, %v2008_v48  ;;  %v2275_v0 = vadd.f32 %v2274_v62, %v2016_v46  ;;  %v2291_v1 = vmax.f32 %v2220_v57, 0.0  ;;  %v2293_v2 = vmax.f32 %v2273_v58, 0.0 }
 0xac2   : > { %v2292_v7 = vmax.f32 %v2222_v63, 0.0  ;;  %v2294_v9 = vmax.f32 %v2275_v0, 0.0  ;;  %v2303_v16 = vpack.c.bf16 %v2291_v1, %v2287_v10  ;;  %v2305_v17 = vpack.c.bf16 %v2293_v2, %v2289_v11 }
 0xac4   : > { %v2304_v13 = vpack.c.bf16 %v2292_v7, %v2288_v4  ;;  %v2306_v15 = vpack.c.bf16 %v2294_v9, %v2290_v6 }
 0xac6   : > { %2606 = vmatprep.mubr.bf16.mxu0 %v2304_v13  ;;  %2655 = vmatprep.mubr.bf16.mxu1 %v2306_v15 }
 0xac7   : > { %2607 = vmatmul.mubr.bf16.vlgmr.msra.gmra.mxu0 %v2303_v16  ;;  %2656 = vmatmul.mubr.bf16.vlgmr.msra.gmra.mxu1 %v2305_v17 }
 0xb41   : > { %v2225_v19 = vpop.f32.mrf.mxu0  ;;  %v2278_v32 = vpop.f32.mrf.mxu1 }
 0xb42   : > { %v2226_v33 = vadd.f32 %v2225_v19, %v2004_v53  ;;  %v2279_v36 = vadd.f32 %v2278_v32, %v2012_v54 }
 0xb43   : > { %v2227_v21 = vpop.f32.mrf.mxu0  ;;  %v2280_v23 = vpop.f32.mrf.mxu1 }
 0xb44   : > { %v2228_v27 = vadd.f32 %v2227_v21, %v2008_v48  ;;  %v2281_v28 = vadd.f32 %v2280_v23, %v2016_v46  ;;  %v2295_v30 = vmax.f32 %v2226_v33, 0.0  ;;  %v2297_v18 = vmax.f32 %v2279_v36, 0.0 }
 0xb45   : > { %v2229_v24 = vpop.f32.mrf.mxu0  ;;  %v2282_v25 = vpop.f32.mrf.mxu1 }
 0xb46   : > { %v2230_v29 = vadd.f32 %v2229_v24, %v2004_v53  ;;  %v2283_v31 = vadd.f32 %v2282_v25, %v2012_v54  ;;  %v2296_v26 = vmax.f32 %v2228_v27, 0.0  ;;  %v2298_v34 = vmax.f32 %v2281_v28, 0.0 }
 0xb47   : > { %v2231_v37 = vpop.f32.mrf.mxu0  ;;  %v2284_v39 = vpop.f32.mrf.mxu1 }
 0xb48   : > { %v2232_v40 = vadd.f32 %v2231_v37, %v2008_v48  ;;  %v2285_v43 = vadd.f32 %v2284_v39, %v2016_v46  ;;  %v2299_v45 = vmax.f32 %v2230_v29, 0.0  ;;  %v2301_v47 = vmax.f32 %v2283_v31, 0.0  ;;  %v5099_v48 = vld [vmem:[%s7623_s13] ss:$0 sm:$0xff] }
 0xb4a   : > { %v2300_v52 = vmax.f32 %v2232_v40, 0.0  ;;  %v2302_v14 = vmax.f32 %v2285_v43, 0.0  ;;  %v2307_v56 = vpack.c.bf16 %v2299_v45, %v2295_v30  ;;  %v2309_v57 = vpack.c.bf16 %v2301_v47, %v2297_v18 }
 0xb4c   : > { %v2308_v20 = vpack.c.bf16 %v2300_v52, %v2296_v26  ;;  %v2310_v55 = vpack.c.bf16 %v2302_v14, %v2298_v34  ;;  %v6108_v34 = vld [vmem:[#allocation8 + $0x78] sm:$0xff]  }
 0xb4d   : > { %v6109_v52 = vld [vmem:[#allocation9 + $0x78] sm:$0xff]   ;;  %5680 = vmatprep.subr.bf16.mxu0 %v6108_v34 }
 0xb4e   : > { %2614 = vmatprep.mubr.bf16.mxu0 %v2308_v20  ;;  %2663 = vmatprep.mubr.bf16.mxu1 %v2310_v55 }
 0xb4f   : > { %2615 = vmatmul.mubr.bf16.gmra.mxu0 %v2307_v56  ;;  %2664 = vmatmul.mubr.bf16.gmra.mxu1 %v2309_v57 }
 0xb50   : > { %5700 = vmatprep.subr.bf16.mxu1 %v6109_v52  ;;  %5681 = vmatpush3.bf16.msra.mxu0 %v6108_v34 }
 0xb51   : > { %5701 = vmatpush3.bf16.msra.mxu1 %v6109_v52 }
 0xb87   : > { %v5352_v53 = vpop.f32.mrf.mxu0  ;;  %v5380_v54 = vpop.f32.mrf.mxu1 }
 0xb89   : > { %v5353_v46 = vpop.f32.mrf.mxu0  ;;  %v5381_v58 = vpop.f32.mrf.mxu1 }
 0xb8a   : > { %v5354_v59 = vadd.f32 %v5353_v46, %v5352_v53  ;;  %v5382_v63 = vadd.f32 %v5381_v58, %v5380_v54 }
 0xb8b   : > { %v5355_v60 = vpop.f32.mrf.mxu0  ;;  %v5383_v61 = vpop.f32.mrf.mxu1 }
 0xb8c   : > { %v2609_v62 = vadd.f32 %v5354_v59, %v5099_v48 }
 0xb8d   : > { %v5356_v0 = vpop.f32.mrf.mxu0  ;;  %v5384_v1 = vpop.f32.mrf.mxu1 }
 0xb8e   : > { %v2658_v2 = vadd.f32 %v5382_v63, %v2609_v62  ;;  %v5357_v4 = vadd.f32 %v5356_v0, %v5355_v60  ;;  %v5385_v7 = vadd.f32 %v5384_v1, %v5383_v61  ;;  %v6110_v60 = vld [vmem:[#allocation8 + $0x70] sm:$0xff]   ;;  %v6112_v62 = vld [vmem:[#allocation8 + $0x68] sm:$0xff]   ;;  %v6114_v0 = vld [vmem:[#allocation8 + $0x60] sm:$0xff]  }
 0xb8f   : > { %v6111_v61 = vld [vmem:[#allocation9 + $0x70] sm:$0xff]   ;;  %5682 = vmatprep.subr.bf16.mxu0 %v6110_v60  ;;  %v6113_v63 = vld [vmem:[#allocation9 + $0x68] sm:$0xff]  }
 0xb90   : > { %v2612_v6 = vadd.f32 %v5357_v4, %v5099_v48  ;;  %v7268_v9 = vadd.f32 %v2658_v2, %v7186_v3  ;;  %5683 = vmatpush3.bf16.msra.mxu0 %v6110_v60  ;;  %5702 = vmatprep.subr.bf16.mxu1 %v6111_v61  ;;  %v6115_v2 = vld [vmem:[#allocation9 + $0x60] sm:$0xff]  }
 0xb91   : > { %5703 = vmatpush3.bf16.msra.mxu1 %v6111_v61  ;;  %5684 = vmatprep.subr.bf16.mxu0 %v6112_v62 }
 0xb92   : > { %v2661_v10 = vadd.f32 %v5385_v7, %v2612_v6  ;;  %2680 = vadd.xlane.f32.xlu0 %v7268_v9  ;;  %5704 = vmatprep.subr.bf16.mxu1 %v6113_v63  ;;  %v5133_v6 = vld [vmem:[#allocation6 + $0x1] ss:$0 sm:$0xff] }
 0xb93   : > { %v6116_v7 = vld [vmem:[#allocation8 + $0x58] sm:$0xff]  }
 0xb94   : > { %v7272_v11 = vadd.f32 %v2661_v10, %v7190_v8  ;;  %5685 = vmatpush3.bf16.msra.mxu0 %v6112_v62 }
 0xb95   : > { %5705 = vmatpush3.bf16.msra.mxu1 %v6113_v63  ;;  %5686 = vmatprep.subr.bf16.mxu0 %v6114_v0 }
 0xb96   : > { %2682 = vadd.xlane.f32.xlu1 %v7272_v11  ;;  %5706 = vmatprep.subr.bf16.mxu1 %v6115_v2 }
 0xb98   : > { %5687 = vmatpush3.bf16.msra.mxu0 %v6114_v0 }
 0xb99   : > { %5707 = vmatpush3.bf16.msra.mxu1 %v6115_v2  ;;  %5688 = vmatprep.subr.bf16.mxu0 %v6116_v7 }
 0xb9c   : > { %5689 = vmatpush3.bf16.msra.mxu0 %v6116_v7 }
 0xc0f   : > { %v5358_v13 = vpop.f32.mrf.mxu0  ;;  %v5386_v15 = vpop.f32.mrf.mxu1 }
 0xc11   : > { %v5359_v16 = vpop.f32.mrf.mxu0  ;;  %v5387_v17 = vpop.f32.mrf.mxu1 }
 0xc12   : > { %v5360_v19 = vadd.f32 %v5359_v16, %v5358_v13  ;;  %v5388_v24 = vadd.f32 %v5387_v17, %v5386_v15  ;;  %v6117_v13 = vld [vmem:[#allocation9 + $0x58] sm:$0xff]  }
 0xc13   : > { %v5361_v32 = vpop.f32.mrf.mxu0  ;;  %v5389_v21 = vpop.f32.mrf.mxu1  ;;  %v5134_v17 = vld [vmem:[%s7676_s20 + $0x1] ss:$0 sm:$0xff]  ;;  %5708 = vmatprep.subr.bf16.mxu1 %v6117_v13 }
 0xc14   : > { %v2617_v23 = vadd.f32 %v5360_v19, %v5099_v48  ;;  %5709 = vmatpush3.bf16.msra.mxu1 %v6117_v13 }
 0xc15   : > { %v5362_v25 = vpop.f32.mrf.mxu0  ;;  %v5390_v3 = vpop.f32.mrf.mxu1 }
 0xc16   : > { %v2666_v27 = vadd.f32 %v5388_v24, %v2617_v23  ;;  %v5363_v28 = vadd.f32 %v5362_v25, %v5361_v32  ;;  %v5391_v31 = vadd.f32 %v5390_v3, %v5389_v21  ;;  %v6118_v32 = vld [vmem:[#allocation8 + $0x50] sm:$0xff]   ;;  %v6120_v3 = vld [vmem:[#allocation8 + $0x48] sm:$0xff]  }
 0xc17   : > { %v6119_v21 = vld [vmem:[#allocation9 + $0x50] sm:$0xff]   ;;  %5690 = vmatprep.subr.bf16.mxu0 %v6118_v32 }
 0xc18   : > { %v2620_v29 = vadd.f32 %v5363_v28, %v5099_v48  ;;  %v7276_v8 = vadd.f32 %v2666_v27, %v7196_v38  ;;  %5691 = vmatpush3.bf16.msra.mxu0 %v6118_v32  ;;  %5710 = vmatprep.subr.bf16.mxu1 %v6119_v21  ;;  %v6121_v27 = vld [vmem:[#allocation9 + $0x48] sm:$0xff]   ;;  %v6122_v28 = vld [vmem:[#allocation8 + $0x40] sm:$0xff]  }
 0xc19   : > { %5711 = vmatpush3.bf16.msra.mxu1 %v6119_v21  ;;  %5692 = vmatprep.subr.bf16.mxu0 %v6120_v3 }
 0xc1a   : > { %v2669_v33 = vadd.f32 %v5391_v31, %v2620_v29  ;;  %2684 = vadd.xlane.f32.xlu0 %v7276_v8  ;;  %v6123_v29 = vld [vmem:[#allocation9 + $0x40] sm:$0xff]   ;;  %5712 = vmatprep.subr.bf16.mxu1 %v6121_v27  ;;  %v6124_v31 = vld [vmem:[#allocation11 + $0x78] sm:$0xff]  }
 0xc1b   : > { %v2681_v36 = vpop.xlane.xlu0 %2680 }
 0xc1c   : > { %v2688_v37 = vmul.f32 0.0078125, %v2681_v36  ;;  %v7280_v39 = vadd.f32 %v2669_v33, %v7203_v41  ;;  %5693 = vmatpush3.bf16.msra.mxu0 %v6120_v3 }
 0xc1d   : > { %5713 = vmatpush3.bf16.msra.mxu1 %v6121_v27  ;;  %5694 = vmatprep.subr.bf16.mxu0 %v6122_v28 }
 0xc1e   : > { %v2692_v40 = vsub.f32 %v7268_v9, %v2688_v37  ;;  %2686 = vadd.xlane.f32.xlu1 %v7280_v39  ;;  %5714 = vmatprep.subr.bf16.mxu1 %v6123_v29 }
 0xc1f   : > { %v2683_v43 = vpop.xlane.xlu1 %2682 }
 0xc20   : > { %v2689_v45 = vmul.f32 0.0078125, %v2683_v43  ;;  %v2696_v47 = vmul.f32 %v2692_v40, %v2692_v40  ;;  %5695 = vmatpush3.bf16.msra.mxu0 %v6122_v28 }
 0xc21   : > { %5715 = vmatpush3.bf16.msra.mxu1 %v6123_v29  ;;  %5720 = vmatprep.subr.bf16.mxu0 %v6124_v31 }
 0xc22   : > { %v2693_v26 = vsub.f32 %v7272_v11, %v2689_v45  ;;  %2700 = vadd.xlane.f32.xlu0 %v2696_v47  ;;  %5740 = vmatprep.subr.bf16.mxu1 %v6670_v12 }
 0xc24   : > { %v2697_v38 = vmul.f32 %v2693_v26, %v2693_v26 }
 0xc26   : > { %2702 = vadd.xlane.f32.xlu1 %v2697_v38 }
 0xca3   : > { %v2685_v41 = vpop.xlane.xlu0 %2684 }
 0xca4   : > { %v2690_v14 = vmul.f32 0.0078125, %v2685_v41 }
 0xca6   : > { %v7286_v30 = vsub.f32 %v7276_v8, %v2690_v14 }
 0xca7   : > { %v2687_v18 = vpop.xlane.xlu1 %2686 }
 0xca8   : > { %v2691_v20 = vmul.f32 0.0078125, %v2687_v18  ;;  %v2698_v55 = vmul.f32 %v7286_v30, %v7286_v30 }
 0xcaa   : > { %v7291_v56 = vsub.f32 %v7280_v39, %v2691_v20  ;;  %2704 = vadd.xlane.f32.xlu0 %v2698_v55  ;;  %v6125_v55 = vld [vmem:[#allocation11 + $0x70] sm:$0xff]  }
 0xcab   : > { %v2701_v57 = vpop.xlane.xlu0 %2700 }
 0xcac   : > { %v2708_v53 = vmul.f32 0.0078125, %v2701_v57  ;;  %v2699_v54 = vmul.f32 %v7291_v56, %v7291_v56  ;;  %v6126_v57 = vld [vmem:[#allocation11 + $0x68] sm:$0xff]  }
 0xcae   : > { %v2712_v48 = vadd.f32 1e-05, %v2708_v53  ;;  %2706 = vadd.xlane.f32.xlu1 %v2699_v54  ;;  %v6129_v53 = vld [vmem:[#allocation11 + $0x50] sm:$0xff]   ;;  %v6130_v54 = vld [vmem:[#allocation11 + $0x48] sm:$0xff]  }
 0xcaf   : > { %v2703_v46 = vpop.xlane.xlu1 %2702 }
 0xcb0   : > { %6276 = vrsqrt.f32 %v2712_v48  ;;  %v2709_v58 = vmul.f32 0.0078125, %v2703_v46  ;;  %v6131_v48 = vld [vmem:[#allocation11 + $0x40] sm:$0xff]  }
 0xcb2   : > { %v2713_v59 = vadd.f32 1e-05, %v2709_v58 }
 0xcb4   : > { %6278 = vrsqrt.f32 %v2713_v59 }
 0xcbd   : > { %v6277_v1 = vpop.eup %6276 }
 0xcbe   : > { %v2720_v4 = vmul.f32 %v6277_v1, %v2692_v40 }
 0xcc0   : > { %v2730_v16 = vmul.f32 %v5133_v6, %v2720_v4 }
 0xcc1   : > { %v6279_v10 = vpop.eup %6278 }
 0xcc2   : > { %v2721_v15 = vmul.f32 %v6279_v10, %v2693_v26  ;;  %v2740_v23 = vadd.f32 %v5134_v17, %v2730_v16 }
 0xcc4   : > { %v2731_v19 = vmul.f32 %v5133_v6, %v2721_v15 }
 0xcc6   : > { %v2741_v24 = vadd.f32 %v5134_v17, %v2731_v19 }
 0xcc8   : > { %v2744_v25 = vpack.c.bf16 %v2741_v24, %v2740_v23 }
 0xcca   : > { %5696 = vmatprep.mubr.bf16.mxu0 %v2744_v25  ;;  %5716 = vmatprep.mubr.bf16.mxu1 %v2744_v25 }
 0xd33   : > { %v2705_v33 = vpop.xlane.xlu0 %2704 }
 0xd34   : > { %v2710_v36 = vmul.f32 0.0078125, %v2705_v33 }
 0xd36   : > { %v2714_v37 = vadd.f32 1e-05, %v2710_v36 }
 0xd37   : > { %v2707_v40 = vpop.xlane.xlu1 %2706 }
 0xd38   : > { %6280 = vrsqrt.f32 %v2714_v37  ;;  %v2711_v43 = vmul.f32 0.0078125, %v2707_v40 }
 0xd3a   : > { %v2715_v45 = vadd.f32 1e-05, %v2711_v43 }
 0xd3c   : > { %6282 = vrsqrt.f32 %v2715_v45 }
 0xd45   : > { %v6281_v47 = vpop.eup %6280 }
 0xd46   : > { %v2722_v26 = vmul.f32 %v6281_v47, %v7286_v30  ;;  %v6127_v30 = vld [vmem:[#allocation11 + $0x60] sm:$0xff]  }
 0xd48   : > { %v2732_v52 = vmul.f32 %v5133_v6, %v2722_v26 }
 0xd49   : > { %v6283_v38 = vpop.eup %6282 }
 0xd4a   : > { %v2723_v34 = vmul.f32 %v6283_v38, %v7291_v56  ;;  %v2742_v14 = vadd.f32 %v5134_v17, %v2732_v52  ;;  %v6128_v56 = vld [vmem:[#allocation11 + $0x58] sm:$0xff]  }
 0xd4c   : > { %v2733_v41 = vmul.f32 %v5133_v6, %v2723_v34 }
 0xd4e   : > { %v2743_v18 = vadd.f32 %v5134_v17, %v2733_v41 }
 0xd50   : > { %v2745_v20 = vpack.c.bf16 %v2743_v18, %v2742_v14 }
 0xd52   : > { %5697 = vmatmul.mubr.bf16.vlgmr.msra.gmra.mxu0 %v2745_v20  ;;  %5717 = vmatmul.mubr.bf16.vlgmr.msra.gmra.mxu1 %v2745_v20 }
 0xd53   : > { %5721 = vmatpush3.bf16.msra.mxu0 %v6124_v31  ;;  %5736 = vmatprep.mubr.bf16.mxu0 %v2744_v25 }
 0xd54   : > { %5722 = vmatprep.subr.bf16.mxu0 %v6125_v55  ;;  %5742 = vmatprep.mubr.msk.bf16.mxu1 %vm6671_vm0, %v6670_v12 }
 0xd57   : > { %5723 = vmatpush3.bf16.msra.mxu0 %v6125_v55 }
 0xd58   : > { %5724 = vmatprep.subr.bf16.mxu0 %v6126_v57 }
 0xd5b   : > { %5725 = vmatpush3.bf16.msra.mxu0 %v6126_v57 }
 0xd5c   : > { %5726 = vmatprep.subr.bf16.mxu0 %v6127_v30 }
 0xd5f   : > { %5727 = vmatpush3.bf16.msra.mxu0 %v6127_v30 }
 0xd60   : > { %5728 = vmatprep.subr.bf16.mxu0 %v6128_v56 }
 0xd63   : > { %5729 = vmatpush3.bf16.msra.mxu0 %v6128_v56 }
 0xd64   : > { %5730 = vmatprep.subr.bf16.mxu0 %v6129_v53 }
 0xd67   : > { %5731 = vmatpush3.bf16.msra.mxu0 %v6129_v53 }
 0xd68   : > { %5732 = vmatprep.subr.bf16.mxu0 %v6130_v54 }
 0xd6b   : > { %5733 = vmatpush3.bf16.msra.mxu0 %v6130_v54 }
 0xd6c   : > { %5734 = vmatprep.subr.bf16.mxu0 %v6131_v48 }
 0xd6f   : > { %5735 = vmatpush3.bf16.msra.mxu0 %v6131_v48 }
 0xd70   : > { %5764 = vmatprep.subr.bf16.mxu0 %v6670_v12 }
 0xd72   : > { %5737 = vmatmul.mubr.bf16.vlgmr.msra.gmra.mxu0 %v2745_v20 }
 0xd73   : > { %5772 = vmatprep.mubr.msk.bf16.mxu0 %vm6671_vm0, %v6670_v12 }
 0xe12   : > { %v5698_v46 = vpop.f32.mrf.mxu0  ;;  %v5718_v58 = vpop.f32.mrf.mxu1 }
 0xe14   : > { %v2845_v59 = vpop.f32.mrf.mxu0  ;;  %v2959_v60 = vpop.f32.mrf.mxu1 }
 0xe16   : > { %v5699_v61 = vpop.f32.mrf.mxu0  ;;  %v5719_v62 = vpop.f32.mrf.mxu1 }
 0xe17   : > { %v7306_v63 = vpack.c.bf16 %v5699_v61, %v5698_v46  ;;  %v7308_v0 = vpack.c.bf16 %v5719_v62, %v5718_v58 }
 0xe18   : > { %v2962_v1 = vpop.f32.mrf.mxu1  ;;  %v2848_v6 = vpop.f32.mrf.mxu0 }
 0xe19   : > { %v3106_v2 = vpack.c.bf16 %v2962_v1, %v2959_v60  ;;  %v3105_v7 = vpack.c.bf16 %v2848_v6, %v2845_v59 }
 0xe1b   : > { %v3112_v4 = vsel %vm1151_vm1, %v3106_v2, 0 }
 0xe1c   : > { %5741 = vmatpush3.bf16.xpose.msra.mxu1 %v3112_v4 }
 0xe1d   : > { %5746 = vmatprep.subr.bf16.mxu1 %v6670_v12 }
 0xe23   : > { %5743 = vmatmul.mubr.msk.bf16.vlgmr.msra.gmra.mxu1 %vm1151_vm1, %v3105_v7 }
 0xe24   : > { %5748 = vmatprep.mubr.msk.bf16.mxu1 %vm6671_vm0, %v6670_v12 }
 0xe32   : > { %v5738_v10 = vpop.f32.mrf.mxu0 }
 0xe34   : > { %v3073_v13 = vpop.f32.mrf.mxu0 }
 0xe36   : > { %v5739_v15 = vpop.f32.mrf.mxu0 }
 0xe37   : > { %v7315_v16 = vpack.c.bf16 %v5739_v15, %v5738_v10 }
 0xe38   : > { %v3076_v17 = vpop.f32.mrf.mxu0 }
 0xe39   : > { %v7317_v19 = vpack.c.bf16 %v3076_v17, %v3073_v13 }
 0xe3b   : > { %5747 = vmatpush3.bf16.msra.mxu1 %v7317_v19 }
 0xe3c   : > { %5752 = vmatprep.subr.bf16.mxu1 %v6670_v12 }
 0xee3   : > { %v3148_v32 = vpop.f32.mrf.mxu1 }
 0xee4   : > { %v3155_v21 = vmul.f32 0.125, %v3148_v32 }
 0xee5   : > { %v5744_v23 = vpop.f32.mrf.mxu1 }
 0xee6   : > { %v3157_v24 = vsel %vm7059_vm2, %v3155_v21, -1e+30 }
 0xee7   : > { %v3151_v25 = vpop.f32.mrf.mxu1  ;;  %v3159_v3 = vsel %vm1203_vm3, %v3157_v24, -inf }
 0xee8   : > { %v3156_v27 = vmul.f32 0.125, %v3151_v25  ;;  %3160 = vmax.xlane.f32.xlu0 %v3159_v3 }
 0xee9   : > { %v5745_v28 = vpop.f32.mrf.mxu1 }
 0xeea   : > { %v3158_v29 = vsel %vm7067_vm4, %v3156_v27, -1e+30 }
 0xeeb   : > { %v3162_v31 = vsel %vm1203_vm3, %v3158_v29, -inf }
 0xeec   : > { %3163 = vmax.xlane.f32.xlu1 %v3162_v31  ;;  %v7362_v31 = vld [vmem:[#allocation12 + $0x70] sm:$0xff]  }
 0xf71   : > { %v3161_v33 = vpop.xlane.xlu0 %3160 }
 0xf72   : > { %v3165_v36 = vsub.f32 %v3157_v24, %v3161_v33  ;;  %v7366_v33 = vld [vmem:[#allocation12 + $0x68] sm:$0xff]  }
 0xf74   : > { %v3167_v37 = vmul.f32 1.442695, %v3165_v36 }
 0xf75   : > { %v3164_v40 = vpop.xlane.xlu1 %3163 }
 0xf76   : > { %6284 = vpow2.f32 %v3167_v37  ;;  %v3166_v43 = vsub.f32 %v3158_v29, %v3164_v40  ;;  %v7359_v29 = vld [vmem:[#allocation12 + $0x78] sm:$0xff]  }
 0xf77   : > { %5765 = vmatpush3.bf16.msra.mxu0 %v7359_v29 }
 0xf78   : > { %v3169_v45 = vmul.f32 1.442695, %v3166_v43  ;;  %5766 = vmatprep.subr.bf16.mxu0 %v6670_v12 }
 0xf7a   : > { %6286 = vpow2.f32 %v3169_v45 }
 0xf7b   : > { %5767 = vmatpush3.bf16.msra.mxu0 %v7362_v31 }
 0xf7c   : > { %5768 = vmatprep.subr.bf16.mxu0 %v6670_v12 }
 0xf7f   : > { %5769 = vmatpush3.bf16.msra.mxu0 %v7366_v33 }
 0xf80   : > { %5770 = vmatprep.subr.bf16.mxu0 %v6670_v12 }
 0xf83   : > { %v6285_v47 = vpop.eup %6284 }
 0xf84   : > { %v3171_v26 = vsel %vm1203_vm3, %v6285_v47, 0.0 }
 0xf85   : > { %3172 = vadd.xlane.f32.xlu0 %v3171_v26  ;;  %v7372_v26 = vld [vmem:[#allocation12 + $0x58] sm:$0xff]  }
 0xf87   : > { %v6287_v38 = vpop.eup %6286 }
 0xf88   : > { %v3174_v34 = vsel %vm1203_vm3, %v6287_v38, 0.0 }
 0xf89   : > { %3175 = vadd.xlane.f32.xlu1 %v3174_v34  ;;  %v7376_v34 = vld [vmem:[#allocation12 + $0x50] sm:$0xff]  }
 0xf9a   : > { %3228 = vrot.lane.b32.xlu1 %v3105_v7, %s6672_s19 }
 0xf9b   : > { %3231 = vrot.lane.b32.xlu0 %v3106_v2, %s6672_s19 }
0x100e   : > { %v3173_v52 = vpop.xlane.xlu0 %3172 }
0x100f   : > { %6288 = vrcp.f32 %v3173_v52  ;;  %v7382_v52 = vld [vmem:[#allocation12 + $0x48] sm:$0xff]  }
0x1012   : > { %v3176_v41 = vpop.xlane.xlu1 %3175  ;;  %v3232_v57 = vpop.permute.xlu0 %3231 }
0x1013   : > { %6290 = vrcp.f32 %v3176_v41  ;;  %v3237_v56 = vsel %vm1151_vm1, %v3232_v57, 0  ;;  %v7386_v41 = vld [vmem:[#allocation12 + $0x40] sm:$0xff]  }
0x1016   : > { %v3229_v53 = vpop.permute.xlu1 %3228 }
0x101c   : > { %v6289_v14 = vpop.eup %6288 }
0x101d   : > { %v3179_v20 = vmul.f32 %v6289_v14, %v6285_v47  ;;  %v6139_v14 = vld [vmem:[#allocation12 + $0x60] sm:$0xff]  }
0x101e   : > { %5771 = vmatpush3.bf16.msra.mxu0 %v6139_v14 }
0x101f   : > { %5788 = vmatprep.subr.bf16.mxu0 %v6670_v12 }
0x1020   : > { %v6291_v18 = vpop.eup %6290 }
0x1021   : > { %v3180_v55 = vmul.f32 %v6291_v18, %v6287_v38 }
0x1023   : > { %v3181_v30 = vpack.c.bf16 %v3180_v55, %v3179_v20 }
0x1025   : > { %5749 = vmatmul.mubr.msk.bf16.vlgmr.msra.gmra.mxu1 %vm1203_vm3, %v3181_v30 }
0x1026   : > { %5753 = vmatpush3.bf16.xpose.msra.mxu1 %v3237_v56  ;;  %5754 = vmatprep.mubr.msk.bf16.mxu1 %vm6671_vm0, %v6670_v12  ;;  %v3501_v56 = vsel %vm1151_vm1, %v7308_v0, 0 }
0x1027   : > { %5758 = vmatprep.subr.bf16.mxu1 %v6670_v12 }
0x102d   : > { %5755 = vmatmul.mubr.msk.bf16.vlgmr.msra.gmra.mxu1 %vm1151_vm1, %v3229_v53 }
0x102e   : > { %5760 = vmatprep.mubr.msk.bf16.mxu1 %vm6671_vm0, %v6670_v12 }
0x10e5   : > { %v7339_v54 = vpop.f32.mrf.mxu1 }
0x10e7   : > { %v5750_v48 = vpop.f32.mrf.mxu1 }
0x10e9   : > { %v7341_v46 = vpop.f32.mrf.mxu1 }
0x10ea   : > { %v3226_v58 = vpack.c.bf16 %v7341_v46, %v7339_v54 }
0x10eb   : > { %v5751_v59 = vpop.f32.mrf.mxu1 }
0x10ed   : > { %v3273_v60 = vpop.f32.mrf.mxu1 }
0x10ee   : > { %v3280_v61 = vmul.f32 0.125, %v3273_v60 }
0x10ef   : > { %v5756_v62 = vpop.f32.mrf.mxu1 }
0x10f0   : > { %v3282_v1 = vsel %vm7059_vm2, %v3280_v61, -1e+30 }
0x10f1   : > { %v3276_v2 = vpop.f32.mrf.mxu1  ;;  %v3284_v4 = vsel %vm1203_vm3, %v3282_v1, -inf }
0x10f2   : > { %v3281_v6 = vmul.f32 0.125, %v3276_v2  ;;  %3285 = vmax.xlane.f32.xlu1 %v3284_v4 }
0x10f3   : > { %v5757_v7 = vpop.f32.mrf.mxu1 }
0x10f4   : > { %v3283_v10 = vsel %vm7067_vm4, %v3281_v6, -1e+30 }
0x10f5   : > { %v3287_v13 = vsel %vm1203_vm3, %v3283_v10, -inf }
0x10f6   : > { %3288 = vmax.xlane.f32.xlu0 %v3287_v13 }
0x117b   : > { %v3286_v15 = vpop.xlane.xlu1 %3285 }
0x117c   : > { %v3290_v17 = vsub.f32 %v3282_v1, %v3286_v15 }
0x117e   : > { %v3292_v32 = vmul.f32 1.442695, %v3290_v17 }
0x117f   : > { %v3289_v21 = vpop.xlane.xlu0 %3288 }
0x1180   : > { %6292 = vpow2.f32 %v3292_v32  ;;  %v3291_v23 = vsub.f32 %v3283_v10, %v3289_v21 }
0x1182   : > { %v3294_v24 = vmul.f32 1.442695, %v3291_v23 }
0x1184   : > { %6294 = vpow2.f32 %v3294_v24 }
0x118d   : > { %v6293_v25 = vpop.eup %6292 }
0x118e   : > { %v3296_v3 = vsel %vm1203_vm3, %v6293_v25, 0.0 }
0x118f   : > { %3297 = vadd.xlane.f32.xlu0 %v3296_v3 }
0x1191   : > { %v6295_v27 = vpop.eup %6294 }
0x1192   : > { %v3299_v28 = vsel %vm1203_vm3, %v6295_v27, 0.0 }
0x1193   : > { %3300 = vadd.xlane.f32.xlu1 %v3299_v28 }
0x11a4   : > { %3620 = vrot.lane.b32.xlu1 %v7308_v0, %s6672_s19 }
0x11a5   : > { %3308 = vrot.lane.b32.xlu0 %v7317_v19, %s6672_s19 }
0x11a8   : > { %3617 = vrot.lane.b32.xlu1 %v7306_v63, %s6672_s19 }
0x1218   : > { %v3298_v19 = vpop.xlane.xlu0 %3297 }
0x1219   : > { %6296 = vrcp.f32 %v3298_v19 }
0x121c   : > { %v3301_v36 = vpop.xlane.xlu1 %3300  ;;  %v3309_v37 = vpop.permute.xlu0 %3308 }
0x121d   : > { %6298 = vrcp.f32 %v3301_v36  ;;  %5759 = vmatpush3.bf16.msra.mxu1 %v3309_v37 }
0x121e   : > { %5776 = vmatprep.subr.bf16.mxu1 %v6670_v12 }
0x1220   : > { %v3621_v53 = vpop.permute.xlu1 %3620 }
0x1221   : > { %v3626_v54 = vsel %vm1151_vm1, %v3621_v53, 0 }
0x1226   : > { %v6297_v40 = vpop.eup %6296 }
0x1227   : > { %v3304_v45 = vmul.f32 %v6297_v40, %v6293_v25 }
0x122a   : > { %v6299_v43 = vpop.eup %6298 }
0x122b   : > { %v3305_v47 = vmul.f32 %v6299_v43, %v6295_v27 }
0x122d   : > { %v3306_v38 = vpack.c.bf16 %v3305_v47, %v3304_v45 }
0x122f   : > { %5761 = vmatmul.mubr.msk.bf16.vlgmr.msra.gmra.mxu1 %vm1203_vm3, %v3306_v38 }
0x1230   : > { %5777 = vmatpush3.bf16.msra.mxu1 %v7372_v26  ;;  %5784 = vmatprep.mubr.msk.bf16.mxu1 %vm6671_vm0, %v6670_v12 }
0x1231   : > { %5778 = vmatprep.subr.bf16.mxu1 %v6670_v12 }
0x1234   : > { %5779 = vmatpush3.bf16.msra.mxu1 %v7376_v34 }
0x1235   : > { %5780 = vmatprep.subr.bf16.mxu1 %v6670_v12 }
0x1238   : > { %5781 = vmatpush3.bf16.msra.mxu1 %v7382_v52 }
0x1239   : > { %5782 = vmatprep.subr.bf16.mxu1 %v6670_v12 }
0x123c   : > { %5783 = vmatpush3.bf16.msra.mxu1 %v7386_v41 }
0x123d   : > { %5794 = vmatprep.subr.bf16.mxu1 %v6670_v12 }
0x123f   : > { %5785 = vmatmul.mubr.msk.bf16.vlgmr.msra.gmra.mxu1 %vm1151_vm1, %v3226_v58  ;;  %v3618_v58 = vpop.permute.xlu1 %3617 }
0x1240   : > { %5795 = vmatpush3.bf16.msra.mxu1 %v7315_v16  ;;  %5796 = vmatprep.mubr.msk.bf16.mxu1 %vm6671_vm0, %v6670_v12 }
0x1241   : > { %5806 = vmatprep.subr.bf16.mxu1 %v6670_v12 }
0x12ef   : > { %v3348_v18 = vpop.f32.mrf.mxu1 }
0x12f1   : > { %v5762_v20 = vpop.f32.mrf.mxu1 }
0x12f3   : > { %v3351_v55 = vpop.f32.mrf.mxu1 }
0x12f4   : > { %v3355_v57 = vpack.c.bf16 %v3351_v55, %v3348_v18 }
0x12f5   : > { %v5763_v30 = vpop.f32.mrf.mxu1 }
0x12f6   : > { %5773 = vmatmul.mubr.msk.bf16.vlgmr.msra.gmra.mxu0 %vm1151_vm1, %v3355_v57 }
0x12f7   : > { %5789 = vmatpush3.bf16.xpose.msra.mxu0 %v3501_v56  ;;  %5790 = vmatprep.mubr.msk.bf16.mxu0 %vm6671_vm0, %v6670_v12 }
0x12f8   : > { %5800 = vmatprep.subr.bf16.mxu0 %v6670_v12 }
0x12fe   : > { %5791 = vmatmul.mubr.msk.bf16.vlgmr.msra.gmra.mxu0 %vm1151_vm1, %v7306_v63 }
0x12ff   : > { %v7409_v48 = vpop.f32.mrf.mxu1  ;;  %5801 = vmatpush3.bf16.xpose.msra.mxu0 %v3626_v54  ;;  %5802 = vmatprep.mubr.msk.bf16.mxu0 %vm6671_vm0, %v6670_v12 }
0x1300   : > { %5812 = vmatprep.subr.bf16.mxu0 %v6670_v12 }
0x1301   : > { %v5786_v0 = vpop.f32.mrf.mxu1 }
0x1303   : > { %v7414_v46 = vpop.f32.mrf.mxu1 }
0x1305   : > { %v5787_v59 = vpop.f32.mrf.mxu1 }
0x1306   : > { %5803 = vmatmul.mubr.msk.bf16.vlgmr.msra.gmra.mxu0 %vm1151_vm1, %v3618_v58 }
0x1307   : > { %5813 = vmatpush3.bf16.msra.mxu0 %v7359_v29  ;;  %5820 = vmatprep.mubr.msk.bf16.mxu0 %vm6671_vm0, %v6670_v12 }
0x1308   : > { %5814 = vmatprep.subr.bf16.mxu0 %v6670_v12 }
0x130b   : > { %5815 = vmatpush3.bf16.msra.mxu0 %v7362_v31 }
0x130c   : > { %5816 = vmatprep.subr.bf16.mxu0 %v6670_v12 }
0x130f   : > { %5817 = vmatpush3.bf16.msra.mxu0 %v7366_v33 }
0x1310   : > { %5818 = vmatprep.subr.bf16.mxu0 %v6670_v12 }
0x1313   : > { %5819 = vmatpush3.bf16.msra.mxu0 %v6139_v14 }
0x13b6   : > { %v3417_v63 = vpop.f32.mrf.mxu0 }
0x13b7   : > { %v3486_v53 = vadd.f32 %v7409_v48, %v3417_v63 }
0x13b8   : > { %v5774_v60 = vpop.f32.mrf.mxu0 }
0x13b9   : > { %v3839_v58 = vadd.f32 %v3486_v53, %v7268_v9  ;;  %v6142_v53 = vld [vmem:[#allocation14 + $0x1e4] ss:$16 sps:$4 sm:$0xff]  }
0x13ba   : > { %v3420_v61 = vpop.f32.mrf.mxu0  ;;  %4141 = vmatprep.subr.bf16.mxu0 %v6142_v53  ;;  %v7519_v53 = vld [vmem:[%s7619_s9 + $0x1] ss:$0 sm:$0xff] }
0x13bb   : > { %v3489_v59 = vadd.f32 %v7414_v46, %v3420_v61 }
0x13bc   : > { %v5775_v62 = vpop.f32.mrf.mxu0 }
0x13bd   : > { %v7447_v62 = vld [vmem:[%s7617_s7 + $0x1] ss:$0 sm:$0xff] }
0x13be   : > { %v3537_v1 = vpop.f32.mrf.mxu0  ;;  %v7451_v48 = vadd.f32 %v7447_v62, %v3839_v58  ;;  %v6143_v58 = vld [vmem:[#allocation14 + $0x1e8] ss:$16 sps:$4 sm:$0xff]  }
0x13bf   : > { %v3544_v2 = vmul.f32 0.125, %v3537_v1  ;;  %v3840_v1 = vadd.f32 %v3489_v59, %v7272_v11  ;;  %v6151_v59 = vld [vmem:[#allocation14 + $0x1cc] ss:$16 sps:$4 sm:$0xff]  }
0x13c0   : > { %v5792_v4 = vpop.f32.mrf.mxu0 }
0x13c1   : > { %v3546_v6 = vsel %vm7059_vm2, %v3544_v2, -1e+30  ;;  %v7455_v63 = vadd.f32 %v7447_v62, %v3840_v1  ;;  %v6149_v1 = vld [vmem:[#allocation14 + $0x1c8] ss:$16 sps:$4 sm:$0xff]  }
0x13c2   : > { %v3540_v7 = vpop.f32.mrf.mxu0  ;;  %v3548_v10 = vsel %vm1203_vm3, %v3546_v6, -inf }
0x13c3   : > { %v3545_v13 = vmul.f32 0.125, %v3540_v7  ;;  %3549 = vmax.xlane.f32.xlu1 %v3548_v10 }
0x13c4   : > { %v5793_v15 = vpop.f32.mrf.mxu0 }
0x13c5   : > { %v3547_v17 = vsel %vm7067_vm4, %v3545_v13, -1e+30 }
0x13c6   : > { %v3662_v32 = vpop.f32.mrf.mxu0  ;;  %v3551_v21 = vsel %vm1203_vm3, %v3547_v17, -inf }
0x13c7   : > { %v3669_v23 = vmul.f32 0.125, %v3662_v32  ;;  %3552 = vmax.xlane.f32.xlu0 %v3551_v21 }
0x13c8   : > { %v5804_v24 = vpop.f32.mrf.mxu0 }
0x13c9   : > { %v3671_v25 = vsel %vm7059_vm2, %v3669_v23, -1e+30 }
0x13ca   : > { %v3665_v3 = vpop.f32.mrf.mxu0  ;;  %v3673_v27 = vsel %vm1203_vm3, %v3671_v25, -inf }
0x13cb   : > { %v3670_v28 = vmul.f32 0.125, %v3665_v3  ;;  %3674 = vmax.xlane.f32.xlu0 %v3673_v27 }
0x13cc   : > { %v5805_v29 = vpop.f32.mrf.mxu0 }
0x13cd   : > { %v3672_v31 = vsel %vm7067_vm4, %v3670_v28, -1e+30 }
0x13ce   : > { %v3676_v33 = vsel %vm1203_vm3, %v3672_v31, -inf }
0x13cf   : > { %3677 = vmax.xlane.f32.xlu0 %v3676_v33 }
0x144c   : > { %v3550_v19 = vpop.xlane.xlu1 %3549 }
0x144d   : > { %v3554_v36 = vsub.f32 %v3546_v6, %v3550_v19 }
0x144f   : > { %v3556_v37 = vmul.f32 1.442695, %v3554_v36 }
0x1450   : > { %v3553_v40 = vpop.xlane.xlu0 %3552 }
0x1451   : > { %6300 = vpow2.f32 %v3556_v37  ;;  %v3555_v43 = vsub.f32 %v3547_v17, %v3553_v40 }
0x1453   : > { %v3558_v42 = vmul.f32 1.442695, %v3555_v43 }
0x1454   : > { %v3675_v45 = vpop.xlane.xlu0 %3674 }
0x1455   : > { %6302 = vpow2.f32 %v3558_v42  ;;  %v3679_v47 = vsub.f32 %v3671_v25, %v3675_v45 }
0x1457   : > { %v3681_v38 = vmul.f32 1.442695, %v3679_v47 }
0x1458   : > { %v3678_v14 = vpop.xlane.xlu0 %3677 }
0x1459   : > { %6304 = vpow2.f32 %v3681_v38  ;;  %v3680_v18 = vsub.f32 %v3672_v31, %v3678_v14 }
0x145b   : > { %v3683_v20 = vmul.f32 1.442695, %v3680_v18 }
0x145d   : > { %6306 = vpow2.f32 %v3683_v20 }
0x145e   : > { %v6301_v50 = vpop.eup %6300 }
0x145f   : > { %v3560_v55 = vsel %vm1203_vm3, %v6301_v50, 0.0 }
0x1460   : > { %3561 = vadd.xlane.f32.xlu1 %v3560_v55 }
0x1462   : > { %v6303_v57 = vpop.eup %6302 }
0x1463   : > { %v3563_v30 = vsel %vm1203_vm3, %v6303_v57, 0.0 }
0x1464   : > { %3564 = vadd.xlane.f32.xlu0 %v3563_v30 }
0x1466   : > { %v6305_v56 = vpop.eup %6304 }
0x1467   : > { %v3685_v54 = vsel %vm1203_vm3, %v6305_v56, 0.0 }
0x1468   : > { %3686 = vadd.xlane.f32.xlu1 %v3685_v54  ;;  %v6145_v54 = vld [vmem:[#allocation14 + $0x1ec] ss:$16 sps:$4 sm:$0xff]  }
0x146a   : > { %v6307_v0 = vpop.eup %6306 }
0x146b   : > { %v3688_v60 = vsel %vm1203_vm3, %v6307_v0, 0.0 }
0x146c   : > { %3689 = vadd.xlane.f32.xlu0 %v3688_v60  ;;  %v6146_v60 = vld [vmem:[#allocation14 + $0x1c0] ss:$16 sps:$4 sm:$0xff]  }
0x1470   : > { %3859 = vadd.xlane.f32.xlu0 %v7451_v48 }
0x1474   : > { %3861 = vadd.xlane.f32.xlu0 %v7455_v63 }
0x1479   : > { %3697 = vrot.lane.b32.xlu1 %v7315_v16, %s6672_s19  ;;  %s6572_s19 = scalar_lea.vmem %s7562_s3, 512 }
0x147a   : > { %p6573_p5 = scmp.ne.s32.totalorder %s7562_s3, %s6572_s19 }
0x147c   : > { %p6574_p9 = pnand %p6573_p5, %p7685_p8 }
0x147e   : > { %p6575_p12 = pneg %p6574_p9 }
0x14e9   : > { %v3562_v9 = vpop.xlane.xlu1 %3561 }
0x14ea   : > { %6308 = vrcp.f32 %v3562_v9  ;;  %v6157_v9 = vld [vmem:[#allocation14 + $0x1ac] ss:$16 sps:$4 sm:$0xff]  }
0x14ed   : > { %v3565_v46 = vpop.xlane.xlu0 %3564 }
0x14ee   : > { %6310 = vrcp.f32 %v3565_v46  ;;  %v6152_v46 = vld [vmem:[#allocation14 + $0x1a0] ss:$16 sps:$4 sm:$0xff]  }
0x14f1   : > { %v3687_v61 = vpop.xlane.xlu1 %3686 }
0x14f2   : > { %6312 = vrcp.f32 %v3687_v61  ;;  %v6155_v61 = vld [vmem:[#allocation14 + $0x1a8] ss:$16 sps:$4 sm:$0xff]  }
0x14f5   : > { %v3690_v11 = vpop.xlane.xlu0 %3689  ;;  %v3698_v32 = vpop.permute.xlu1 %3697 }
0x14f6   : > { %6314 = vrcp.f32 %v3690_v11  ;;  %v6158_v11 = vld [vmem:[#allocation14 + $0x180] ss:$16 sps:$4 sm:$0xff]  }
0x14f7   : > { %v6309_v2 = vpop.eup %6308 }
0x14f8   : > { %v3568_v13 = vmul.f32 %v6309_v2, %v6301_v50  ;;  %v6160_v2 = vld [vmem:[#allocation14 + $0x184] ss:$16 sps:$4 sm:$0xff]  }
0x14f9   : > { %v3860_v4 = vpop.xlane.xlu0 %3859 }
0x14fa   : > { %v3867_v6 = vmul.f32 0.0078125, %v3860_v4  ;;  %v6161_v4 = vld [vmem:[#allocation14 + $0x188] ss:$16 sps:$4 sm:$0xff]  }
0x14fb   : > { %v6311_v7 = vpop.eup %6310 }
0x14fc   : > { %v7461_v10 = vsub.f32 %v7451_v48, %v3867_v6  ;;  %v3569_v15 = vmul.f32 %v6311_v7, %v6303_v57  ;;  %v6163_v6 = vld [vmem:[#allocation14 + $0x18c] ss:$16 sps:$4 sm:$0xff]   ;;  %v6166_v7 = vld [vmem:[#allocation14 + $0x164] ss:$16 sps:$4 sm:$0xff]  }
0x14fd   : > { %v3862_v45 = vpop.xlane.xlu0 %3861 }
0x14fe   : > { %v3570_v17 = vpack.c.bf16 %v3569_v15, %v3568_v13  ;;  %v3875_v16 = vmul.f32 %v7461_v10, %v7461_v10  ;;  %v3868_v18 = vmul.f32 0.0078125, %v3862_v45  ;;  %v6169_v13 = vld [vmem:[#allocation14 + $0x16c] ss:$16 sps:$4 sm:$0xff]   ;;  %v6164_v15 = vld [vmem:[#allocation14 + $0x160] ss:$16 sps:$4 sm:$0xff]  }
0x14ff   : > { %v6313_v21 = vpop.eup %6312 }
0x1500   : > { %5797 = vmatmul.mubr.msk.bf16.vlgmr.msra.gmra.mxu1 %vm1203_vm3, %v3570_v17  ;;  %3879 = vadd.xlane.f32.xlu1 %v3875_v16  ;;  %v3693_v24 = vmul.f32 %v6313_v21, %v6305_v56  ;;  %v7490_v30 = vsub.f32 %v7455_v63, %v3868_v18  ;;  %v6167_v17 = vld [vmem:[#allocation14 + $0x168] ss:$16 sps:$4 sm:$0xff]   ;;  %v6172_v16 = vld [vmem:[#allocation14 + $0x144] ss:$16 sps:$4 sm:$0xff]   ;;  %v6170_v21 = vld [vmem:[#allocation14 + $0x140] ss:$16 sps:$4 sm:$0xff]  }
0x1501   : > { %5807 = vmatpush3.bf16.msra.mxu1 %v3698_v32  ;;  %5808 = vmatprep.mubr.msk.bf16.mxu1 %vm6671_vm0, %v6670_v12  ;;  %v6175_v32 = vld [vmem:[#allocation14 + $0x14c] ss:$16 sps:$4 sm:$0xff]  }
0x1502   : > { %5824 = vmatprep.subr.bf16.mxu1 %v6670_v12 }
0x1503   : > { %v6315_v23 = vpop.eup %6314 }
0x1504   : > { %v3694_v25 = vmul.f32 %v6315_v23, %v6307_v0  ;;  %v6140_v0 = vld [vmem:[#allocation14 + $0x1e0] ss:$16 sps:$4 sm:$0xff]   ;;  %v6173_v23 = vld [vmem:[#allocation14 + $0x148] ss:$16 sps:$4 sm:$0xff]  }
0x1506   : > { %v3695_v3 = vpack.c.bf16 %v3694_v25, %v3693_v24  ;;  %v6178_v24 = vld [vmem:[#allocation14 + $0x124] ss:$16 sps:$4 sm:$0xff]   ;;  %v6181_v25 = vld [vmem:[#allocation14 + $0x12c] ss:$16 sps:$4 sm:$0xff]  }
0x1508   : > { %5809 = vmatmul.mubr.msk.bf16.vlgmr.msra.gmra.mxu1 %vm1203_vm3, %v3695_v3  ;;  %v6176_v3 = vld [vmem:[#allocation14 + $0x120] ss:$16 sps:$4 sm:$0xff]  }
0x1509   : > { %5825 = vmatpush3.bf16.msra.mxu1 %v7372_v26  ;;  %5832 = vmatprep.mubr.msk.bf16.mxu1 %vm6671_vm0, %v6670_v12 }
0x150a   : > { %5826 = vmatprep.subr.bf16.mxu1 %v6670_v12 }
0x150d   : > { %5827 = vmatpush3.bf16.msra.mxu1 %v7376_v34 }
0x150e   : > { %5828 = vmatprep.subr.bf16.mxu1 %v6670_v12 }
0x1511   : > { %5829 = vmatpush3.bf16.msra.mxu1 %v7382_v52 }
0x1512   : > { %5830 = vmatprep.subr.bf16.mxu1 %v6670_v12 }
0x1515   : > { %5831 = vmatpush3.bf16.msra.mxu1 %v7386_v41 }
0x1516   : > { %4194 = vmatprep.subr.bf16.mxu1 %v6145_v54 }
0x15c0   : > { %v3608_v27 = vpop.f32.mrf.mxu1 }
0x15c2   : > { %v5798_v28 = vpop.f32.mrf.mxu1 }
0x15c3   : > { %v6184_v28 = vld [vmem:[#allocation14 + $0x104] ss:$16 sps:$4 sm:$0xff]  }
0x15c4   : > { %v3611_v29 = vpop.f32.mrf.mxu1 }
0x15c5   : > { %v3615_v31 = vpack.c.bf16 %v3611_v29, %v3608_v27  ;;  %v6179_v27 = vld [vmem:[#allocation14 + $0x128] ss:$16 sps:$4 sm:$0xff]   ;;  %v6187_v29 = vld [vmem:[#allocation14 + $0x10c] ss:$16 sps:$4 sm:$0xff]  }
0x15c6   : > { %v5799_v26 = vpop.f32.mrf.mxu1 }
0x15c7   : > { %5833 = vmatmul.mubr.msk.bf16.vlgmr.msra.gmra.mxu1 %vm1151_vm1, %v3615_v31  ;;  %v6182_v31 = vld [vmem:[#allocation14 + $0x100] ss:$16 sps:$4 sm:$0xff]   ;;  %v6185_v26 = vld [vmem:[#allocation14 + $0x108] ss:$16 sps:$4 sm:$0xff]  }
0x15c8   : > { %v3737_v33 = vpop.f32.mrf.mxu1  ;;  %4226 = vmatprep.mubr.bf16.mxu1 %v6673_v5  ;;  %4195 = vmatpush1.bf16.msra.mxu1 %v6143_v58 }
0x15c9   : > { %4196 = vmatprep.subr.bf16.mxu1 %v6151_v59  ;;  %v6190_v59 = vld [vmem:[#allocation15 + $0x138] sm:$0xff]  }
0x15ca   : > { %v5810_v19 = vpop.f32.mrf.mxu1 }
0x15cc   : > { %v3740_v34 = vpop.f32.mrf.mxu1  ;;  %4197 = vmatpush1.bf16.msra.mxu1 %v6149_v1  ;;  %v6192_v1 = vld [vmem:[#allocation15 + $0x170] sm:$0xff]  }
0x15cd   : > { %v3744_v36 = vpack.c.bf16 %v3740_v34, %v3737_v33  ;;  %4198 = vmatprep.subr.bf16.mxu1 %v6157_v9  ;;  %v3880_v33 = vpop.xlane.xlu1 %3879  ;;  %v6194_v9 = vld [vmem:[#allocation15 + $0x130] sm:$0xff]  }
0x15ce   : > { %v5811_v37 = vpop.f32.mrf.mxu1  ;;  %v3887_v19 = vmul.f32 0.0078125, %v3880_v33  ;;  %v6218_v33 = vld [vmem:[#allocation15 + $0x100] sm:$0xff]  }
0x15cf   : > { %5821 = vmatmul.mubr.msk.bf16.vlgmr.msra.gmra.mxu0 %vm1151_vm1, %v3744_v36 }
0x15d0   : > { %4173 = vmatprep.mubr.bf16.mxu0 %v6673_v5  ;;  %4142 = vmatpush1.bf16.msra.mxu0 %v6140_v0  ;;  %v3891_v37 = vadd.f32 1e-05, %v3887_v19  ;;  %v6219_v19 = vld [vmem:[#allocation15 + $0x180] sm:$0xff]  }
0x15d1   : > { %4199 = vmatpush1.bf16.msra.mxu1 %v6155_v61  ;;  %v6196_v61 = vld [vmem:[#allocation15 + $0x168] sm:$0xff]  }
0x15d2   : > { %4200 = vmatprep.subr.bf16.mxu1 %v6163_v6  ;;  %6316 = vrsqrt.f32 %v3891_v37  ;;  %v6201_v6 = vld [vmem:[#allocation15 + $0x1e0] sm:$0xff]  }
0x15d5   : > { %4201 = vmatpush1.bf16.msra.mxu1 %v6161_v4  ;;  %v6200_v4 = vld [vmem:[#allocation15 + $0x160] sm:$0xff]  }
0x15d6   : > { %4202 = vmatprep.subr.bf16.mxu1 %v6169_v13  ;;  %v6203_v13 = vld [vmem:[#allocation15 + $0x1a0] sm:$0xff]  }
0x15d9   : > { %4203 = vmatpush1.bf16.msra.mxu1 %v6167_v17  ;;  %v6205_v17 = vld [vmem:[#allocation15 + $0x1d8] sm:$0xff]  }
0x15da   : > { %4204 = vmatprep.subr.bf16.mxu1 %v6175_v32  ;;  %v6207_v32 = vld [vmem:[#allocation15 + $0x198] sm:$0xff]  }
0x15dd   : > { %4205 = vmatpush1.bf16.msra.mxu1 %v6173_v23  ;;  %v6209_v23 = vld [vmem:[#allocation15 + $0x1d0] sm:$0xff]  }
0x15de   : > { %4206 = vmatprep.subr.bf16.mxu1 %v6181_v25  ;;  %v6211_v25 = vld [vmem:[#allocation15 + $0x190] sm:$0xff]  }
0x15e1   : > { %4207 = vmatpush1.bf16.msra.mxu1 %v6179_v27  ;;  %v6213_v27 = vld [vmem:[#allocation15 + $0x1c8] sm:$0xff]  }
0x15e2   : > { %4208 = vmatprep.subr.bf16.mxu1 %v6187_v29  ;;  %v6215_v29 = vld [vmem:[#allocation15 + $0x188] sm:$0xff]  }
0x15e5   : > { %4209 = vmatpush1.bf16.msra.mxu1 %v6185_v26  ;;  %v6217_v26 = vld [vmem:[#allocation15 + $0x1c0] sm:$0xff]  }
0x1687   : > { %v3826_v12 = vpop.f32.mrf.mxu1 }
0x1689   : > { %v5834_v52 = vpop.f32.mrf.mxu1 }
0x168b   : > { %v3829_v41 = vpop.f32.mrf.mxu1 }
0x168d   : > { %v5835_v40 = vpop.f32.mrf.mxu1 }
0x168f   : > { %v3782_v43 = vpop.f32.mrf.mxu0 }
0x1690   : > { %v3827_v42 = vadd.f32 %v3826_v12, %v3782_v43 }
0x1691   : > { %v5822_v47 = vpop.f32.mrf.mxu0 }
0x1692   : > { %v3841_v38 = vadd.f32 %v3827_v42, %v7276_v8  ;;  %v3876_v8 = vmul.f32 %v7490_v30, %v7490_v30 }
0x1693   : > { %v3785_v14 = vpop.f32.mrf.mxu0 }
0x1694   : > { %v3830_v20 = vadd.f32 %v3829_v41, %v3785_v14  ;;  %v7485_v50 = vadd.f32 %v7447_v62, %v3841_v38  ;;  %v6317_v14 = vpop.eup %6316 }
0x1695   : > { %v5823_v55 = vpop.f32.mrf.mxu0  ;;  %v3899_v18 = vmul.f32 %v6317_v14, %v7461_v10 }
0x1696   : > { %v3842_v57 = vadd.f32 %v3830_v20, %v7280_v39  ;;  %3863 = vadd.xlane.f32.xlu0 %v7485_v50  ;;  %v6148_v39 = vld [vmem:[#allocation14 + $0x1c4] ss:$16 sps:$4 sm:$0xff]   ;;  %v7512_v20 = vld [vmem:[%s7618_s8 + $0x1] ss:$0 sm:$0xff] }
0x1697   : > { %4143 = vmatprep.subr.bf16.mxu0 %v6148_v39  ;;  %v6189_v39 = vld [vmem:[#allocation15 + $0x1f8] sm:$0xff]  }
0x1698   : > { %v7493_v56 = vadd.f32 %v7447_v62, %v3842_v57  ;;  %4144 = vmatpush1.bf16.msra.mxu0 %v6146_v60  ;;  %v6154_v62 = vld [vmem:[#allocation14 + $0x1a4] ss:$16 sps:$4 sm:$0xff]   ;;  %v6191_v60 = vld [vmem:[#allocation15 + $0x1b8] sm:$0xff]   ;;  %5486 = vmatprep.subr.bf16.mxu1 %v6189_v39 }
0x1699   : > { %4145 = vmatprep.subr.bf16.mxu0 %v6154_v62  ;;  %v6193_v62 = vld [vmem:[#allocation15 + $0x1f0] sm:$0xff]  }
0x169a   : > { %3865 = vadd.xlane.f32.xlu0 %v7493_v56 }
0x169c   : > { %4146 = vmatpush1.bf16.msra.mxu0 %v6152_v46  ;;  %v6195_v46 = vld [vmem:[#allocation15 + $0x1b0] sm:$0xff]  }
0x169d   : > { %4147 = vmatprep.subr.bf16.mxu0 %v6160_v2  ;;  %v6198_v2 = vld [vmem:[#allocation15 + $0x128] sm:$0xff]  }
0x169e   : > { %3881 = vadd.xlane.f32.xlu0 %v3876_v8  ;;  %v3909_v8 = vmul.f32 %v7512_v20, %v3899_v18 }
0x16a0   : > { %4148 = vmatpush1.bf16.msra.mxu0 %v6158_v11  ;;  %v3919_v0 = vadd.f32 %v7519_v53, %v3909_v8  ;;  %v6197_v11 = vld [vmem:[#allocation15 + $0x1e8] sm:$0xff]  }
0x16a1   : > { %4149 = vmatprep.subr.bf16.mxu0 %v6166_v7  ;;  %v6202_v7 = vld [vmem:[#allocation15 + $0x120] sm:$0xff]  }
0x16a4   : > { %4150 = vmatpush1.bf16.msra.mxu0 %v6164_v15  ;;  %v6204_v15 = vld [vmem:[#allocation15 + $0x158] sm:$0xff]  }
0x16a5   : > { %4151 = vmatprep.subr.bf16.mxu0 %v6172_v16  ;;  %v6206_v16 = vld [vmem:[#allocation15 + $0x118] sm:$0xff]  }
0x16a8   : > { %4152 = vmatpush1.bf16.msra.mxu0 %v6170_v21  ;;  %v6208_v21 = vld [vmem:[#allocation15 + $0x150] sm:$0xff]  }
0x16a9   : > { %4153 = vmatprep.subr.bf16.mxu0 %v6178_v24  ;;  %v6210_v24 = vld [vmem:[#allocation15 + $0x110] sm:$0xff]  }
0x16ac   : > { %4154 = vmatpush1.bf16.msra.mxu0 %v6176_v3  ;;  %v6212_v3 = vld [vmem:[#allocation15 + $0x148] sm:$0xff]  }
0x16ad   : > { %4155 = vmatprep.subr.bf16.mxu0 %v6184_v28  ;;  %v6214_v28 = vld [vmem:[#allocation15 + $0x108] sm:$0xff]  }
0x16b0   : > { %4156 = vmatpush1.bf16.msra.mxu0 %v6182_v31  ;;  %v6216_v31 = vld [vmem:[#allocation15 + $0x140] sm:$0xff]  }
0x171f   : > { %v3864_v34 = vpop.xlane.xlu0 %3863 }
0x1720   : > { %v3869_v36 = vmul.f32 0.0078125, %v3864_v34 }
0x1722   : > { %v7499_v12 = vsub.f32 %v7485_v50, %v3869_v36 }
0x1723   : > { %v3866_v52 = vpop.xlane.xlu0 %3865 }
0x1724   : > { %v3870_v41 = vmul.f32 0.0078125, %v3866_v52  ;;  %v3877_v40 = vmul.f32 %v7499_v12, %v7499_v12 }
0x1726   : > { %v7504_v43 = vsub.f32 %v7493_v56, %v3870_v41  ;;  %3883 = vadd.xlane.f32.xlu0 %v3877_v40 }
0x1727   : > { %v3882_v42 = vpop.xlane.xlu0 %3881 }
0x1728   : > { %v3888_v45 = vmul.f32 0.0078125, %v3882_v42  ;;  %v3878_v47 = vmul.f32 %v7504_v43, %v7504_v43 }
0x172a   : > { %v3892_v38 = vadd.f32 1e-05, %v3888_v45  ;;  %3885 = vadd.xlane.f32.xlu0 %v3878_v47 }
0x172c   : > { %6318 = vrsqrt.f32 %v3892_v38 }
0x1739   : > { %v6319_v55 = vpop.eup %6318 }
0x173a   : > { %v3900_v57 = vmul.f32 %v6319_v55, %v7490_v30  ;;  %v6188_v30 = vld [vmem:[#allocation15 + $0x178] sm:$0xff]  }
0x173b   : > { %5458 = vmatprep.subr.bf16.mxu0 %v6188_v30 }
0x173c   : > { %v3910_v54 = vmul.f32 %v7512_v20, %v3900_v57 }
0x173e   : > { %v3920_v10 = vadd.f32 %v7519_v53, %v3910_v54  ;;  %v5185_v54 = vld [vmem:[%s7621_s11 + $0x4] sm:$0xf] }
0x1740   : > { %v3923_v58 = vpack.c.bf16 %v3920_v10, %v3919_v0  ;;  %v3976_v10 = vrot.slane %v5185_v54, %v2015_v51 }
0x1742   : > { %4174 = vmatmul.mubr.bf16.vlgmr.msra.gmra.mxu0 %v3923_v58  ;;  %4227 = vmatmul.mubr.bf16.vlgmr.msra.gmra.mxu1 %v3923_v58 }
0x1743   : > { %4183 = vmatprep.mubr.bf16.mxu0 %v6673_v5  ;;  %4236 = vmatprep.mubr.bf16.mxu1 %v6673_v5  ;;  %v6199_v5 = vld [vmem:[#allocation15 + $0x1a8] sm:$0xff]  }
0x1744   : > { %5459 = vmatpush3.bf16.msra.mxu0 %v6190_v59  ;;  %5487 = vmatpush3.bf16.msra.mxu1 %v6191_v60 }
0x1745   : > { %5460 = vmatprep.subr.bf16.mxu0 %v6192_v1  ;;  %5488 = vmatprep.subr.bf16.mxu1 %v6193_v62 }
0x1748   : > { %5461 = vmatpush3.bf16.msra.mxu0 %v6194_v9  ;;  %5489 = vmatpush3.bf16.msra.mxu1 %v6195_v46 }
0x1749   : > { %5462 = vmatprep.subr.bf16.mxu0 %v6196_v61  ;;  %5490 = vmatprep.subr.bf16.mxu1 %v6197_v11 }
0x174c   : > { %5463 = vmatpush3.bf16.msra.mxu0 %v6198_v2  ;;  %5491 = vmatpush3.bf16.msra.mxu1 %v6199_v5 }
0x174d   : > { %5464 = vmatprep.subr.bf16.mxu0 %v6200_v4  ;;  %5492 = vmatprep.subr.bf16.mxu1 %v6201_v6 }
0x1750   : > { %5465 = vmatpush3.bf16.msra.mxu0 %v6202_v7  ;;  %5493 = vmatpush3.bf16.msra.mxu1 %v6203_v13 }
0x1751   : > { %5466 = vmatprep.subr.bf16.mxu0 %v6204_v15  ;;  %5494 = vmatprep.subr.bf16.mxu1 %v6205_v17 }
0x1754   : > { %5467 = vmatpush3.bf16.msra.mxu0 %v6206_v16  ;;  %5495 = vmatpush3.bf16.msra.mxu1 %v6207_v32 }
0x1755   : > { %5468 = vmatprep.subr.bf16.mxu0 %v6208_v21  ;;  %5496 = vmatprep.subr.bf16.mxu1 %v6209_v23 }
0x1758   : > { %5469 = vmatpush3.bf16.msra.mxu0 %v6210_v24  ;;  %5497 = vmatpush3.bf16.msra.mxu1 %v6211_v25 }
0x1759   : > { %5470 = vmatprep.subr.bf16.mxu0 %v6212_v3  ;;  %5498 = vmatprep.subr.bf16.mxu1 %v6213_v27 }
0x175c   : > { %5471 = vmatpush3.bf16.msra.mxu0 %v6214_v28  ;;  %5499 = vmatpush3.bf16.msra.mxu1 %v6215_v29 }
0x175d   : > { %5472 = vmatprep.subr.bf16.mxu0 %v6216_v31  ;;  %5500 = vmatprep.subr.bf16.mxu1 %v6217_v26 }
0x1760   : > { %5473 = vmatpush3.bf16.msra.mxu0 %v6218_v33  ;;  %5501 = vmatpush3.bf16.msra.mxu1 %v6219_v19 }
0x17af   : > { %v3884_v34 = vpop.xlane.xlu0 %3883 }
0x17b0   : > { %v3889_v36 = vmul.f32 0.0078125, %v3884_v34 }
0x17b2   : > { %v3893_v37 = vadd.f32 1e-05, %v3889_v36 }
0x17b3   : > { %v3886_v52 = vpop.xlane.xlu0 %3885 }
0x17b4   : > { %6320 = vrsqrt.f32 %v3893_v37  ;;  %v3890_v41 = vmul.f32 0.0078125, %v3886_v52 }
0x17b6   : > { %v3894_v40 = vadd.f32 1e-05, %v3890_v41 }
0x17b8   : > { %6322 = vrsqrt.f32 %v3894_v40 }
0x17c1   : > { %v6321_v42 = vpop.eup %6320 }
0x17c2   : > { %v3901_v45 = vmul.f32 %v6321_v42, %v7499_v12 }
0x17c4   : > { %v3911_v14 = vmul.f32 %v7512_v20, %v3901_v45 }
0x17c5   : > { %v6323_v47 = vpop.eup %6322 }
0x17c6   : > { %v3902_v38 = vmul.f32 %v6323_v47, %v7504_v43  ;;  %v3921_v55 = vadd.f32 %v7519_v53, %v3911_v14  ;;  %v3968_v43 = vrot.slane %v5185_v54, %v2007_v49 }
0x17c8   : > { %v3912_v18 = vmul.f32 %v7512_v20, %v3902_v38  ;;  %v3964_v20 = vrot.slane %v5185_v54, %v2003_v22 }
0x17ca   : > { %v3922_v57 = vadd.f32 %v7519_v53, %v3912_v18  ;;  %v3972_v53 = vrot.slane %v5185_v54, %v2011_v44 }
0x17cc   : > { %v3924_v8 = vpack.c.bf16 %v3922_v57, %v3921_v55 }
0x17ce   : > { %4184 = vmatmul.mubr.bf16.gmra.mxu0 %v3924_v8  ;;  %4237 = vmatmul.mubr.bf16.gmra.mxu1 %v3924_v8 }
0x1802   : > { %v4175_v0 = vpop.f32.mrf.mxu0  ;;  %v4228_v12 = vpop.f32.mrf.mxu1 }
0x1803   : > { %v4176_v46 = vadd.f32 %v4175_v0, %v3964_v20  ;;  %v4229_v61 = vadd.f32 %v4228_v12, %v3972_v53 }
0x1804   : > { %v4177_v58 = vpop.f32.mrf.mxu0  ;;  %v4230_v30 = vpop.f32.mrf.mxu1 }
0x1805   : > { %v4178_v60 = vadd.f32 %v4177_v58, %v3968_v43  ;;  %v4231_v1 = vadd.f32 %v4230_v30, %v3976_v10  ;;  %v4247_v7 = vmax.f32 %v4176_v46, 0.0  ;;  %v4249_v13 = vmax.f32 %v4229_v61, 0.0 }
0x1806   : > { %v4179_v39 = vpop.f32.mrf.mxu0  ;;  %v4232_v59 = vpop.f32.mrf.mxu1 }
0x1807   : > { %v4180_v62 = vadd.f32 %v4179_v39, %v3964_v20  ;;  %v4233_v9 = vadd.f32 %v4232_v59, %v3972_v53  ;;  %v4248_v22 = vmax.f32 %v4178_v60, 0.0  ;;  %v4250_v6 = vmax.f32 %v4231_v1, 0.0 }
0x1808   : > { %v4181_v49 = vpop.f32.mrf.mxu0  ;;  %v4234_v11 = vpop.f32.mrf.mxu1 }
0x1809   : > { %v4182_v2 = vadd.f32 %v4181_v49, %v3968_v43  ;;  %v4235_v51 = vadd.f32 %v4234_v11, %v3976_v10  ;;  %v4251_v5 = vmax.f32 %v4180_v62, 0.0  ;;  %v4253_v4 = vmax.f32 %v4233_v9, 0.0 }
0x180b   : > { %v4252_v35 = vmax.f32 %v4182_v2, 0.0  ;;  %v4254_v44 = vmax.f32 %v4235_v51, 0.0  ;;  %v4263_v16 = vpack.c.bf16 %v4251_v5, %v4247_v7  ;;  %v4265_v32 = vpack.c.bf16 %v4253_v4, %v4249_v13 }
0x180d   : > { %v4264_v15 = vpack.c.bf16 %v4252_v35, %v4248_v22  ;;  %v4266_v17 = vpack.c.bf16 %v4254_v44, %v4250_v6 }
0x180f   : > { %4568 = vmatprep.mubr.bf16.mxu0 %v4264_v15  ;;  %4617 = vmatprep.mubr.bf16.mxu1 %v4266_v17 }
0x1810   : > { %4569 = vmatmul.mubr.bf16.vlgmr.msra.gmra.mxu0 %v4263_v16  ;;  %4618 = vmatmul.mubr.bf16.vlgmr.msra.gmra.mxu1 %v4265_v32 }
0x188e   : > { %v4185_v21 = vpop.f32.mrf.mxu0  ;;  %v4238_v23 = vpop.f32.mrf.mxu1 }
0x188f   : > { %v4186_v33 = vadd.f32 %v4185_v21, %v3964_v20  ;;  %v4239_v19 = vadd.f32 %v4238_v23, %v3972_v53 }
0x1890   : > { %v4187_v24 = vpop.f32.mrf.mxu0  ;;  %v4240_v25 = vpop.f32.mrf.mxu1 }
0x1891   : > { %v4188_v28 = vadd.f32 %v4187_v24, %v3968_v43  ;;  %v4241_v29 = vadd.f32 %v4240_v25, %v3976_v10  ;;  %v4255_v14 = vmax.f32 %v4186_v33, 0.0  ;;  %v4257_v18 = vmax.f32 %v4239_v19, 0.0  ;;  %v6220_v19 = vld [vmem:[#allocation17 + $0x38] sm:$0xff]  }
0x1892   : > { %v4189_v3 = vpop.f32.mrf.mxu0  ;;  %v4242_v27 = vpop.f32.mrf.mxu1  ;;  %5836 = vmatprep.subr.bf16.mxu0 %v6220_v19 }
0x1893   : > { %v4190_v31 = vadd.f32 %v4189_v3, %v3964_v20  ;;  %v4243_v26 = vadd.f32 %v4242_v27, %v3972_v53  ;;  %v4256_v42 = vmax.f32 %v4188_v28, 0.0  ;;  %v4258_v45 = vmax.f32 %v4241_v29, 0.0  ;;  %5837 = vmatpush3.bf16.msra.mxu0 %v6220_v19 }
0x1894   : > { %v4191_v34 = vpop.f32.mrf.mxu0  ;;  %v4244_v36 = vpop.f32.mrf.mxu1 }
0x1895   : > { %v4192_v37 = vadd.f32 %v4191_v34, %v3968_v43  ;;  %v4245_v52 = vadd.f32 %v4244_v36, %v3976_v10  ;;  %v4259_v41 = vmax.f32 %v4190_v31, 0.0  ;;  %v4261_v40 = vmax.f32 %v4243_v26, 0.0  ;;  %v5219_v43 = vld [vmem:[%s7623_s13 + $0x1] ss:$0 sm:$0xff] }
0x1897   : > { %v4260_v47 = vmax.f32 %v4192_v37, 0.0  ;;  %v4262_v38 = vmax.f32 %v4245_v52, 0.0  ;;  %v4267_v8 = vpack.c.bf16 %v4259_v41, %v4255_v14  ;;  %v4269_v54 = vpack.c.bf16 %v4261_v40, %v4257_v18 }
0x1899   : > { %v4268_v55 = vpack.c.bf16 %v4260_v47, %v4256_v42  ;;  %v4270_v57 = vpack.c.bf16 %v4262_v38, %v4258_v45 }
0x189b   : > { %4576 = vmatprep.mubr.bf16.mxu0 %v4268_v55  ;;  %4625 = vmatprep.mubr.bf16.mxu1 %v4270_v57  ;;  %v6221_v55 = vld [vmem:[#allocation17 + $0x30] sm:$0xff]   ;;  %v6222_v57 = vld [vmem:[#allocation17 + $0x28] sm:$0xff]  }
0x189c   : > { %4577 = vmatmul.mubr.bf16.gmra.mxu0 %v4267_v8  ;;  %4626 = vmatmul.mubr.bf16.gmra.mxu1 %v4269_v54  ;;  %v6223_v54 = vld [vmem:[#allocation17 + $0x20] sm:$0xff]  }
0x189d   : > { %5838 = vmatprep.subr.bf16.mxu0 %v6221_v55 }
0x189e   : > { %5839 = vmatpush3.bf16.msra.mxu0 %v6221_v55 }
0x189f   : > { %5840 = vmatprep.subr.bf16.mxu0 %v6222_v57 }
0x18a2   : > { %5841 = vmatpush3.bf16.msra.mxu0 %v6222_v57 }
0x18a3   : > { %5842 = vmatprep.subr.bf16.mxu0 %v6223_v54 }
0x18a6   : > { %5843 = vmatpush3.bf16.msra.mxu0 %v6223_v54 }
0x18d0   : > { %v5474_v0 = vpop.f32.mrf.mxu0  ;;  %v5502_v12 = vpop.f32.mrf.mxu1 }
0x18d2   : > { %v5475_v10 = vpop.f32.mrf.mxu0  ;;  %v5503_v20 = vpop.f32.mrf.mxu1 }
0x18d3   : > { %v5476_v53 = vadd.f32 %v5475_v10, %v5474_v0  ;;  %v5504_v59 = vadd.f32 %v5503_v20, %v5502_v12  ;;  %v5252_v12 = vld [vmem:[%s7681_s21] ss:$0 sm:$0xff]  ;;  %s7684_s21 = sld [smem:[#allocation37_spill]] }
0x18d4   : > { %v5477_v58 = vpop.f32.mrf.mxu0  ;;  %v5505_v30 = vpop.f32.mrf.mxu1  ;;  %v6224_v10 = vld [vmem:[#allocation17 + $0x18] sm:$0xff]  }
0x18d5   : > { %v4571_v39 = vadd.f32 %v5476_v53, %v5219_v43  ;;  %5844 = vmatprep.subr.bf16.mxu0 %v6224_v10 }
0x18d6   : > { %v5478_v60 = vpop.f32.mrf.mxu0  ;;  %v5506_v1 = vpop.f32.mrf.mxu1  ;;  %5845 = vmatpush3.bf16.msra.mxu0 %v6224_v10 }
0x18d7   : > { %v4620_v62 = vadd.f32 %v5504_v59, %v4571_v39  ;;  %v5479_v9 = vadd.f32 %v5478_v60, %v5477_v58  ;;  %v5507_v61 = vadd.f32 %v5506_v1, %v5505_v30  ;;  %v5253_v58 = vld [vmem:[%s7682_s26] ss:$0 sm:$0xff]  ;;  %v6225_v39 = vld [vmem:[#allocation17 + $0x10] sm:$0xff]   ;;  %s6576_s26 = sshll.u32 %s6674_s1, 4  ;;  %s6577_s26 = int_to_ptr.vmem [resolvable:$false] %s6576_s26 }
0x18d8   : > { %5846 = vmatprep.subr.bf16.mxu0 %v6225_v39  ;;  %s6578_s15 = scalar_lea.vmem %s6577_s26, 1024  ;;  %p6579_p1 = scmp.lt.s32.totalorder %s7562_s3, %s6577_s26 }
0x18d9   : > { %v4574_v46 = vadd.f32 %v5479_v9, %v5219_v43  ;;  %v4634_v49 = vadd.f32 %v4620_v62, %v7451_v48  ;;  %v6226_v62 = vld [vmem:[#allocation17 + $0x8] sm:$0xff]   ;;  %v6227_v9 = vld [vmem:[#allocation17] sm:$0xff]   ;;  %s7567_s24 = scalar_lea.hbm %s7684_s21, %s5269_s4  ;;  %p6580_p3 = scmp.lt.s32.totalorder %s6578_s15, %s6572_s19 }
0x18da   : > { %5847 = vmatpush3.bf16.msra.mxu0 %v6225_v39 }
0x18db   : > { %v4623_v11 = vadd.f32 %v5507_v61, %v4574_v46  ;;  %4640 = vadd.xlane.f32.xlu0 %v4634_v49  ;;  %5848 = vmatprep.subr.bf16.mxu0 %v6226_v62  ;;  %p6581_p4 = por %p6580_p3, %p6579_p1 }
0x18dd   : > { %v4635_v2 = vadd.f32 %v4623_v11, %v7455_v63  ;;  %p6582_p2 = pnand %p6581_p4, %p6575_p12 }
0x18de   : > { %5849 = vmatpush3.bf16.msra.mxu0 %v6226_v62 }
0x18df   : > { %4642 = vadd.xlane.f32.xlu0 %v4635_v2  ;;  %5850 = vmatprep.subr.bf16.mxu0 %v6227_v9 }
0x18e2   : > { %5851 = vmatpush3.bf16.msra.mxu0 %v6227_v9 }
0x195c   : > { %v5480_v51 = vpop.f32.mrf.mxu0  ;;  %v5508_v5 = vpop.f32.mrf.mxu1 }
0x195e   : > { %v5481_v4 = vpop.f32.mrf.mxu0  ;;  %v5509_v22 = vpop.f32.mrf.mxu1 }
0x195f   : > { %v5482_v6 = vadd.f32 %v5481_v4, %v5480_v51  ;;  %v5510_v13 = vadd.f32 %v5509_v22, %v5508_v5 }
0x1960   : > { %v5483_v35 = vpop.f32.mrf.mxu0  ;;  %v5511_v44 = vpop.f32.mrf.mxu1 }
0x1961   : > { %v4579_v7 = vadd.f32 %v5482_v6, %v5219_v43 }
0x1962   : > { %v5484_v15 = vpop.f32.mrf.mxu0  ;;  %v5512_v17 = vpop.f32.mrf.mxu1 }
0x1963   : > { %v4628_v16 = vadd.f32 %v5510_v13, %v4579_v7  ;;  %v5485_v32 = vadd.f32 %v5484_v15, %v5483_v35  ;;  %v5513_v23 = vadd.f32 %v5512_v17, %v5511_v44  ;;  %v5254_v17 = vld [vmem:[%s7683_s0] ss:$0 sm:$0xff] }
0x1964   : > { %v4641_v21 = vpop.xlane.xlu0 %4640 }
0x1965   : > { %v4582_v48 = vadd.f32 %v5485_v32, %v5219_v43  ;;  %v4648_v24 = vmul.f32 0.0078125, %v4641_v21  ;;  %v4636_v63 = vadd.f32 %v4628_v16, %v7485_v50 }
0x1967   : > { %v4631_v25 = vadd.f32 %v5513_v23, %v4582_v48  ;;  %4644 = vadd.xlane.f32.xlu0 %v4636_v63  ;;  %v4652_v27 = vsub.f32 %v4634_v49, %v4648_v24 }
0x1968   : > { %v4643_v3 = vpop.xlane.xlu0 %4642 }
0x1969   : > { %v4649_v28 = vmul.f32 0.0078125, %v4643_v3  ;;  %v4637_v29 = vadd.f32 %v4631_v25, %v7493_v56  ;;  %v4656_v26 = vmul.f32 %v4652_v27, %v4652_v27 }
0x196b   : > { %4646 = vadd.xlane.f32.xlu0 %v4637_v29  ;;  %v4653_v31 = vsub.f32 %v4635_v2, %v4649_v28 }
0x196d   : > { %v4657_v33 = vmul.f32 %v4653_v31, %v4653_v31 }
0x196f   : > { %4660 = vadd.xlane.f32.xlu0 %v4656_v26 }
0x1973   : > { %4662 = vadd.xlane.f32.xlu0 %v4657_v33 }
0x19f0   : > { %v4645_v34 = vpop.xlane.xlu0 %4644 }
0x19f1   : > { %v4650_v36 = vmul.f32 0.0078125, %v4645_v34 }
0x19f3   : > { %v4654_v37 = vsub.f32 %v4636_v63, %v4650_v36 }
0x19f4   : > { %v4647_v50 = vpop.xlane.xlu0 %4646 }
0x19f5   : > { %v4651_v52 = vmul.f32 0.0078125, %v4647_v50  ;;  %v4658_v41 = vmul.f32 %v4654_v37, %v4654_v37 }
0x19f7   : > { %v4655_v40 = vsub.f32 %v4637_v29, %v4651_v52  ;;  %4664 = vadd.xlane.f32.xlu1 %v4658_v41 }
0x19f8   : > { %v4661_v42 = vpop.xlane.xlu0 %4660 }
0x19f9   : > { %v4668_v45 = vmul.f32 0.0078125, %v4661_v42  ;;  %v4659_v56 = vmul.f32 %v4655_v40, %v4655_v40 }
0x19fb   : > { %v4672_v47 = vadd.f32 1e-05, %v4668_v45  ;;  %4666 = vadd.xlane.f32.xlu0 %v4659_v56 }
0x19fc   : > { %v4663_v38 = vpop.xlane.xlu0 %4662 }
0x19fd   : > { %6324 = vrsqrt.f32 %v4672_v47  ;;  %v4669_v14 = vmul.f32 0.0078125, %v4663_v38 }
0x19ff   : > { %v4673_v18 = vadd.f32 1e-05, %v4669_v14 }
0x1a01   : > { %6326 = vrsqrt.f32 %v4673_v18 }
0x1a0a   : > { %v6325_v8 = vpop.eup %6324 }
0x1a0b   : > { %v4680_v0 = vmul.f32 %v6325_v8, %v4652_v27 }
0x1a0d   : > { %v4690_v53 = vmul.f32 %v5252_v12, %v4680_v0 }
0x1a0e   : > { %v6327_v43 = vpop.eup %6326 }
0x1a0f   : > { %v4681_v20 = vmul.f32 %v6327_v43, %v4653_v31  ;;  %v4700_v59 = vadd.f32 %v5253_v58, %v4690_v53 }
0x1a11   : > { %v4691_v30 = vmul.f32 %v5252_v12, %v4681_v20 }
0x1a13   : > { %v4701_v60 = vadd.f32 %v5253_v58, %v4691_v30 }
0x1a15   : > { %v4704_v1 = vpack.c.bf16 %v4701_v60, %v4700_v59 }
0x1a17   : > { %5852 = vmatprep.mubr.bf16.mxu0 %v4704_v1 }
0x1a80   : > { %v4665_v46 = vpop.xlane.xlu1 %4664 }
0x1a81   : > { %v4670_v61 = vmul.f32 0.0078125, %v4665_v46 }
0x1a83   : > { %v4674_v49 = vadd.f32 1e-05, %v4670_v61 }
0x1a84   : > { %v4667_v11 = vpop.xlane.xlu0 %4666 }
0x1a85   : > { %6328 = vrsqrt.f32 %v4674_v49  ;;  %v4671_v2 = vmul.f32 0.0078125, %v4667_v11 }
0x1a87   : > { %v4675_v51 = vadd.f32 1e-05, %v4671_v2 }
0x1a89   : > { %6330 = vrsqrt.f32 %v4675_v51 }
0x1a92   : > { %v6329_v5 = vpop.eup %6328 }
0x1a93   : > { %v4682_v4 = vmul.f32 %v6329_v5, %v4654_v37 }
0x1a95   : > { %v4692_v35 = vmul.f32 %v5252_v12, %v4682_v4 }
0x1a96   : > { %v6331_v22 = vpop.eup %6330 }
0x1a97   : > { %v4683_v6 = vmul.f32 %v6331_v22, %v4655_v40  ;;  %v4702_v7 = vadd.f32 %v5253_v58, %v4692_v35 }
0x1a99   : > { %v4693_v44 = vmul.f32 %v5252_v12, %v4683_v6 }
0x1a9b   : > { %v4703_v13 = vadd.f32 %v5253_v58, %v4693_v44 }
0x1a9d   : > { %v4705_v15 = vpack.c.bf16 %v4703_v13, %v4702_v7 }
0x1a9f   : > { %5853 = vmatmul.mubr.bf16.vlgmr.msra.gmra.mxu0 %v4705_v15 }
0x1b5f   : > { %v5854_v16 = vpop.f32.mrf.mxu0 }
0x1b60   : > { %v4820_v32 = vadd.f32 %v5854_v16, %v5254_v17 }
0x1b61   : > { %v4811_v21 = vpop.f32.mrf.mxu0 }
0x1b62   : > { %4828 = vst [vmem:[%s709_s18 + $0x10] sm:$0xff] %v4820_v32  ;;  %v4812_v48 = vadd.f32 %v5254_v17, %v4811_v21 }
0x1b63   : > { %v5855_v23 = vpop.f32.mrf.mxu0 }
0x1b64   : > { %4826 = vst [vmem:[%s709_s18] sm:$0xff] %v4812_v48  ;;  %v4823_v24 = vadd.f32 %v5855_v23, %v5254_v17 }
0x1b65   : > { %v4814_v63 = vpop.f32.mrf.mxu0 }
0x1b66   : > { %4829 = vst [vmem:[%s709_s18 + $0x18] sm:$0xff] %v4823_v24  ;;  %v4815_v25 = vadd.f32 %v5254_v17, %v4814_v63 }
0x1b68   : > { %4827 = vst [vmem:[%s709_s18 + $0x8] sm:$0xff] %v4815_v25 }
0x1b69   : > { %6585 = shalt.err (!%p6582_p2)
}
0x1b6a   : > { %s6586_s6 = scalar_lea.hbm %s7567_s24, 512  ;;  %s6590_s4 = scalar_lea.hbm %s7684_s21, 1024 }
0x1b6b   : > { %p6587_p6 = scmp.ne.s32.totalorder %s7567_s24, %s6586_s6  ;;  %p6591_p11 = scmp.lt.s32.totalorder %s7567_s24, %s7684_s21 }
0x1b6c   : > { %p6592_p0 = scmp.lt.s32.totalorder %s6590_s4, %s6586_s6 }
0x1b6d   : > { %p6588_p10 = pnand %p6587_p6, %p7685_p8 }
0x1b6e   : > { %p6593_p13 = por %p6592_p0, %p6591_p11 }
0x1b6f   : > { %p6589_p7 = pneg %p6588_p10 }
0x1b71   : > { %p6594_p5 = pnand %p6593_p13, %p6589_p7 }
0x1b73   : > { %6597 = shalt.err (!%p6594_p5)
}
0x1b74   : > { %s6675_s19 = smov 128   ;;  %s6676_s1 = smov 8  }
0x1b75   : > { %5890 = dma.vmem_to_hbm [thread:$0]  (%p7685_p8), %s7562_s3, 512, %s7567_s24, %s4831_s12, %s6675_s19, %s6675_s19, %s6676_s1  }
0x1b76 PF: > { %s4859_s26 = sand.u32 1, %s6640_s27   ;;  %p7686_p9 = scmp.ne.s32.totalorder %s7663_s23, 0 }
0x1b77   : > { %p7687_p12 = scmp.ge.s32.totalorder %s6652_s30, 2  ;;  %s4860_s15 = scalar_lea.sflag [#allocation5], %s4859_s26 }
0x1b79   : > { %p5922_p1 = pnand %p7687_p12, %p7686_p9 }
0x1b7b   : > { %p5923_p3 = pneg %p5922_p1 }
0x1b7d   : > { %6635 = dma.done.wait (%p5923_p3), %s4860_s15, 512  }
0x1b7e   : > { %6637 = vsyncadd (%p5923_p3), %s4860_s15, 4294966784  ;;  %p35_p4 = scmp.ge.s32.totalorder %s6906_s25, 4   ;;  %s7688_s27 = smov %s6644_s28 }
0x1b7f   : > { %s7689_s28 = smov %s6648_s29  ;;  %s7690_s29 = smov %s6918_s17 }
0x1b80   : > { %s7691_s30 = smov %s6906_s25  ;;  %37 = sbr.rel (!%p35_p4) target bundleno = 23 (0x17), region = 182 }
0x1b85   :  { %4865 = vsyncpa [#allocation4], 1 }
0x1b86   :  { %4867 = vsyncpa [#allocation4 + $0x1], 1 }
0x1b87   :  { %4868 = vsyncpa [#allocation7], 1 }
0x1b88   :  { %4869 = vsyncpa [#allocation10], 1 }
0x1b89   :  { %4870 = vsyncpa [#allocation13], 1 }
0x1b8a   :  { %4871 = vsyncpa [#allocation16], 1 }
0x1b8b   :  { %4872 = vsyncpa [#allocation5], 1 }
0x1b8c   :  { %4874 = vsyncpa [#allocation5 + $0x1], 1 }

</bundles_post_ra>
